<compile_context>
chip_gen: v7x
topology: tpu7x:2x2x1
jax: 0.10.0
libtpu: 0.0.40
codegen_flags: <defaults>
</compile_context>

<pallas_src>
import numpy as np
import jax
import jax.numpy as jnp
from jax.experimental import pallas as pl
from jax.experimental.pallas import tpu as pltpu

B = 2
CIN = 3
H = W = 16
HW = H * W
INW = CIN * HW      # flat image width (channel-major, spatial-minor)
CF = 8              # feature channels at the grad layer
KH = KW = 3
STRIDE = 2
PAD = 1
HF = WF = 8         # conv output spatial size
SF = HF * WF * CF   # flattened conv feature width (spatial-major, channel-minor)
NUM_CLASSES = 2

OMEGA = 30.0
SIGMA = 0.5
# sys.float_info.epsilon, exactly as added to the float32 tensor in the module.
EPS = 2.220446049250313e-16
FILL_COLOR = (0.3, 0.5, 0.7)   # deterministic stand-in for the `fill_color` ctor arg


def _full_spec(shape):
    n = len(shape)
    return pl.BlockSpec(shape, lambda i, n=n: (0,) * n)


def bilinear_matrix(out_size, in_size):
    # Matches F.interpolate(mode='bilinear', align_corners=False).
    scale = in_size / out_size
    R = np.zeros((out_size, in_size), np.float32)
    for o in range(out_size):
        src = max((o + 0.5) * scale - 0.5, 0.0)
        x0 = min(int(np.floor(src)), in_size - 1)
        x1 = min(x0 + 1, in_size - 1)
        lam = src - x0
        R[o, x0] += 1.0 - lam
        R[o, x1] += lam
    return R


# ------------------------- host-side weight folding -------------------------

def prepare_params(raw):
    """Fold conv / fc weights into the dense matrices consumed by the kernel."""
    wconv = np.asarray(raw["wconv"], np.float32)    # (CF, CIN, KH, KW)
    bc = np.asarray(raw["bc"], np.float32)          # (CF,)
    wfc = np.asarray(raw["wfc"], np.float32)        # (CF, K)
    bfc = np.asarray(raw["bfc"], np.float32)        # (K,)

    # conv (with zero padding, stride 2) as ONE matmul:
    #   feat[b, s*CF + f] = img_flat[b, :] @ kc[:, s*CF + f]  + bias
    # with img_flat index c*HW + p, p = ih*W + iw and s = oi*WF + oj.
    kc = np.zeros((CIN, HW, SF), np.float32)
    for oi in range(HF):
        for oj in range(WF):
            s = oi * WF + oj
            for kh in range(KH):
                for kw in range(KW):
                    ih = oi * STRIDE + kh - PAD
                    iw = oj * STRIDE + kw - PAD
                    if 0 <= ih < H and 0 <= iw < W:
                        p = ih * W + iw
                        for c in range(CIN):
                            kc[c, p, s * CF:(s + 1) * CF] += wconv[:, c, kh, kw]
    kc_flat = kc.reshape(INW, SF)                                    # (768, 512)

    cbias = np.tile(bc, HF * WF).reshape(1, SF)                      # bias per column
    whead = (np.tile(wfc, (HF * WF, 1)) / (HF * WF)).astype(np.float32)  # GAP folded into fc

    # Grad-CAM pooling with the analytic-backward scale folded in:
    #   w_bc[b,f] = mean_spatial(1[feat>0])[f] * sum_k Wfc[f,k] / (HF*WF)
    wsum = wfc.sum(axis=1)                                           # (CF,)
    gpool = np.tile(np.eye(CF, dtype=np.float32), (HF * WF, 1)) / (HF * WF)
    gpool_w = (gpool * (wsum / (HF * WF))[None, :]).astype(np.float32)   # (SF, CF)

    expand = np.tile(np.eye(CF, dtype=np.float32), (1, HF * WF))     # per-channel bcast
    reduce_m = np.kron(np.eye(HF * WF, dtype=np.float32),
                       np.ones((CF, 1), np.float32))                 # channel reduce (0/1)
    rh = bilinear_matrix(H, HF)
    rw = bilinear_matrix(W, WF)
    r2d = np.kron(rh, rw).T.astype(np.float32)                       # (HF*WF, H*W), k/16 values

    fill_flat = np.repeat(np.asarray(FILL_COLOR, np.float32), HW).reshape(1, INW)

    return {
        # bf16 where it halves the dominant DMA (kc) or is exactly
        # representable (0/1 reduce, k/16 bilinear weights — lossless).
        "kc": jnp.asarray(kc_flat.astype(jnp.bfloat16)),             # (768, 512) bf16
        "reduce": jnp.asarray(reduce_m.astype(jnp.bfloat16)),        # (512, 64)  bf16 (exact)
        "r2d": jnp.asarray(r2d.astype(jnp.bfloat16)),                # (64, 256)  bf16 (exact)
        "cbias": jnp.asarray(cbias),
        "whead": jnp.asarray(whead),
        "bfc": jnp.asarray(bfc.reshape(1, NUM_CLASSES)),
        "gpoolw": jnp.asarray(gpool_w),
        "expand": jnp.asarray(expand),
        "fill": jnp.asarray(fill_flat),
    }


# ------------------------------ fused kernel --------------------------------

def _fused_gain_kernel(img_ref, kc_ref, cbias_ref, whead_ref, bfc_ref,
                       gpoolw_ref, expand_ref, reduce_ref, r2d_ref, fill_ref,
                       logits_cl_ref, logits_am_ref,
                       scaled_ref, mask_ref, masked_ref):
    # img:    (B, CIN*H*W)        flat images, channel-major (lane-dense, 768)
    # kc:     (CIN*H*W, SF) bf16  conv-as-matmul matrix (pad + im2col folded)
    # cbias:  (1, SF)             conv bias broadcast over spatial positions
    # whead:  (SF, K)             GAP (1/64) folded into the fc weight
    # bfc:    (1, K)
    # gpoolw: (SF, CF)            Grad-CAM pooling with wsum/(HF*WF) folded in
    # expand: (CF, SF)            broadcast per-channel weight over spatial
    # reduce: (SF, HF*WF) bf16    channel reduction per spatial position
    # r2d:    (HF*WF, H*W) bf16   separable bilinear upsample, kron(rh, rw).T
    # fill:   (1, CIN*H*W)        fill_color broadcast to the flat layout

    # Up-convert the bf16 constants ONCE; both conv passes reuse them.
    kc = kc_ref[...].astype(jnp.float32)
    red = reduce_ref[...].astype(jnp.float32)
    r2d = r2d_ref[...].astype(jnp.float32)

    def conv_feat(x):
        # x: (B, CIN*H*W) value -> pre-ReLU conv features (B, SF), col = s*CF+f.
        return jnp.dot(x, kc, preferred_element_type=jnp.float32) + cbias_ref[...]

    def head(feat):
        # ReLU -> global-avg-pool -> Linear (GAP folded into whead).
        return jnp.dot(jnp.maximum(feat, 0.0), whead_ref[...],
                       preferred_element_type=jnp.float32) + bfc_ref[...]

    # ---- logits_cl = model(images); forward hook captures pre-ReLU conv out.
    img = img_ref[...]                                               # (B, 768)
    feat = conv_feat(img)                                            # fl, (B, SF)
    logits_cl_ref[...] = head(feat)

    # ---- analytic backward hook + weights = adaptive_avg_pool2d(grad, 1)
    relu_grad = jnp.where(feat > 0.0, 1.0, 0.0)                      # (B, SF)
    w_bc = jnp.dot(relu_grad, gpoolw_ref[...],
                   preferred_element_type=jnp.float32)               # (B, CF)

    # ---- Ac = relu((fl * weights).sum(channel)); bilinear resize to (H, W)
    wexp = jnp.dot(w_bc, expand_ref[...],
                   preferred_element_type=jnp.float32)               # (B, SF)
    ac_low = jnp.maximum(
        jnp.dot(feat * wexp, red,
                preferred_element_type=jnp.float32), 0.0)            # (B, HF*WF)
    ac = jnp.dot(ac_low, r2d, preferred_element_type=jnp.float32)    # (B, H*W)

    # ---- per-image min/max scaling, sigmoid mask, masked image
    ac_min = jnp.min(ac, axis=1, keepdims=True)
    ac_max = jnp.max(ac, axis=1, keepdims=True)
    # EPS matches torch: sys.float_info.epsilon added to a float32 quantity.
    scaled = (ac - ac_min) / (ac_max - ac_min + EPS)
    m = jax.nn.sigmoid(OMEGA * (scaled - SIGMA))                     # EUP, free slot
    scaled_ref[...] = scaled                                         # (B, 256) lane-dense
    mask_ref[...] = m

    # Broadcast the per-pixel mask to all CIN channels of the flat layout
    # (128-aligned lane concat), compute the masked image as a VALUE, store it
    # once, and feed the value straight to the AM conv (no VMEM re-read).
    m3 = jnp.concatenate([m] * CIN, axis=1)                          # (B, 768)
    masked = img - img * m3 + m3 * fill_ref[...]                     # exact module form
    masked_ref[...] = masked                                         # (B, 768) lane-dense

    # ---- logits_am = freezed_bn_model(masked_image); the synthetic model has
    # no BatchNorm so this is the same network on the masked image.
    logits_am_ref[...] = head(conv_feat(masked))


# ------------------------------- JAX wrapper ---------------------------------

def batch_gain_deepfake_forward(images, labels, fp, train_flag=False):
    """images: (B, 3, H, W) float32 NCHW.  Returns the module's 6-tuple."""
    del labels       # labels_ohe is computed by the module but unused by returned tensors
    del train_flag
    img_flat = images.reshape(B, INW)         # free layout change outside the kernel

    out_shapes = [
        jax.ShapeDtypeStruct((B, NUM_CLASSES), jnp.float32),     # logits_cl
        jax.ShapeDtypeStruct((B, NUM_CLASSES), jnp.float32),     # logits_am
        jax.ShapeDtypeStruct((B, HW), jnp.float32),              # scaled_ac (lane-dense)
        jax.ShapeDtypeStruct((B, HW), jnp.float32),              # mask      (lane-dense)
        jax.ShapeDtypeStruct((B, INW), jnp.float32),             # masked image (flat)
    ]
    inputs = (img_flat, fp["kc"], fp["cbias"], fp["whead"], fp["bfc"],
              fp["gpoolw"], fp["expand"], fp["reduce"], fp["r2d"], fp["fill"])

    # Advisory cost: two long-K conv matmuls dominate flops; kc dominates bytes.
    flops = (2 * 2 * B * INW * SF                 # two conv passes
             + 2 * 2 * B * SF * NUM_CLASSES       # two heads
             + 2 * B * SF * CF + 2 * B * CF * SF  # grad pool + expand
             + 2 * B * SF * HF * WF               # channel reduce
             + 2 * B * HF * WF * HW               # bilinear upsample
             + 16 * B * HW)                       # elementwise slack
    bytes_accessed = (sum(int(np.prod(a.shape)) * a.dtype.itemsize for a in inputs)
                      + sum(int(np.prod(s.shape)) * np.dtype(s.dtype).itemsize
                            for s in out_shapes))

    # TODO(synk): at production resolutions, tile the SF axis with a real grid
    # (blocks multiple of (8,128)/256), mark the constants pl.Buffered(1) and
    # add a 'parallel' batch axis for the v7x second TensorCore; at this toy
    # size a single full-block invocation is both smallest and fastest.
    outs = pl.pallas_call(
        _fused_gain_kernel,
        grid=(1,),
        in_specs=[_full_spec(x.shape) for x in inputs],
        out_specs=[_full_spec(s.shape) for s in out_shapes],
        out_shape=out_shapes,
        compiler_params=pltpu.CompilerParams(
            dimension_semantics=("arbitrary",),
            vmem_limit_bytes=32 * 1024 * 1024),
        cost_estimate=pl.CostEstimate(flops=int(flops),
                                      transcendentals=int(B * HW),
                                      bytes_accessed=int(bytes_accessed)),
    )(*inputs)

    logits_cl, logits_am, scaled, mask, masked = outs
    logits_em = 0  # TODO(synk): train-time EM branch needs external e_masks; eval path returns 0.
    return (logits_cl, logits_am,
            scaled.reshape(B, 1, H, W), mask.reshape(B, 1, H, W),
            masked.reshape(B, CIN, H, W), logits_em)


# ------------------------- pure-JAX reference (XLA) --------------------------

def reference_forward(images, raw):
    # The kernel stores the folded conv weights in bf16 (perf review item);
    # the reference applies the identically-quantized conv weights so this
    # checks the kernel math rather than the intentional weight quantization.
    wconv = jnp.asarray(np.asarray(raw["wconv"], np.float32)
                        .astype(jnp.bfloat16).astype(np.float32))
    bc = jnp.asarray(raw["bc"])
    wfc = jnp.asarray(raw["wfc"])
    bfc = jnp.asarray(raw["bfc"])
    rh = jnp.asarray(bilinear_matrix(H, HF))
    rw = jnp.asarray(bilinear_matrix(W, WF))
    hi = jax.lax.Precision.HIGHEST

    def model(x):
        conv = jax.lax.conv_general_dilated(
            x, wconv, window_strides=(STRIDE, STRIDE),
            padding=((PAD, PAD), (PAD, PAD)),
            dimension_numbers=("NCHW", "OIHW", "NCHW"),
            precision=hi) + bc.reshape(1, CF, 1, 1)
        gap = jnp.maximum(conv, 0.0).mean(axis=(2, 3))
        return jnp.dot(gap, wfc, precision=hi) + bfc, conv

    logits_cl, conv = model(images)
    relu_grad = (conv > 0.0).astype(jnp.float32)
    wsum = wfc.sum(axis=1)
    backward = wsum.reshape(1, CF, 1, 1) * relu_grad / (HF * WF)
    weights = backward.mean(axis=(2, 3), keepdims=True)
    ac = jnp.maximum((conv * weights).sum(axis=1), 0.0)              # (B, HF, WF)
    ac = jnp.einsum("hi,bij,wj->bhw", rh, ac, rw, precision=hi)      # (B, H, W)
    ac_min = ac.reshape(B, -1).min(axis=1).reshape(B, 1, 1)
    ac_max = ac.reshape(B, -1).max(axis=1).reshape(B, 1, 1)
    scaled = (ac - ac_min) / (ac_max - ac_min + EPS)
    mask = jax.nn.sigmoid(OMEGA * (scaled - SIGMA))
    fill = jnp.asarray(FILL_COLOR).reshape(1, CIN, 1, 1)
    mask4 = mask[:, None, :, :]
    masked = images - images * mask4 + mask4 * fill
    logits_am, _ = model(masked)
    return (logits_cl, logits_am, scaled[:, None, :, :], mask4, masked)


if __name__ == "__main__":
    key = jax.random.PRNGKey(0)
    k1, k2, k3, k4, k5 = jax.random.split(key, 5)
    raw = {
        "wconv": jax.random.normal(k1, (CF, CIN, KH, KW), jnp.float32) * 0.3,
        "bc":    jax.random.normal(k2, (CF,), jnp.float32) * 0.1,
        "wfc":   jax.random.normal(k3, (CF, NUM_CLASSES), jnp.float32) * 0.3,
        "bfc":   jax.random.normal(k4, (NUM_CLASSES,), jnp.float32) * 0.1,
    }
    images = jax.random.uniform(k5, (B, CIN, H, W), jnp.float32)
    labels = jnp.array([0, 1], jnp.int32)

    fp = prepare_params(raw)
    outs = batch_gain_deepfake_forward(images, labels, fp)
    jax.block_until_ready(outs[:5])
    logits_cl, logits_am, scaled_ac, mask, masked_image, logits_em = outs

    assert logits_cl.shape == (B, NUM_CLASSES)
    assert logits_am.shape == (B, NUM_CLASSES)
    assert scaled_ac.shape == (B, 1, H, W)
    assert mask.shape == (B, 1, H, W)
    assert masked_image.shape == (B, CIN, H, W)
    assert logits_em == 0

    ref = reference_forward(images, raw)
    names = ("logits_cl", "logits_am", "scaled_ac", "mask", "masked_image")
    for got, want, name in zip(outs[:5], ref, names):
        np.testing.assert_allclose(np.asarray(got), np.asarray(want),
                                   rtol=2e-2, atol=1e-2, err_msg=name)
    print("KERNEL_OK")
</pallas_src>

<mosaic_0001>
module attributes {stable_mosaic.version = 11 : i64} {
  func.func @_fused_gain_kernel(%arg0: i32, %arg1: memref<2x768xf32, #tpu.memory_space<vmem>>, %arg2: memref<768x512xbf16, #tpu.memory_space<vmem>>, %arg3: memref<1x512xf32, #tpu.memory_space<vmem>>, %arg4: memref<512x2xf32, #tpu.memory_space<vmem>>, %arg5: memref<1x2xf32, #tpu.memory_space<vmem>>, %arg6: memref<512x8xf32, #tpu.memory_space<vmem>>, %arg7: memref<8x512xf32, #tpu.memory_space<vmem>>, %arg8: memref<512x64xbf16, #tpu.memory_space<vmem>>, %arg9: memref<64x256xbf16, #tpu.memory_space<vmem>>, %arg10: memref<1x768xf32, #tpu.memory_space<vmem>>, %arg11: memref<2x2xf32, #tpu.memory_space<vmem>>, %arg12: memref<2x2xf32, #tpu.memory_space<vmem>>, %arg13: memref<2x256xf32, #tpu.memory_space<vmem>>, %arg14: memref<2x256xf32, #tpu.memory_space<vmem>>, %arg15: memref<2x768xf32, #tpu.memory_space<vmem>>) attributes {dimension_semantics = [#tpu.dimension_semantics<arbitrary>], iteration_bounds = array<i64: 1>, scalar_prefetch = 0 : i64, scratch_operands = 0 : i64, tpu.core_type = #tpu.core_type<tc>, window_params = [{pipeline_mode = #tpu.pipeline_mode<synchronous>, transform_indices = @transform_0, window_bounds = array<i64: 2, 768>}, {pipeline_mode = #tpu.pipeline_mode<synchronous>, transform_indices = @transform_1, window_bounds = array<i64: 768, 512>}, {pipeline_mode = #tpu.pipeline_mode<synchronous>, transform_indices = @transform_2, window_bounds = array<i64: 1, 512>}, {pipeline_mode = #tpu.pipeline_mode<synchronous>, transform_indices = @transform_3, window_bounds = array<i64: 512, 2>}, {pipeline_mode = #tpu.pipeline_mode<synchronous>, transform_indices = @transform_4, window_bounds = array<i64: 1, 2>}, {pipeline_mode = #tpu.pipeline_mode<synchronous>, transform_indices = @transform_5, window_bounds = array<i64: 512, 8>}, {pipeline_mode = #tpu.pipeline_mode<synchronous>, transform_indices = @transform_6, window_bounds = array<i64: 8, 512>}, {pipeline_mode = #tpu.pipeline_mode<synchronous>, transform_indices = @transform_7, window_bounds = array<i64: 512, 64>}, {pipeline_mode = #tpu.pipeline_mode<synchronous>, transform_indices = @transform_8, window_bounds = array<i64: 64, 256>}, {pipeline_mode = #tpu.pipeline_mode<synchronous>, transform_indices = @transform_9, window_bounds = array<i64: 1, 768>}, {pipeline_mode = #tpu.pipeline_mode<synchronous>, transform_indices = @transform_10, window_bounds = array<i64: 2, 2>}, {pipeline_mode = #tpu.pipeline_mode<synchronous>, transform_indices = @transform_11, window_bounds = array<i64: 2, 2>}, {pipeline_mode = #tpu.pipeline_mode<synchronous>, transform_indices = @transform_12, window_bounds = array<i64: 2, 256>}, {pipeline_mode = #tpu.pipeline_mode<synchronous>, transform_indices = @transform_13, window_bounds = array<i64: 2, 256>}, {pipeline_mode = #tpu.pipeline_mode<synchronous>, transform_indices = @transform_14, window_bounds = array<i64: 2, 768>}]} {
    %c0 = arith.constant 0 : index
    %c0_0 = arith.constant 0 : index
    %0 = vector.load %arg2[%c0, %c0_0] : memref<768x512xbf16, #tpu.memory_space<vmem>>, vector<768x512xbf16>
    %1 = arith.extf %0 : vector<768x512xbf16> to vector<768x512xf32>
    %c0_1 = arith.constant 0 : index
    %c0_2 = arith.constant 0 : index
    %2 = vector.load %arg8[%c0_1, %c0_2] : memref<512x64xbf16, #tpu.memory_space<vmem>>, vector<512x64xbf16>
    %3 = arith.extf %2 : vector<512x64xbf16> to vector<512x64xf32>
    %c0_3 = arith.constant 0 : index
    %c0_4 = arith.constant 0 : index
    %4 = vector.load %arg9[%c0_3, %c0_4] : memref<64x256xbf16, #tpu.memory_space<vmem>>, vector<64x256xbf16>
    %5 = arith.extf %4 : vector<64x256xbf16> to vector<64x256xf32>
    %c0_5 = arith.constant 0 : index
    %c0_6 = arith.constant 0 : index
    %6 = vector.load %arg1[%c0_5, %c0_6] : memref<2x768xf32, #tpu.memory_space<vmem>>, vector<2x768xf32>
    %cst = arith.constant dense<0.000000e+00> : vector<2x512xf32>
    %7 = tpu.matmul %6, %1, %cst {dimension_numbers = #tpu.dot_dimension_numbers<[1], [0], [0], [1], [0, 0, 1, 1], [], []>} : vector<2x768xf32>, vector<768x512xf32>, vector<2x512xf32> -> vector<2x512xf32>
    %c0_7 = arith.constant 0 : index
    %c0_8 = arith.constant 0 : index
    %8 = vector.load %arg3[%c0_7, %c0_8] : memref<1x512xf32, #tpu.memory_space<vmem>>, vector<1x512xf32>
    %9 = vector.broadcast %8 : vector<1x512xf32> to vector<2x512xf32>
    %10 = arith.addf %7, %9 : vector<2x512xf32>
    %cst_9 = arith.constant 0.000000e+00 : f32
    %11 = vector.broadcast %cst_9 : f32 to vector<2x512xf32>
    %12 = arith.maximumf %10, %11 : vector<2x512xf32>
    %c0_10 = arith.constant 0 : index
    %c0_11 = arith.constant 0 : index
    %13 = vector.load %arg4[%c0_10, %c0_11] : memref<512x2xf32, #tpu.memory_space<vmem>>, vector<512x2xf32>
    %cst_12 = arith.constant dense<0.000000e+00> : vector<2x2xf32>
    %14 = tpu.matmul %12, %13, %cst_12 {dimension_numbers = #tpu.dot_dimension_numbers<[1], [0], [0], [1], [0, 0, 1, 1], [], []>} : vector<2x512xf32>, vector<512x2xf32>, vector<2x2xf32> -> vector<2x2xf32>
    %c0_13 = arith.constant 0 : index
    %c0_14 = arith.constant 0 : index
    %15 = vector.load %arg5[%c0_13, %c0_14] : memref<1x2xf32, #tpu.memory_space<vmem>>, vector<1x2xf32>
    %16 = vector.broadcast %15 : vector<1x2xf32> to vector<2x2xf32>
    %17 = arith.addf %14, %16 : vector<2x2xf32>
    %c0_15 = arith.constant 0 : index
    %c0_16 = arith.constant 0 : index
    %18 = vector.load %arg11[%c0_15, %c0_16] : memref<2x2xf32, #tpu.memory_space<vmem>>, vector<2x2xf32>
    tpu.vector_store %arg11[%c0_15, %c0_16], %17 {strides = array<i32>} : memref<2x2xf32, #tpu.memory_space<vmem>>, vector<2x2xf32>,
    %cst_17 = arith.constant 0.000000e+00 : f32
    %19 = vector.broadcast %cst_17 : f32 to vector<2x512xf32>
    %20 = arith.cmpf ogt, %10, %19 : vector<2x512xf32>
    %cst_18 = arith.constant 1.000000e+00 : f32
    %cst_19 = arith.constant 0.000000e+00 : f32
    %21 = vector.broadcast %cst_18 : f32 to vector<2x512xf32>
    %22 = vector.broadcast %cst_19 : f32 to vector<2x512xf32>
    %23 = arith.select %20, %21, %22 : vector<2x512xi1>, vector<2x512xf32>
    %c0_20 = arith.constant 0 : index
    %c0_21 = arith.constant 0 : index
    %24 = vector.load %arg6[%c0_20, %c0_21] : memref<512x8xf32, #tpu.memory_space<vmem>>, vector<512x8xf32>
    %cst_22 = arith.constant dense<0.000000e+00> : vector<2x8xf32>
    %25 = tpu.matmul %23, %24, %cst_22 {dimension_numbers = #tpu.dot_dimension_numbers<[1], [0], [0], [1], [0, 0, 1, 1], [], []>} : vector<2x512xf32>, vector<512x8xf32>, vector<2x8xf32> -> vector<2x8xf32>
    %c0_23 = arith.constant 0 : index
    %c0_24 = arith.constant 0 : index
    %26 = vector.load %arg7[%c0_23, %c0_24] : memref<8x512xf32, #tpu.memory_space<vmem>>, vector<8x512xf32>
    %cst_25 = arith.constant dense<0.000000e+00> : vector<2x512xf32>
    %27 = tpu.matmul %25, %26, %cst_25 {dimension_numbers = #tpu.dot_dimension_numbers<[1], [0], [0], [1], [0, 0, 1, 1], [], []>} : vector<2x8xf32>, vector<8x512xf32>, vector<2x512xf32> -> vector<2x512xf32>
    %28 = arith.mulf %10, %27 : vector<2x512xf32>
    %cst_26 = arith.constant dense<0.000000e+00> : vector<2x64xf32>
    %29 = tpu.matmul %28, %3, %cst_26 {dimension_numbers = #tpu.dot_dimension_numbers<[1], [0], [0], [1], [0, 0, 1, 1], [], []>} : vector<2x512xf32>, vector<512x64xf32>, vector<2x64xf32> -> vector<2x64xf32>
    %cst_27 = arith.constant 0.000000e+00 : f32
    %30 = vector.broadcast %cst_27 : f32 to vector<2x64xf32>
    %31 = arith.maximumf %29, %30 : vector<2x64xf32>
    %cst_28 = arith.constant dense<0.000000e+00> : vector<2x256xf32>
    %32 = tpu.matmul %31, %5, %cst_28 {dimension_numbers = #tpu.dot_dimension_numbers<[1], [0], [0], [1], [0, 0, 1, 1], [], []>} : vector<2x64xf32>, vector<64x256xf32>, vector<2x256xf32> -> vector<2x256xf32>
    %cst_29 = arith.constant dense<0x7F800000> : vector<2xf32>
    %33 = vector.multi_reduction <minimumf>, %32, %cst_29 [1] : vector<2x256xf32> to vector<2xf32>
    %34 = vector.shape_cast %33 : vector<2xf32> to vector<2x1xf32>
    %cst_30 = arith.constant dense<0xFF800000> : vector<2xf32>
    %35 = vector.multi_reduction <maximumf>, %32, %cst_30 [1] : vector<2x256xf32> to vector<2xf32>
    %36 = vector.shape_cast %35 : vector<2xf32> to vector<2x1xf32>
    %37 = vector.broadcast %34 : vector<2x1xf32> to vector<2x256xf32>
    %38 = arith.subf %32, %37 : vector<2x256xf32>
    %39 = arith.subf %36, %34 : vector<2x1xf32>
    %cst_31 = arith.constant 2.22044605E-16 : f32
    %40 = vector.broadcast %cst_31 : f32 to vector<2x1xf32>
    %41 = arith.addf %39, %40 : vector<2x1xf32>
    %42 = vector.broadcast %41 : vector<2x1xf32> to vector<2x256xf32>
    %43 = arith.divf %38, %42 : vector<2x256xf32>
    %cst_32 = arith.constant 5.000000e-01 : f32
    %44 = vector.broadcast %cst_32 : f32 to vector<2x256xf32>
    %45 = arith.subf %43, %44 : vector<2x256xf32>
    %cst_33 = arith.constant 3.000000e+01 : f32
    %46 = vector.broadcast %cst_33 : f32 to vector<2x256xf32>
    %47 = arith.mulf %46, %45 : vector<2x256xf32>
    %48 = arith.negf %47 : vector<2x256xf32>
    %49 = math.exp %48 : vector<2x256xf32>
    %cst_34 = arith.constant 1.000000e+00 : f32
    %50 = vector.broadcast %cst_34 : f32 to vector<2x256xf32>
    %51 = arith.addf %50, %49 : vector<2x256xf32>
    %52 = arith.divf %50, %51 : vector<2x256xf32>
    %c0_35 = arith.constant 0 : index
    %c0_36 = arith.constant 0 : index
    %53 = vector.load %arg13[%c0_35, %c0_36] : memref<2x256xf32, #tpu.memory_space<vmem>>, vector<2x256xf32>
    tpu.vector_store %arg13[%c0_35, %c0_36], %43 {strides = array<i32>} : memref<2x256xf32, #tpu.memory_space<vmem>>, vector<2x256xf32>,
    %c0_37 = arith.constant 0 : index
    %c0_38 = arith.constant 0 : index
    %54 = vector.load %arg14[%c0_37, %c0_38] : memref<2x256xf32, #tpu.memory_space<vmem>>, vector<2x256xf32>
    tpu.vector_store %arg14[%c0_37, %c0_38], %52 {strides = array<i32>} : memref<2x256xf32, #tpu.memory_space<vmem>>, vector<2x256xf32>,
    %55 = tpu.concatenate %52, %52, %52 in 1 : vector<2x256xf32>, vector<2x256xf32>, vector<2x256xf32> -> vector<2x768xf32>
    %56 = arith.mulf %6, %55 : vector<2x768xf32>
    %57 = arith.subf %6, %56 : vector<2x768xf32>
    %c0_39 = arith.constant 0 : index
    %c0_40 = arith.constant 0 : index
    %58 = vector.load %arg10[%c0_39, %c0_40] : memref<1x768xf32, #tpu.memory_space<vmem>>, vector<1x768xf32>
    %59 = vector.broadcast %58 : vector<1x768xf32> to vector<2x768xf32>
    %60 = arith.mulf %55, %59 : vector<2x768xf32>
    %61 = arith.addf %57, %60 : vector<2x768xf32>
    %c0_41 = arith.constant 0 : index
    %c0_42 = arith.constant 0 : index
    %62 = vector.load %arg15[%c0_41, %c0_42] : memref<2x768xf32, #tpu.memory_space<vmem>>, vector<2x768xf32>
    tpu.vector_store %arg15[%c0_41, %c0_42], %61 {strides = array<i32>} : memref<2x768xf32, #tpu.memory_space<vmem>>, vector<2x768xf32>,
    %cst_43 = arith.constant dense<0.000000e+00> : vector<2x512xf32>
    %63 = tpu.matmul %61, %1, %cst_43 {dimension_numbers = #tpu.dot_dimension_numbers<[1], [0], [0], [1], [0, 0, 1, 1], [], []>} : vector<2x768xf32>, vector<768x512xf32>, vector<2x512xf32> -> vector<2x512xf32>
    %c0_44 = arith.constant 0 : index
    %c0_45 = arith.constant 0 : index
    %64 = vector.load %arg3[%c0_44, %c0_45] : memref<1x512xf32, #tpu.memory_space<vmem>>, vector<1x512xf32>
    %65 = vector.broadcast %64 : vector<1x512xf32> to vector<2x512xf32>
    %66 = arith.addf %63, %65 : vector<2x512xf32>
    %cst_46 = arith.constant 0.000000e+00 : f32
    %67 = vector.broadcast %cst_46 : f32 to vector<2x512xf32>
    %68 = arith.maximumf %66, %67 : vector<2x512xf32>
    %c0_47 = arith.constant 0 : index
    %c0_48 = arith.constant 0 : index
    %69 = vector.load %arg4[%c0_47, %c0_48] : memref<512x2xf32, #tpu.memory_space<vmem>>, vector<512x2xf32>
    %cst_49 = arith.constant dense<0.000000e+00> : vector<2x2xf32>
    %70 = tpu.matmul %68, %69, %cst_49 {dimension_numbers = #tpu.dot_dimension_numbers<[1], [0], [0], [1], [0, 0, 1, 1], [], []>} : vector<2x512xf32>, vector<512x2xf32>, vector<2x2xf32> -> vector<2x2xf32>
    %c0_50 = arith.constant 0 : index
    %c0_51 = arith.constant 0 : index
    %71 = vector.load %arg5[%c0_50, %c0_51] : memref<1x2xf32, #tpu.memory_space<vmem>>, vector<1x2xf32>
    %72 = vector.broadcast %71 : vector<1x2xf32> to vector<2x2xf32>
    %73 = arith.addf %70, %72 : vector<2x2xf32>
    %c0_52 = arith.constant 0 : index
    %c0_53 = arith.constant 0 : index
    %74 = vector.load %arg12[%c0_52, %c0_53] : memref<2x2xf32, #tpu.memory_space<vmem>>, vector<2x2xf32>
    tpu.vector_store %arg12[%c0_52, %c0_53], %73 {strides = array<i32>} : memref<2x2xf32, #tpu.memory_space<vmem>>, vector<2x2xf32>,
    return
  }
  func.func @transform_0(%arg0: i32) -> (i32, i32) {
    %c0_i32 = arith.constant 0 : i32
    %c0_i32_0 = arith.constant 0 : i32
    %c0_i32_1 = arith.constant 0 : i32
    return %c0_i32, %c0_i32_0 : i32, i32
  }
  func.func @transform_1(%arg0: i32) -> (i32, i32) {
    %c0_i32 = arith.constant 0 : i32
    %c0_i32_0 = arith.constant 0 : i32
    %c0_i32_1 = arith.constant 0 : i32
    return %c0_i32, %c0_i32_0 : i32, i32
  }
  func.func @transform_2(%arg0: i32) -> (i32, i32) {
    %c0_i32 = arith.constant 0 : i32
    %c0_i32_0 = arith.constant 0 : i32
    %c0_i32_1 = arith.constant 0 : i32
    return %c0_i32, %c0_i32_0 : i32, i32
  }
  func.func @transform_3(%arg0: i32) -> (i32, i32) {
    %c0_i32 = arith.constant 0 : i32
    %c0_i32_0 = arith.constant 0 : i32
    %c0_i32_1 = arith.constant 0 : i32
    return %c0_i32, %c0_i32_0 : i32, i32
  }
  func.func @transform_4(%arg0: i32) -> (i32, i32) {
    %c0_i32 = arith.constant 0 : i32
    %c0_i32_0 = arith.constant 0 : i32
    %c0_i32_1 = arith.constant 0 : i32
    return %c0_i32, %c0_i32_0 : i32, i32
  }
  func.func @transform_5(%arg0: i32) -> (i32, i32) {
    %c0_i32 = arith.constant 0 : i32
    %c0_i32_0 = arith.constant 0 : i32
    %c0_i32_1 = arith.constant 0 : i32
    return %c0_i32, %c0_i32_0 : i32, i32
  }
  func.func @transform_6(%arg0: i32) -> (i32, i32) {
    %c0_i32 = arith.constant 0 : i32
    %c0_i32_0 = arith.constant 0 : i32
    %c0_i32_1 = arith.constant 0 : i32
    return %c0_i32, %c0_i32_0 : i32, i32
  }
  func.func @transform_7(%arg0: i32) -> (i32, i32) {
    %c0_i32 = arith.constant 0 : i32
    %c0_i32_0 = arith.constant 0 : i32
    %c0_i32_1 = arith.constant 0 : i32
    return %c0_i32, %c0_i32_0 : i32, i32
  }
  func.func @transform_8(%arg0: i32) -> (i32, i32) {
    %c0_i32 = arith.constant 0 : i32
    %c0_i32_0 = arith.constant 0 : i32
    %c0_i32_1 = arith.constant 0 : i32
    return %c0_i32, %c0_i32_0 : i32, i32
  }
  func.func @transform_9(%arg0: i32) -> (i32, i32) {
    %c0_i32 = arith.constant 0 : i32
    %c0_i32_0 = arith.constant 0 : i32
    %c0_i32_1 = arith.constant 0 : i32
    return %c0_i32, %c0_i32_0 : i32, i32
  }
  func.func @transform_10(%arg0: i32) -> (i32, i32) {
    %c0_i32 = arith.constant 0 : i32
    %c0_i32_0 = arith.constant 0 : i32
    %c0_i32_1 = arith.constant 0 : i32
    return %c0_i32, %c0_i32_0 : i32, i32
  }
  func.func @transform_11(%arg0: i32) -> (i32, i32) {
    %c0_i32 = arith.constant 0 : i32
    %c0_i32_0 = arith.constant 0 : i32
    %c0_i32_1 = arith.constant 0 : i32
    return %c0_i32, %c0_i32_0 : i32, i32
  }
  func.func @transform_12(%arg0: i32) -> (i32, i32) {
    %c0_i32 = arith.constant 0 : i32
    %c0_i32_0 = arith.constant 0 : i32
    %c0_i32_1 = arith.constant 0 : i32
    return %c0_i32, %c0_i32_0 : i32, i32
  }
  func.func @transform_13(%arg0: i32) -> (i32, i32) {
    %c0_i32 = arith.constant 0 : i32
    %c0_i32_0 = arith.constant 0 : i32
    %c0_i32_1 = arith.constant 0 : i32
    return %c0_i32, %c0_i32_0 : i32, i32
  }
  func.func @transform_14(%arg0: i32) -> (i32, i32) {
    %c0_i32 = arith.constant 0 : i32
    %c0_i32_0 = arith.constant 0 : i32
    %c0_i32_1 = arith.constant 0 : i32
    return %c0_i32, %c0_i32_0 : i32, i32
  }
}

</mosaic_0001>

<bundles_post_ra>
// kernel: tpu_custom_call.1
= control target key start
LH: loop header
LB: loop body
LE: loop exit
PB: predicated region body
PF: predicated region fallthrough
CT: control target
= control target key end

     0   :  { %20 = vsyncpa [#allocation3], 0  ;;  %s6529_s0 = inlined_call_operand.vmem [shape: f32[2,768], index: 0, kind: input, shape index: {}]   ;;  %s6530_s1 = inlined_call_operand.hbm [shape: bf16[768,512], index: 1, kind: input, shape index: {}]   ;;  %s6531_s2 = inlined_call_operand.vmem [shape: f32[1,512], index: 2, kind: input, shape index: {}]   ;;  %s6532_s3 = inlined_call_operand.vmem [shape: f32[512,2], index: 3, kind: input, shape index: {}]   ;;  %s6533_s4 = inlined_call_operand.vmem [shape: f32[1,2], index: 4, kind: input, shape index: {}]   ;;  %s6534_s5 = inlined_call_operand.vmem [shape: f32[512,8], index: 5, kind: input, shape index: {}]   ;;  %s6535_s6 = inlined_call_operand.vmem [shape: f32[8,512], index: 6, kind: input, shape index: {}]   ;;  %s6536_s7 = inlined_call_operand.vmem [shape: bf16[512,64], index: 7, kind: input, shape index: {}]   ;;  %s6537_s8 = inlined_call_operand.vmem [shape: bf16[64,256], index: 8, kind: input, shape index: {}]   ;;  %s6538_s9 = inlined_call_operand.vmem [shape: f32[1,768], index: 9, kind: input, shape index: {}]   ;;  %s6539_s10 = inlined_call_operand.hbm [shape: f32[2,2], index: 10, kind: output, shape index: {0}]   ;;  %s6540_s11 = inlined_call_operand.hbm [shape: f32[2,2], index: 11, kind: output, shape index: {1}]   ;;  %s6541_s12 = inlined_call_operand.hbm [shape: f32[2,256], index: 12, kind: output, shape index: {2}]   ;;  %s6542_s13 = inlined_call_operand.hbm [shape: f32[2,256], index: 13, kind: output, shape index: {3}]   ;;  %s6543_s14 = inlined_call_operand.hbm [shape: f32[2,768], index: 14, kind: output, shape index: {4}]  }
   0x1   :  { %21 = vsyncpa [#allocation4], 0 }
   0x2   :  { %22 = vsyncpa [#allocation7], 0 }
   0x3   :  { %23 = vsyncpa [#allocation10], 0  ;;  %s5539_s29 = smov [#allocation2]   ;;  %s5399_s17 = scalar_lea.hbm %s6530_s1, 24576 }
   0x4   :  { %s31_s30 = sshll.u32 %s5539_s29, 4  ;;  %p5400_p0 = scmp.ne.s32.totalorder %s6530_s1, %s5399_s17  ;;  %s32_s30 = int_to_ptr.vmem [resolvable:$true] %s31_s30 }
   0x5   :  { %p5403_p1 = scmp.lt.u32.totalorder %s5399_s17, %s6530_s1 }
   0x7   :  { %p5405_p2 = pnand %p5403_p1, %p5400_p0 }
   0x9   :  { %5408 = shalt.err (!%p5405_p2)
}
   0xa   :  { %s5409_s22 = scalar_lea.vmem %s32_s30, 24576  ;;  %p5414_p4 = scmp.lt.s32.totalorder %s32_s30, %s32_s30 }
   0xb   :  { %p5410_p3 = scmp.ne.s32.totalorder %s32_s30, %s5409_s22  ;;  %p5415_p5 = scmp.lt.s32.totalorder %s5409_s22, %s5409_s22 }
   0xd   :  { %p5416_p6 = por %p5415_p5, %p5414_p4 }
   0xf   :  { %p5417_p7 = pnand %p5416_p6, %p5410_p3 }
  0x11   :  { %5420 = shalt.err (!%p5417_p7)
}
  0x12   :  { %s5540_s23 = smov 256   ;;  %s5541_s24 = smov 16  }
  0x13   :  { %37 = dma.hbm_to_vmem [thread:$0]  %s6530_s1, 24576, %s32_s30, [#allocation3], %s5540_s23, %s5540_s23, %s5541_s24  }
  0x14   :  { %5531 = dma.done.wait [#allocation3], 24576  }
  0x15   :  { %5532 = vsyncadd [#allocation3], 4294942720  ;;  %v4893_v0 = vld [vmem:[#allocation2 + $0x4] ss:$16 sps:$4 sm:$0xff]   ;;  %v4895_v1 = vld [vmem:[#allocation2 + $0xc] ss:$16 sps:$4 sm:$0xff]   ;;  %v789_v36 = vlaneseq }
  0x16   :  { %3427 = vmatprep.subr.bf16.mxu0 %v4893_v0  ;;  %v4897_v2 = vld [vmem:[#allocation2] ss:$16 sps:$4 sm:$0xff]   ;;  %v4898_v3 = vld [vmem:[#allocation2 + $0x8] ss:$16 sps:$4 sm:$0xff]   ;;  %3619 = vmatprep.subr.bf16.mxu1 %v4895_v1  ;;  %v4899_v4 = vld [vmem:[#allocation2 + $0x24] ss:$16 sps:$4 sm:$0xff]  }
  0x17   :  { %3429 = vmatpush1.bf16.msra.mxu0 %v4897_v2  ;;  %3621 = vmatpush1.bf16.msra.mxu1 %v4898_v3  ;;  %v4901_v5 = vld [vmem:[#allocation2 + $0x2c] ss:$16 sps:$4 sm:$0xff]   ;;  %v4903_v6 = vld [vmem:[#allocation2 + $0x20] ss:$16 sps:$4 sm:$0xff]   ;;  %v4904_v7 = vld [vmem:[#allocation2 + $0x28] ss:$16 sps:$4 sm:$0xff]  }
  0x18   :  { %3431 = vmatprep.subr.bf16.mxu0 %v4899_v4  ;;  %3623 = vmatprep.subr.bf16.mxu1 %v4901_v5  ;;  %v4905_v8 = vld [vmem:[#allocation2 + $0x44] ss:$16 sps:$4 sm:$0xff]   ;;  %v4907_v9 = vld [vmem:[#allocation2 + $0x4c] ss:$16 sps:$4 sm:$0xff]   ;;  %v4909_v10 = vld [vmem:[#allocation2 + $0x40] ss:$16 sps:$4 sm:$0xff]  }
  0x19   :  { %v4910_v11 = vld [vmem:[#allocation2 + $0x48] ss:$16 sps:$4 sm:$0xff]   ;;  %v4911_v12 = vld [vmem:[#allocation2 + $0x64] ss:$16 sps:$4 sm:$0xff]   ;;  %v4913_v13 = vld [vmem:[#allocation2 + $0x6c] ss:$16 sps:$4 sm:$0xff]  }
  0x1a   :  { %v4915_v14 = vld [vmem:[#allocation2 + $0x60] ss:$16 sps:$4 sm:$0xff]   ;;  %v4916_v15 = vld [vmem:[#allocation2 + $0x68] ss:$16 sps:$4 sm:$0xff]   ;;  %v4917_v16 = vld [vmem:[#allocation2 + $0x84] ss:$16 sps:$4 sm:$0xff]  }
  0x1b   :  { %3433 = vmatpush1.bf16.msra.mxu0 %v4903_v6  ;;  %3625 = vmatpush1.bf16.msra.mxu1 %v4904_v7  ;;  %v4919_v17 = vld [vmem:[#allocation2 + $0x8c] ss:$16 sps:$4 sm:$0xff]   ;;  %v4921_v18 = vld [vmem:[#allocation2 + $0x80] ss:$16 sps:$4 sm:$0xff]   ;;  %v4922_v19 = vld [vmem:[#allocation2 + $0x88] ss:$16 sps:$4 sm:$0xff]  }
  0x1c   :  { %3435 = vmatprep.subr.bf16.mxu0 %v4905_v8  ;;  %3627 = vmatprep.subr.bf16.mxu1 %v4907_v9  ;;  %v4923_v20 = vld [vmem:[#allocation2 + $0xa4] ss:$16 sps:$4 sm:$0xff]   ;;  %v4925_v21 = vld [vmem:[#allocation2 + $0xac] ss:$16 sps:$4 sm:$0xff]   ;;  %v4927_v22 = vld [vmem:[#allocation2 + $0xa0] ss:$16 sps:$4 sm:$0xff]  }
  0x1d   :  { %v4928_v23 = vld [vmem:[#allocation2 + $0xa8] ss:$16 sps:$4 sm:$0xff]   ;;  %v4929_v24 = vld [vmem:[#allocation2 + $0xc4] ss:$16 sps:$4 sm:$0xff]   ;;  %v4931_v25 = vld [vmem:[#allocation2 + $0xcc] ss:$16 sps:$4 sm:$0xff]  }
  0x1e   :  { %v4933_v26 = vld [vmem:[#allocation2 + $0xc0] ss:$16 sps:$4 sm:$0xff]   ;;  %v4934_v27 = vld [vmem:[#allocation2 + $0xc8] ss:$16 sps:$4 sm:$0xff]   ;;  %v4935_v28 = vld [vmem:[#allocation2 + $0xe4] ss:$16 sps:$4 sm:$0xff]  }
  0x1f   :  { %3437 = vmatpush1.bf16.msra.mxu0 %v4909_v10  ;;  %3629 = vmatpush1.bf16.msra.mxu1 %v4910_v11  ;;  %v4937_v29 = vld [vmem:[#allocation2 + $0xec] ss:$16 sps:$4 sm:$0xff]   ;;  %v4939_v30 = vld [vmem:[#allocation2 + $0xe0] ss:$16 sps:$4 sm:$0xff]   ;;  %v4940_v31 = vld [vmem:[#allocation2 + $0xe8] ss:$16 sps:$4 sm:$0xff]  }
  0x20   :  { %3439 = vmatprep.subr.bf16.mxu0 %v4911_v12  ;;  %3631 = vmatprep.subr.bf16.mxu1 %v4913_v13  ;;  %v4941_v32 = vld [vmem:[#allocation2 + $0x104] ss:$16 sps:$4 sm:$0xff]   ;;  %v4943_v33 = vld [vmem:[#allocation2 + $0x10c] ss:$16 sps:$4 sm:$0xff]   ;;  %v4945_v34 = vld [vmem:[#allocation2 + $0x100] ss:$16 sps:$4 sm:$0xff]  }
  0x21   :  { %v4946_v35 = vld [vmem:[#allocation2 + $0x108] ss:$16 sps:$4 sm:$0xff]   ;;  %v5542_v37 = vmov 1983009808   ;;  %v4947_v39 = vld [vmem:[#allocation2 + $0x124] ss:$16 sps:$4 sm:$0xff]  }
  0x22   :  { %v813_v38 = vunpack.c.l.s4 %v5542_v37  ;;  %v4949_v40 = vld [vmem:[#allocation2 + $0x12c] ss:$16 sps:$4 sm:$0xff]   ;;  %v4951_v41 = vld [vmem:[#allocation2 + $0x120] ss:$16 sps:$4 sm:$0xff]   ;;  %v5637_v42 = vshrl.u32 %v789_v36, 7  ;;  %vm1483_vm4 = vcmask 9216  }
  0x23   :  { %3441 = vmatpush1.bf16.msra.mxu0 %v4915_v14  ;;  %3633 = vmatpush1.bf16.msra.mxu1 %v4916_v15  ;;  %v4952_v44 = vld [vmem:[#allocation2 + $0x128] ss:$16 sps:$4 sm:$0xff]   ;;  %v4953_v45 = vld [vmem:[#allocation2 + $0x144] ss:$16 sps:$4 sm:$0xff]   ;;  %v4955_v46 = vld [vmem:[#allocation2 + $0x14c] ss:$16 sps:$4 sm:$0xff]  }
  0x24   :  { %3443 = vmatprep.subr.bf16.mxu0 %v4917_v16  ;;  %3635 = vmatprep.subr.bf16.mxu1 %v4919_v17  ;;  %v814_v43 = vunpack.c.0.s8 %v813_v38  ;;  %v4957_v47 = vld [vmem:[#allocation2 + $0x140] ss:$16 sps:$4 sm:$0xff]   ;;  %v4958_v48 = vld [vmem:[#allocation2 + $0x148] ss:$16 sps:$4 sm:$0xff]   ;;  %v4959_v50 = vld [vmem:[#allocation2 + $0x164] ss:$16 sps:$4 sm:$0xff]  }
  0x25   :  { %v4961_v51 = vld [vmem:[#allocation2 + $0x16c] ss:$16 sps:$4 sm:$0xff]   ;;  %v785_v52 = vld [vmem:[%s6529_s0] sm:$0xff]  ;;  %v4964_v55 = vld [vmem:[#allocation2 + $0x168] ss:$16 sps:$4 sm:$0xff]   ;;  %vm1701_vm5 = vcmask 64512  }
  0x26   :  { %v5640_v49 = vsub.s32 %v814_v43, %v5637_v42  ;;  %v4963_v53 = vld [vmem:[#allocation2 + $0x160] ss:$16 sps:$4 sm:$0xff]   ;;  %v4965_v56 = vld [vmem:[#allocation2 + $0x184] ss:$16 sps:$4 sm:$0xff]   ;;  %v4967_v57 = vld [vmem:[#allocation2 + $0x18c] ss:$16 sps:$4 sm:$0xff]   ;;  %v811_v7 = vcombine.high %v785_v52, %v785_v52 }
  0x27   :  { %3445 = vmatpush1.bf16.msra.mxu0 %v4921_v18  ;;  %3637 = vmatpush1.bf16.msra.mxu1 %v4922_v19  ;;  %v4969_v59 = vld [vmem:[#allocation2 + $0x180] ss:$16 sps:$4 sm:$0xff]   ;;  %v4970_v60 = vld [vmem:[#allocation2 + $0x188] ss:$16 sps:$4 sm:$0xff]   ;;  %v4971_v61 = vld [vmem:[#allocation2 + $0x1a4] ss:$16 sps:$4 sm:$0xff]  }
  0x28   :  { %3447 = vmatprep.subr.bf16.mxu0 %v4923_v20  ;;  %3639 = vmatprep.subr.bf16.mxu1 %v4925_v21  ;;  %v818_v54 = vrot.slane %v785_v52, %v5640_v49  ;;  %v4973_v62 = vld [vmem:[#allocation2 + $0x1ac] ss:$16 sps:$4 sm:$0xff]   ;;  %v4975_v63 = vld [vmem:[#allocation2 + $0x1a0] ss:$16 sps:$4 sm:$0xff]   ;;  %v4976_v0 = vld [vmem:[#allocation2 + $0x1a8] ss:$16 sps:$4 sm:$0xff]   ;;  %v5647_v12 = vrot.slane %v811_v7, %v5640_v49 }
  0x29   :  { %v4977_v1 = vld [vmem:[#allocation2 + $0x1c4] ss:$16 sps:$4 sm:$0xff]   ;;  %v4979_v2 = vld [vmem:[#allocation2 + $0x1cc] ss:$16 sps:$4 sm:$0xff]   ;;  %v4981_v3 = vld [vmem:[#allocation2 + $0x1c0] ss:$16 sps:$4 sm:$0xff]  }
  0x2a   :  { %v826_v58 = vcombine.high %v818_v54, %v818_v54  ;;  %v4982_v4 = vld [vmem:[#allocation2 + $0x1c8] ss:$16 sps:$4 sm:$0xff]   ;;  %v4983_v5 = vld [vmem:[#allocation2 + $0x1e4] ss:$16 sps:$4 sm:$0xff]   ;;  %v4985_v6 = vld [vmem:[#allocation2 + $0x1ec] ss:$16 sps:$4 sm:$0xff]   ;;  %v827_v17 = vcombine.high %v5647_v12, %v5647_v12 }
  0x2b   :  { %3449 = vmatpush1.bf16.msra.mxu0 %v4927_v22  ;;  %3641 = vmatpush1.bf16.msra.mxu1 %v4928_v23  ;;  %v4987_v8 = vld [vmem:[#allocation2 + $0x1e0] ss:$16 sps:$4 sm:$0xff]   ;;  %v4988_v9 = vld [vmem:[#allocation2 + $0x1e8] ss:$16 sps:$4 sm:$0xff]   ;;  %v4989_v10 = vld [vmem:[#allocation2 + $0x204] ss:$16 sps:$4 sm:$0xff]  }
  0x2c   :  { %3451 = vmatprep.subr.bf16.mxu0 %v4929_v24  ;;  %3643 = vmatprep.subr.bf16.mxu1 %v4931_v25  ;;  %v4992_v11 = vld [vmem:[#allocation2 + $0x20c] ss:$16 sps:$4 sm:$0xff]   ;;  %v4991_v13 = vld [vmem:[#allocation2 + $0x200] ss:$16 sps:$4 sm:$0xff]   ;;  %v4994_v14 = vld [vmem:[#allocation2 + $0x208] ss:$16 sps:$4 sm:$0xff]  }
  0x2d   :  { %906 = vmatprep.mubr.f32.mxu0 %v826_v58  ;;  %1119 = vmatprep.mubr.f32.mxu1 %v826_v58  ;;  %v4995_v15 = vld [vmem:[#allocation2 + $0x224] ss:$16 sps:$4 sm:$0xff]   ;;  %v4998_v16 = vld [vmem:[#allocation2 + $0x22c] ss:$16 sps:$4 sm:$0xff]   ;;  %v4997_v18 = vld [vmem:[#allocation2 + $0x220] ss:$16 sps:$4 sm:$0xff]  }
  0x2e   :  { %v5000_v19 = vld [vmem:[#allocation2 + $0x228] ss:$16 sps:$4 sm:$0xff]   ;;  %v5001_v20 = vld [vmem:[#allocation2 + $0x244] ss:$16 sps:$4 sm:$0xff]   ;;  %v5004_v21 = vld [vmem:[#allocation2 + $0x24c] ss:$16 sps:$4 sm:$0xff]  }
  0x2f   :  { %3453 = vmatpush1.bf16.msra.mxu0 %v4933_v26  ;;  %3645 = vmatpush1.bf16.msra.mxu1 %v4934_v27  ;;  %v5003_v22 = vld [vmem:[#allocation2 + $0x240] ss:$16 sps:$4 sm:$0xff]   ;;  %v5006_v23 = vld [vmem:[#allocation2 + $0x248] ss:$16 sps:$4 sm:$0xff]   ;;  %v5007_v24 = vld [vmem:[#allocation2 + $0x264] ss:$16 sps:$4 sm:$0xff]  }
  0x30   :  { %3455 = vmatprep.subr.bf16.mxu0 %v4935_v28  ;;  %3647 = vmatprep.subr.bf16.mxu1 %v4937_v29  ;;  %v5010_v25 = vld [vmem:[#allocation2 + $0x26c] ss:$16 sps:$4 sm:$0xff]   ;;  %v5009_v26 = vld [vmem:[#allocation2 + $0x260] ss:$16 sps:$4 sm:$0xff]   ;;  %v5012_v27 = vld [vmem:[#allocation2 + $0x268] ss:$16 sps:$4 sm:$0xff]  }
  0x31   :  { %v5013_v28 = vld [vmem:[#allocation2 + $0x284] ss:$16 sps:$4 sm:$0xff]   ;;  %v5016_v29 = vld [vmem:[#allocation2 + $0x28c] ss:$16 sps:$4 sm:$0xff]   ;;  %v5027_v38 = vld [vmem:[#allocation2 + $0x2c0] ss:$16 sps:$4 sm:$0xff]  }
  0x32   :  { %v5025_v36 = vld [vmem:[#allocation2 + $0x2c4] ss:$16 sps:$4 sm:$0xff]   ;;  %v5028_v37 = vld [vmem:[#allocation2 + $0x2cc] ss:$16 sps:$4 sm:$0xff]   ;;  %v5033_v43 = vld [vmem:[#allocation2 + $0x2e0] ss:$16 sps:$4 sm:$0xff]  }
  0x33   :  { %3457 = vmatpush1.bf16.msra.mxu0 %v4939_v30  ;;  %3649 = vmatpush1.bf16.msra.mxu1 %v4940_v31  ;;  %v5015_v30 = vld [vmem:[#allocation2 + $0x280] ss:$16 sps:$4 sm:$0xff]   ;;  %v5018_v31 = vld [vmem:[#allocation2 + $0x288] ss:$16 sps:$4 sm:$0xff]   ;;  %v5055_v58 = vld [vmem:[#allocation2 + $0x364] ss:$16 sps:$4 sm:$0xff]  }
  0x34   :  { %3459 = vmatprep.subr.bf16.mxu0 %v4941_v32  ;;  %3651 = vmatprep.subr.bf16.mxu1 %v4943_v33  ;;  %v5019_v32 = vld [vmem:[#allocation2 + $0x2a4] ss:$16 sps:$4 sm:$0xff]   ;;  %v5022_v33 = vld [vmem:[#allocation2 + $0x2ac] ss:$16 sps:$4 sm:$0xff]   ;;  %v5045_v52 = vld [vmem:[#allocation2 + $0x320] ss:$16 sps:$4 sm:$0xff]  }
  0x35   :  { %v5076_v7 = vld [vmem:[#allocation2 + $0x3cc] ss:$16 sps:$4 sm:$0xff]   ;;  %vm1992_vm6 = vcmask 523264   ;;  %vm2067_vm7 = vcmask 1041408  }
  0x37   :  { %3461 = vmatpush1.bf16.msra.mxu0 %v4945_v34  ;;  %3653 = vmatpush1.bf16.msra.mxu1 %v4946_v35  ;;  %v5021_v34 = vld [vmem:[#allocation2 + $0x2a0] ss:$16 sps:$4 sm:$0xff]   ;;  %v5024_v35 = vld [vmem:[#allocation2 + $0x2a8] ss:$16 sps:$4 sm:$0xff]  }
  0x38   :  { %3463 = vmatprep.subr.bf16.mxu0 %v4947_v39  ;;  %3655 = vmatprep.subr.bf16.mxu1 %v4949_v40  ;;  %v5030_v39 = vld [vmem:[#allocation2 + $0x2c8] ss:$16 sps:$4 sm:$0xff]   ;;  %v5031_v40 = vld [vmem:[#allocation2 + $0x2e4] ss:$16 sps:$4 sm:$0xff]  }
  0x3b   :  { %3465 = vmatpush1.bf16.msra.mxu0 %v4951_v41  ;;  %3657 = vmatpush1.bf16.msra.mxu1 %v4952_v44  ;;  %v5034_v41 = vld [vmem:[#allocation2 + $0x2ec] ss:$16 sps:$4 sm:$0xff]   ;;  %v5036_v44 = vld [vmem:[#allocation2 + $0x2e8] ss:$16 sps:$4 sm:$0xff]  }
  0x3c   :  { %3467 = vmatprep.subr.bf16.mxu0 %v4953_v45  ;;  %3659 = vmatprep.subr.bf16.mxu1 %v4955_v46  ;;  %v5037_v45 = vld [vmem:[#allocation2 + $0x304] ss:$16 sps:$4 sm:$0xff]   ;;  %v5040_v46 = vld [vmem:[#allocation2 + $0x30c] ss:$16 sps:$4 sm:$0xff]  }
  0x3f   :  { %3469 = vmatpush1.bf16.msra.mxu0 %v4957_v47  ;;  %3661 = vmatpush1.bf16.msra.mxu1 %v4958_v48  ;;  %v5039_v47 = vld [vmem:[#allocation2 + $0x300] ss:$16 sps:$4 sm:$0xff]   ;;  %v5042_v48 = vld [vmem:[#allocation2 + $0x308] ss:$16 sps:$4 sm:$0xff]  }
  0x40   :  { %3471 = vmatprep.subr.bf16.mxu0 %v4959_v50  ;;  %3663 = vmatprep.subr.bf16.mxu1 %v4961_v51  ;;  %v5043_v50 = vld [vmem:[#allocation2 + $0x324] ss:$16 sps:$4 sm:$0xff]   ;;  %v5046_v51 = vld [vmem:[#allocation2 + $0x32c] ss:$16 sps:$4 sm:$0xff]  }
  0x43   :  { %3473 = vmatpush1.bf16.msra.mxu0 %v4963_v53  ;;  %3665 = vmatpush1.bf16.msra.mxu1 %v4964_v55  ;;  %v5048_v53 = vld [vmem:[#allocation2 + $0x328] ss:$16 sps:$4 sm:$0xff]   ;;  %v5052_v55 = vld [vmem:[#allocation2 + $0x34c] ss:$16 sps:$4 sm:$0xff]  }
  0x44   :  { %3475 = vmatprep.subr.bf16.mxu0 %v4965_v56  ;;  %3667 = vmatprep.subr.bf16.mxu1 %v4967_v57  ;;  %v5051_v56 = vld [vmem:[#allocation2 + $0x340] ss:$16 sps:$4 sm:$0xff]   ;;  %v5054_v57 = vld [vmem:[#allocation2 + $0x348] ss:$16 sps:$4 sm:$0xff]  }
  0x47   :  { %3477 = vmatpush1.bf16.msra.mxu0 %v4969_v59  ;;  %3669 = vmatpush1.bf16.msra.mxu1 %v4970_v60  ;;  %v5058_v59 = vld [vmem:[#allocation2 + $0x36c] ss:$16 sps:$4 sm:$0xff]   ;;  %v5057_v60 = vld [vmem:[#allocation2 + $0x360] ss:$16 sps:$4 sm:$0xff]  }
  0x48   :  { %3479 = vmatprep.subr.bf16.mxu0 %v4971_v61  ;;  %3671 = vmatprep.subr.bf16.mxu1 %v4973_v62  ;;  %v5060_v61 = vld [vmem:[#allocation2 + $0x368] ss:$16 sps:$4 sm:$0xff]   ;;  %v5061_v62 = vld [vmem:[#allocation2 + $0x384] ss:$16 sps:$4 sm:$0xff]  }
  0x4b   :  { %3481 = vmatpush1.bf16.msra.mxu0 %v4975_v63  ;;  %3673 = vmatpush1.bf16.msra.mxu1 %v4976_v0  ;;  %v5064_v63 = vld [vmem:[#allocation2 + $0x38c] ss:$16 sps:$4 sm:$0xff]   ;;  %v5063_v0 = vld [vmem:[#allocation2 + $0x380] ss:$16 sps:$4 sm:$0xff]  }
  0x4c   :  { %3483 = vmatprep.subr.bf16.mxu0 %v4977_v1  ;;  %3675 = vmatprep.subr.bf16.mxu1 %v4979_v2  ;;  %v5066_v1 = vld [vmem:[#allocation2 + $0x388] ss:$16 sps:$4 sm:$0xff]   ;;  %v5067_v2 = vld [vmem:[#allocation2 + $0x3a4] ss:$16 sps:$4 sm:$0xff]  }
  0x4f   :  { %3485 = vmatpush1.bf16.msra.mxu0 %v4981_v3  ;;  %3677 = vmatpush1.bf16.msra.mxu1 %v4982_v4  ;;  %v5070_v3 = vld [vmem:[#allocation2 + $0x3ac] ss:$16 sps:$4 sm:$0xff]   ;;  %v5069_v4 = vld [vmem:[#allocation2 + $0x3a0] ss:$16 sps:$4 sm:$0xff]  }
  0x50   :  { %3487 = vmatprep.subr.bf16.mxu0 %v4983_v5  ;;  %3679 = vmatprep.subr.bf16.mxu1 %v4985_v6  ;;  %v5072_v5 = vld [vmem:[#allocation2 + $0x3a8] ss:$16 sps:$4 sm:$0xff]   ;;  %v5073_v6 = vld [vmem:[#allocation2 + $0x3c4] ss:$16 sps:$4 sm:$0xff]  }
  0x53   :  { %3489 = vmatpush1.bf16.msra.mxu0 %v4987_v8  ;;  %3681 = vmatpush1.bf16.msra.mxu1 %v4988_v9  ;;  %v5075_v8 = vld [vmem:[#allocation2 + $0x3c0] ss:$16 sps:$4 sm:$0xff]   ;;  %v5078_v9 = vld [vmem:[#allocation2 + $0x3c8] ss:$16 sps:$4 sm:$0xff]  }
  0x54   :  { %3491 = vmatprep.subr.bf16.mxu0 %v4989_v10  ;;  %3683 = vmatprep.subr.bf16.mxu1 %v4992_v11  ;;  %v5079_v10 = vld [vmem:[#allocation2 + $0x3e4] ss:$16 sps:$4 sm:$0xff]   ;;  %v5082_v11 = vld [vmem:[#allocation2 + $0x3ec] ss:$16 sps:$4 sm:$0xff]  }
  0x56   :  { %907 = vmatmul.mubr.f32.vlgmr.msra.gmra.mrb[0].mxu0 %v818_v54  ;;  %1120 = vmatmul.mubr.f32.vlgmr.msra.gmra.mrb[0].mxu1 %v818_v54  ;;  %v5049_v54 = vld [vmem:[#allocation2 + $0x344] ss:$16 sps:$4 sm:$0xff]  }
  0x57   :  { %3493 = vmatpush1.bf16.msra.mxu0 %v4991_v13  ;;  %3685 = vmatpush1.bf16.msra.mxu1 %v4994_v14  ;;  %v5081_v13 = vld [vmem:[#allocation2 + $0x3e0] ss:$16 sps:$4 sm:$0xff]   ;;  %v5084_v14 = vld [vmem:[#allocation2 + $0x3e8] ss:$16 sps:$4 sm:$0xff]  }
  0x58   :  { %3495 = vmatprep.subr.bf16.mxu0 %v4995_v15  ;;  %3687 = vmatprep.subr.bf16.mxu1 %v4998_v16  ;;  %v5086_v15 = vld [vmem:[#allocation2 + $0x404] ss:$16 sps:$4 sm:$0xff]   ;;  %v5089_v16 = vld [vmem:[#allocation2 + $0x40c] ss:$16 sps:$4 sm:$0xff]  }
  0x59   :  { %977 = vmatprep.mubr.f32.mxu0 %v827_v17  ;;  %1190 = vmatprep.mubr.f32.mxu1 %v827_v17  ;;  %v5088_v17 = vld [vmem:[#allocation2 + $0x400] ss:$16 sps:$4 sm:$0xff]  }
  0x5b   :  { %3497 = vmatpush1.bf16.msra.mxu0 %v4997_v18  ;;  %3689 = vmatpush1.bf16.msra.mxu1 %v5000_v19  ;;  %v5091_v18 = vld [vmem:[#allocation2 + $0x408] ss:$16 sps:$4 sm:$0xff]  }
  0x5c   :  { %3499 = vmatprep.subr.bf16.mxu0 %v5001_v20  ;;  %3691 = vmatprep.subr.bf16.mxu1 %v5004_v21  ;;  %v5654_v19 = vld.sshfl [vmem:[%s6529_s0 + $0x8] sm:$0x33 pattern:$0x76325410]  ;;  %v5092_v20 = vld [vmem:[#allocation2 + $0x424] ss:$16 sps:$4 sm:$0xff]  }
  0x5d   :  { %v5095_v21 = vld [vmem:[#allocation2 + $0x42c] ss:$16 sps:$4 sm:$0xff]  }
  0x5f   :  { %3501 = vmatpush1.bf16.msra.mxu0 %v5003_v22  ;;  %3693 = vmatpush1.bf16.msra.mxu1 %v5006_v23  ;;  %v835_v22 = vcombine.high %v5654_v19, %v5654_v19  ;;  %v5094_v23 = vld [vmem:[#allocation2 + $0x420] ss:$16 sps:$4 sm:$0xff]  }
  0x60   :  { %3503 = vmatprep.subr.bf16.mxu0 %v5007_v24  ;;  %3695 = vmatprep.subr.bf16.mxu1 %v5010_v25  ;;  %v5097_v24 = vld [vmem:[#allocation2 + $0x428] ss:$16 sps:$4 sm:$0xff]   ;;  %v5098_v25 = vld [vmem:[#allocation2 + $0x444] ss:$16 sps:$4 sm:$0xff]  }
  0x63   :  { %3505 = vmatpush1.bf16.msra.mxu0 %v5009_v26  ;;  %3697 = vmatpush1.bf16.msra.mxu1 %v5012_v27  ;;  %v5101_v26 = vld [vmem:[#allocation2 + $0x44c] ss:$16 sps:$4 sm:$0xff]   ;;  %v5100_v27 = vld [vmem:[#allocation2 + $0x440] ss:$16 sps:$4 sm:$0xff]  }
  0x64   :  { %3507 = vmatprep.subr.bf16.mxu0 %v5013_v28  ;;  %3699 = vmatprep.subr.bf16.mxu1 %v5016_v29  ;;  %v5103_v28 = vld [vmem:[#allocation2 + $0x448] ss:$16 sps:$4 sm:$0xff]   ;;  %v5107_v29 = vld [vmem:[#allocation2 + $0x46c] ss:$16 sps:$4 sm:$0xff]  }
  0x67   :  { %3509 = vmatpush1.bf16.msra.mxu0 %v5015_v30  ;;  %3701 = vmatpush1.bf16.msra.mxu1 %v5018_v31  ;;  %v5106_v30 = vld [vmem:[#allocation2 + $0x460] ss:$16 sps:$4 sm:$0xff]   ;;  %v5109_v31 = vld [vmem:[#allocation2 + $0x468] ss:$16 sps:$4 sm:$0xff]  }
  0x68   :  { %3511 = vmatprep.subr.bf16.mxu0 %v5019_v32  ;;  %3703 = vmatprep.subr.bf16.mxu1 %v5022_v33  ;;  %v5110_v32 = vld [vmem:[#allocation2 + $0x484] ss:$16 sps:$4 sm:$0xff]   ;;  %v5113_v33 = vld [vmem:[#allocation2 + $0x48c] ss:$16 sps:$4 sm:$0xff]  }
  0x6b   :  { %3513 = vmatpush1.bf16.msra.mxu0 %v5021_v34  ;;  %3705 = vmatpush1.bf16.msra.mxu1 %v5024_v35  ;;  %v5112_v34 = vld [vmem:[#allocation2 + $0x480] ss:$16 sps:$4 sm:$0xff]   ;;  %v5115_v35 = vld [vmem:[#allocation2 + $0x488] ss:$16 sps:$4 sm:$0xff]  }
  0x6c   :  { %3515 = vmatprep.subr.bf16.mxu0 %v5025_v36  ;;  %3707 = vmatprep.subr.bf16.mxu1 %v5028_v37  ;;  %v5116_v36 = vld [vmem:[#allocation2 + $0x4a4] ss:$16 sps:$4 sm:$0xff]   ;;  %v5119_v37 = vld [vmem:[#allocation2 + $0x4ac] ss:$16 sps:$4 sm:$0xff]  }
  0x6f   :  { %3517 = vmatpush1.bf16.msra.mxu0 %v5027_v38  ;;  %3709 = vmatpush1.bf16.msra.mxu1 %v5030_v39  ;;  %v5118_v38 = vld [vmem:[#allocation2 + $0x4a0] ss:$16 sps:$4 sm:$0xff]   ;;  %v5121_v39 = vld [vmem:[#allocation2 + $0x4a8] ss:$16 sps:$4 sm:$0xff]  }
  0x70   :  { %3519 = vmatprep.subr.bf16.mxu0 %v5031_v40  ;;  %3711 = vmatprep.subr.bf16.mxu1 %v5034_v41  ;;  %v5122_v40 = vld [vmem:[#allocation2 + $0x4c4] ss:$16 sps:$4 sm:$0xff]   ;;  %v5125_v41 = vld [vmem:[#allocation2 + $0x4cc] ss:$16 sps:$4 sm:$0xff]  }
  0x73   :  { %3521 = vmatpush1.bf16.msra.mxu0 %v5033_v43  ;;  %3713 = vmatpush1.bf16.msra.mxu1 %v5036_v44  ;;  %v5124_v43 = vld [vmem:[#allocation2 + $0x4c0] ss:$16 sps:$4 sm:$0xff]   ;;  %v5127_v44 = vld [vmem:[#allocation2 + $0x4c8] ss:$16 sps:$4 sm:$0xff]  }
  0x74   :  { %3523 = vmatprep.subr.bf16.mxu0 %v5037_v45  ;;  %3715 = vmatprep.subr.bf16.mxu1 %v5040_v46  ;;  %v5128_v45 = vld [vmem:[#allocation2 + $0x4e4] ss:$16 sps:$4 sm:$0xff]   ;;  %v5131_v46 = vld [vmem:[#allocation2 + $0x4ec] ss:$16 sps:$4 sm:$0xff]  }
  0x77   :  { %3525 = vmatpush1.bf16.msra.mxu0 %v5039_v47  ;;  %3717 = vmatpush1.bf16.msra.mxu1 %v5042_v48  ;;  %v5130_v47 = vld [vmem:[#allocation2 + $0x4e0] ss:$16 sps:$4 sm:$0xff]   ;;  %v5133_v48 = vld [vmem:[#allocation2 + $0x4e8] ss:$16 sps:$4 sm:$0xff]  }
  0x78   :  { %3527 = vmatprep.subr.bf16.mxu0 %v5043_v50  ;;  %3719 = vmatprep.subr.bf16.mxu1 %v5046_v51  ;;  %v5134_v50 = vld [vmem:[#allocation2 + $0x504] ss:$16 sps:$4 sm:$0xff]   ;;  %v5137_v51 = vld [vmem:[#allocation2 + $0x50c] ss:$16 sps:$4 sm:$0xff]  }
  0x7b   :  { %3529 = vmatpush1.bf16.msra.mxu0 %v5045_v52  ;;  %3721 = vmatpush1.bf16.msra.mxu1 %v5048_v53  ;;  %v5136_v52 = vld [vmem:[#allocation2 + $0x500] ss:$16 sps:$4 sm:$0xff]   ;;  %v5139_v53 = vld [vmem:[#allocation2 + $0x508] ss:$16 sps:$4 sm:$0xff]  }
  0x7c   :  { %3531 = vmatprep.subr.bf16.mxu0 %v5049_v54  ;;  %3723 = vmatprep.subr.bf16.mxu1 %v5052_v55  ;;  %v5140_v54 = vld [vmem:[#allocation2 + $0x524] ss:$16 sps:$4 sm:$0xff]   ;;  %v5143_v55 = vld [vmem:[#allocation2 + $0x52c] ss:$16 sps:$4 sm:$0xff]  }
  0x7f   :  { %3533 = vmatpush1.bf16.msra.mxu0 %v5051_v56  ;;  %3725 = vmatpush1.bf16.msra.mxu1 %v5054_v57  ;;  %v5142_v56 = vld [vmem:[#allocation2 + $0x520] ss:$16 sps:$4 sm:$0xff]   ;;  %v5145_v57 = vld [vmem:[#allocation2 + $0x528] ss:$16 sps:$4 sm:$0xff]  }
  0x80   :  { %3535 = vmatprep.subr.bf16.mxu0 %v5055_v58  ;;  %3727 = vmatprep.subr.bf16.mxu1 %v5058_v59  ;;  %v5146_v58 = vld [vmem:[#allocation2 + $0x544] ss:$16 sps:$4 sm:$0xff]   ;;  %v5149_v59 = vld [vmem:[#allocation2 + $0x54c] ss:$16 sps:$4 sm:$0xff]  }
  0x83   :  { %3537 = vmatpush1.bf16.msra.mxu0 %v5057_v60  ;;  %3729 = vmatpush1.bf16.msra.mxu1 %v5060_v61  ;;  %v5148_v60 = vld [vmem:[#allocation2 + $0x540] ss:$16 sps:$4 sm:$0xff]   ;;  %v5151_v61 = vld [vmem:[#allocation2 + $0x548] ss:$16 sps:$4 sm:$0xff]  }
  0x84   :  { %3539 = vmatprep.subr.bf16.mxu0 %v5061_v62  ;;  %3731 = vmatprep.subr.bf16.mxu1 %v5064_v63  ;;  %v5152_v62 = vld [vmem:[#allocation2 + $0x564] ss:$16 sps:$4 sm:$0xff]   ;;  %v5155_v63 = vld [vmem:[#allocation2 + $0x56c] ss:$16 sps:$4 sm:$0xff]  }
  0x87   :  { %3541 = vmatpush1.bf16.msra.mxu0 %v5063_v0  ;;  %3733 = vmatpush1.bf16.msra.mxu1 %v5066_v1  ;;  %v5154_v0 = vld [vmem:[#allocation2 + $0x560] ss:$16 sps:$4 sm:$0xff]   ;;  %v5157_v1 = vld [vmem:[#allocation2 + $0x568] ss:$16 sps:$4 sm:$0xff]  }
  0x88   :  { %3543 = vmatprep.subr.bf16.mxu0 %v5067_v2  ;;  %3735 = vmatprep.subr.bf16.mxu1 %v5070_v3  ;;  %v5158_v2 = vld [vmem:[#allocation2 + $0x584] ss:$16 sps:$4 sm:$0xff]   ;;  %v5161_v3 = vld [vmem:[#allocation2 + $0x58c] ss:$16 sps:$4 sm:$0xff]  }
  0x8b   :  { %3545 = vmatpush1.bf16.msra.mxu0 %v5069_v4  ;;  %3737 = vmatpush1.bf16.msra.mxu1 %v5072_v5  ;;  %v5160_v4 = vld [vmem:[#allocation2 + $0x580] ss:$16 sps:$4 sm:$0xff]   ;;  %v5163_v5 = vld [vmem:[#allocation2 + $0x588] ss:$16 sps:$4 sm:$0xff]  }
  0x8c   :  { %3547 = vmatprep.subr.bf16.mxu0 %v5073_v6  ;;  %3739 = vmatprep.subr.bf16.mxu1 %v5076_v7  ;;  %v5164_v6 = vld [vmem:[#allocation2 + $0x5a4] ss:$16 sps:$4 sm:$0xff]   ;;  %v5167_v7 = vld [vmem:[#allocation2 + $0x5ac] ss:$16 sps:$4 sm:$0xff]  }
  0x8f   :  { %3549 = vmatpush1.bf16.msra.mxu0 %v5075_v8  ;;  %3741 = vmatpush1.bf16.msra.mxu1 %v5078_v9  ;;  %v5166_v8 = vld [vmem:[#allocation2 + $0x5a0] ss:$16 sps:$4 sm:$0xff]   ;;  %v5169_v9 = vld [vmem:[#allocation2 + $0x5a8] ss:$16 sps:$4 sm:$0xff]  }
  0x90   :  { %3551 = vmatprep.subr.bf16.mxu0 %v5079_v10  ;;  %3743 = vmatprep.subr.bf16.mxu1 %v5082_v11  ;;  %v5170_v10 = vld [vmem:[#allocation2 + $0x5c4] ss:$16 sps:$4 sm:$0xff]   ;;  %v5173_v11 = vld [vmem:[#allocation2 + $0x5cc] ss:$16 sps:$4 sm:$0xff]  }
  0x93   :  { %3553 = vmatpush1.bf16.msra.mxu0 %v5081_v13  ;;  %3745 = vmatpush1.bf16.msra.mxu1 %v5084_v14  ;;  %v5172_v13 = vld [vmem:[#allocation2 + $0x5c0] ss:$16 sps:$4 sm:$0xff]   ;;  %v5175_v14 = vld [vmem:[#allocation2 + $0x5c8] ss:$16 sps:$4 sm:$0xff]  }
  0x94   :  { %3555 = vmatprep.subr.bf16.mxu0 %v5086_v15  ;;  %3747 = vmatprep.subr.bf16.mxu1 %v5089_v16  ;;  %v5176_v15 = vld [vmem:[#allocation2 + $0x5e4] ss:$16 sps:$4 sm:$0xff]   ;;  %v5179_v16 = vld [vmem:[#allocation2 + $0x5ec] ss:$16 sps:$4 sm:$0xff]  }
  0x96   :  { %978 = vmatmul.mubr.f32.vlgmr.msra.gmra.mrb[0].mxu0 %v5647_v12  ;;  %1191 = vmatmul.mubr.f32.vlgmr.msra.gmra.mrb[0].mxu1 %v5647_v12  ;;  %v5104_v12 = vld [vmem:[#allocation2 + $0x464] ss:$16 sps:$4 sm:$0xff]  }
  0x97   :  { %3557 = vmatpush1.bf16.msra.mxu0 %v5088_v17  ;;  %3749 = vmatpush1.bf16.msra.mxu1 %v5091_v18  ;;  %v1288_v17 = vld [vmem:[%s6532_s3 + $0x80] sm:$0xff]  ;;  %v1289_v18 = vld [vmem:[%s6532_s3 + $0x88] sm:$0xff] }
  0x98   :  { %3559 = vmatprep.subr.bf16.mxu0 %v5092_v20  ;;  %3751 = vmatprep.subr.bf16.mxu1 %v5095_v21  ;;  %v1320_v20 = vld [vmem:[%s6532_s3 + $0x180] sm:$0xff]  ;;  %v1321_v21 = vld [vmem:[%s6532_s3 + $0x188] sm:$0xff] }
  0x99   :  { %1048 = vmatprep.mubr.f32.mxu0 %v835_v22  ;;  %1261 = vmatprep.mubr.f32.mxu1 %v835_v22  ;;  %v5178_v22 = vld [vmem:[#allocation2 + $0x5e0] ss:$16 sps:$4 sm:$0xff]  }
  0x9b   :  { %3561 = vmatpush1.bf16.msra.mxu0 %v5094_v23  ;;  %3753 = vmatpush1.bf16.msra.mxu1 %v5097_v24  ;;  %v5181_v23 = vld [vmem:[#allocation2 + $0x5e8] ss:$16 sps:$4 sm:$0xff]   ;;  %v1272_v24 = vld [vmem:[%s6532_s3] sm:$0xff] }
  0x9c   :  { %3563 = vmatprep.subr.bf16.mxu0 %v5098_v25  ;;  %3755 = vmatprep.subr.bf16.mxu1 %v5101_v26  ;;  %v1273_v25 = vld [vmem:[%s6532_s3 + $0x8] sm:$0xff]  ;;  %v3810_v26 = vpack.c.bf16 %v1289_v18, %v1288_v17  ;;  %v1330_v17 = vld [vmem:[%s6532_s3 + $0x1d0] sm:$0xff]  ;;  %v1331_v18 = vld [vmem:[%s6532_s3 + $0x1d8] sm:$0xff] }
  0x9f   :  { %3565 = vmatpush1.bf16.msra.mxu0 %v5100_v27  ;;  %3757 = vmatpush1.bf16.msra.mxu1 %v5103_v28  ;;  %v3842_v27 = vpack.c.bf16 %v1321_v21, %v1320_v20  ;;  %v1304_v28 = vld [vmem:[%s6532_s3 + $0x100] sm:$0xff] }
  0xa0   :  { %3567 = vmatprep.subr.bf16.mxu0 %v5104_v12  ;;  %3759 = vmatprep.subr.bf16.mxu1 %v5107_v29  ;;  %v1305_v12 = vld [vmem:[%s6532_s3 + $0x108] sm:$0xff]  ;;  %v1290_v29 = vld [vmem:[%s6532_s3 + $0x90] sm:$0xff] }
  0xa3   :  { %3569 = vmatpush1.bf16.msra.mxu0 %v5106_v30  ;;  %3761 = vmatpush1.bf16.msra.mxu1 %v5109_v31  ;;  %v1291_v30 = vld [vmem:[%s6532_s3 + $0x98] sm:$0xff]  ;;  %v1322_v31 = vld [vmem:[%s6532_s3 + $0x190] sm:$0xff] }
  0xa4   :  { %3571 = vmatprep.subr.bf16.mxu0 %v5110_v32  ;;  %3763 = vmatprep.subr.bf16.mxu1 %v5113_v33  ;;  %v1323_v32 = vld [vmem:[%s6532_s3 + $0x198] sm:$0xff]  ;;  %v3812_v33 = vpack.c.bf16 %v1273_v25, %v1272_v24  ;;  %v3862_v25 = vpack.c.bf16 %v1331_v18, %v1330_v17  ;;  %v1511_v18 = vld [vmem:[%s6534_s5 + $0x90] sm:$0xff] }
  0xa7   :  { %3573 = vmatpush1.bf16.msra.mxu0 %v5112_v34  ;;  %3765 = vmatpush1.bf16.msra.mxu1 %v5115_v35  ;;  %v3844_v34 = vpack.c.bf16 %v1305_v12, %v1304_v28  ;;  %v1274_v35 = vld [vmem:[%s6532_s3 + $0x10] sm:$0xff]  ;;  %v1300_v28 = vld [vmem:[%s6532_s3 + $0xe0] sm:$0xff]  ;;  %v1301_v12 = vld [vmem:[%s6532_s3 + $0xe8] sm:$0xff] }
  0xa8   :  { %3575 = vmatprep.subr.bf16.mxu0 %v5116_v36  ;;  %3767 = vmatprep.subr.bf16.mxu1 %v5119_v37  ;;  %v1275_v36 = vld [vmem:[%s6532_s3 + $0x18] sm:$0xff]  ;;  %v3814_v37 = vpack.c.bf16 %v1291_v30, %v1290_v29  ;;  %v1332_v29 = vld [vmem:[%s6532_s3 + $0x1e0] sm:$0xff]  ;;  %v1333_v30 = vld [vmem:[%s6532_s3 + $0x1e8] sm:$0xff] }
  0xab   :  { %3577 = vmatpush1.bf16.msra.mxu0 %v5118_v38  ;;  %3769 = vmatpush1.bf16.msra.mxu1 %v5121_v39  ;;  %v3846_v38 = vpack.c.bf16 %v1323_v32, %v1322_v31  ;;  %v1306_v39 = vld [vmem:[%s6532_s3 + $0x110] sm:$0xff] }
  0xac   :  { %3579 = vmatprep.subr.bf16.mxu0 %v5122_v40  ;;  %3771 = vmatprep.subr.bf16.mxu1 %v5125_v41  ;;  %v1307_v40 = vld [vmem:[%s6532_s3 + $0x118] sm:$0xff]  ;;  %v1292_v41 = vld [vmem:[%s6532_s3 + $0xa0] sm:$0xff] }
  0xaf   :  { %3581 = vmatpush1.bf16.msra.mxu0 %v5124_v43  ;;  %3773 = vmatpush1.bf16.msra.mxu1 %v5127_v44  ;;  %v1293_v43 = vld [vmem:[%s6532_s3 + $0xa8] sm:$0xff]  ;;  %v1324_v44 = vld [vmem:[%s6532_s3 + $0x1a0] sm:$0xff] }
  0xb0   :  { %3583 = vmatprep.subr.bf16.mxu0 %v5128_v45  ;;  %3775 = vmatprep.subr.bf16.mxu1 %v5131_v46  ;;  %v1325_v45 = vld [vmem:[%s6532_s3 + $0x1a8] sm:$0xff]  ;;  %v3816_v46 = vpack.c.bf16 %v1275_v36, %v1274_v35  ;;  %v3866_v35 = vpack.c.bf16 %v1333_v30, %v1332_v29  ;;  %v1527_v30 = vld [vmem:[%s6534_s5 + $0x110] sm:$0xff] }
  0xb1   :  { %v1285_v36 = vld [vmem:[%s6532_s3 + $0x68] sm:$0xff] }
  0xb3   :  { %3585 = vmatpush1.bf16.msra.mxu0 %v5130_v47  ;;  %3777 = vmatpush1.bf16.msra.mxu1 %v5133_v48  ;;  %v3848_v47 = vpack.c.bf16 %v1307_v40, %v1306_v39  ;;  %v1276_v48 = vld [vmem:[%s6532_s3 + $0x20] sm:$0xff] }
  0xb4   :  { %3587 = vmatprep.subr.bf16.mxu0 %v5134_v50  ;;  %3779 = vmatprep.subr.bf16.mxu1 %v5137_v51  ;;  %v1277_v50 = vld [vmem:[%s6532_s3 + $0x28] sm:$0xff]  ;;  %v3818_v51 = vpack.c.bf16 %v1293_v43, %v1292_v41  ;;  %v1302_v41 = vld [vmem:[%s6532_s3 + $0xf0] sm:$0xff]  ;;  %v1303_v43 = vld [vmem:[%s6532_s3 + $0xf8] sm:$0xff] }
  0xb7   :  { %3589 = vmatpush1.bf16.msra.mxu0 %v5136_v52  ;;  %3781 = vmatpush1.bf16.msra.mxu1 %v5139_v53  ;;  %v3850_v52 = vpack.c.bf16 %v1325_v45, %v1324_v44  ;;  %v1309_v53 = vld [vmem:[%s6532_s3 + $0x128] sm:$0xff]  ;;  %v1334_v44 = vld [vmem:[%s6532_s3 + $0x1f0] sm:$0xff]  ;;  %v3838_v45 = vpack.c.bf16 %v1303_v43, %v1302_v41  ;;  %v5543_v43 = vmov 1.0  }
  0xb8   :  { %3591 = vmatprep.subr.bf16.mxu0 %v5140_v54  ;;  %3783 = vmatprep.subr.bf16.mxu1 %v5143_v55  ;;  %v1294_v54 = vld [vmem:[%s6532_s3 + $0xb0] sm:$0xff]  ;;  %v1295_v55 = vld [vmem:[%s6532_s3 + $0xb8] sm:$0xff]  ;;  %v1498_v41 = vld [vmem:[%s6534_s5 + $0x28] sm:$0xff] }
  0xbb   :  { %3593 = vmatpush1.bf16.msra.mxu0 %v5142_v56  ;;  %3785 = vmatpush1.bf16.msra.mxu1 %v5145_v57  ;;  %v1326_v56 = vld [vmem:[%s6532_s3 + $0x1b0] sm:$0xff]  ;;  %v1327_v57 = vld [vmem:[%s6532_s3 + $0x1b8] sm:$0xff] }
  0xbc   :  { %3595 = vmatprep.subr.bf16.mxu0 %v5146_v58  ;;  %3787 = vmatprep.subr.bf16.mxu1 %v5149_v59  ;;  %v3820_v58 = vpack.c.bf16 %v1277_v50, %v1276_v48  ;;  %v1287_v48 = vld [vmem:[%s6532_s3 + $0x78] sm:$0xff] }
  0xbf   :  { %3597 = vmatpush1.bf16.msra.mxu0 %v5148_v60  ;;  %3789 = vmatpush1.bf16.msra.mxu1 %v5151_v61  ;;  %v1278_v60 = vld [vmem:[%s6532_s3 + $0x30] sm:$0xff]  ;;  %v1279_v61 = vld [vmem:[%s6532_s3 + $0x38] sm:$0xff] }
  0xc0   :  { %3599 = vmatprep.subr.bf16.mxu0 %v5152_v62  ;;  %3791 = vmatprep.subr.bf16.mxu1 %v5155_v63  ;;  %v3822_v62 = vpack.c.bf16 %v1295_v55, %v1294_v54  ;;  %v3854_v63 = vpack.c.bf16 %v1327_v57, %v1326_v56  ;;  %v1509_v54 = vld [vmem:[%s6534_s5 + $0x80] sm:$0xff]  ;;  %v1510_v55 = vld [vmem:[%s6534_s5 + $0x88] sm:$0xff] }
  0xc1   :  { %v1541_v56 = vld [vmem:[%s6534_s5 + $0x180] sm:$0xff]  ;;  %v1542_v57 = vld [vmem:[%s6534_s5 + $0x188] sm:$0xff] }
  0xc3   :  { %3601 = vmatpush1.bf16.msra.mxu0 %v5154_v0  ;;  %3793 = vmatpush1.bf16.msra.mxu1 %v5157_v1  ;;  %v1310_v0 = vld [vmem:[%s6532_s3 + $0x130] sm:$0xff]  ;;  %v1311_v1 = vld [vmem:[%s6532_s3 + $0x138] sm:$0xff] }
  0xc4   :  { %3603 = vmatprep.subr.bf16.mxu0 %v5158_v2  ;;  %3795 = vmatprep.subr.bf16.mxu1 %v5161_v3  ;;  %v1296_v2 = vld [vmem:[%s6532_s3 + $0xc0] sm:$0xff]  ;;  %v1297_v3 = vld [vmem:[%s6532_s3 + $0xc8] sm:$0xff] }
  0xc7   :  { %3605 = vmatpush1.bf16.msra.mxu0 %v5160_v4  ;;  %3797 = vmatpush1.bf16.msra.mxu1 %v5163_v5  ;;  %v1328_v4 = vld [vmem:[%s6532_s3 + $0x1c0] sm:$0xff]  ;;  %v1329_v5 = vld [vmem:[%s6532_s3 + $0x1c8] sm:$0xff] }
  0xc8   :  { %3607 = vmatprep.subr.bf16.mxu0 %v5164_v6  ;;  %3799 = vmatprep.subr.bf16.mxu1 %v5167_v7  ;;  %v3824_v6 = vpack.c.bf16 %v1279_v61, %v1278_v60  ;;  %v3856_v7 = vpack.c.bf16 %v1311_v1, %v1310_v0  ;;  %v5867_v60 = vsub.s32 0, %v5637_v42  ;;  %v5870_v61 = vsub.s32 2, %v5637_v42 }
  0xc9   :  { %v5879_v0 = vsub.s32 3, %v5637_v42 }
  0xcb   :  { %3609 = vmatpush1.bf16.msra.mxu0 %v5166_v8  ;;  %3801 = vmatpush1.bf16.msra.mxu1 %v5169_v9  ;;  %v1280_v8 = vld [vmem:[%s6532_s3 + $0x40] sm:$0xff]  ;;  %v1281_v9 = vld [vmem:[%s6532_s3 + $0x48] sm:$0xff] }
  0xcc   :  { %3611 = vmatprep.subr.bf16.mxu0 %v5170_v10  ;;  %3803 = vmatprep.subr.bf16.mxu1 %v5173_v11  ;;  %v3826_v10 = vpack.c.bf16 %v1297_v3, %v1296_v2  ;;  %v3858_v11 = vpack.c.bf16 %v1329_v5, %v1328_v4  ;;  %v3828_v20 = vpack.c.bf16 %v1281_v9, %v1280_v8 }
  0xcf   :  { %3613 = vmatpush1.bf16.msra.mxu0 %v5172_v13  ;;  %3805 = vmatpush1.bf16.msra.mxu1 %v5175_v14  ;;  %v1312_v13 = vld [vmem:[%s6532_s3 + $0x140] sm:$0xff]  ;;  %v1313_v14 = vld [vmem:[%s6532_s3 + $0x148] sm:$0xff] }
  0xd0   :  { %3615 = vmatprep.subr.bf16.mxu0 %v5176_v15  ;;  %3807 = vmatprep.subr.bf16.mxu1 %v5179_v16  ;;  %v1298_v15 = vld [vmem:[%s6532_s3 + $0xd0] sm:$0xff]  ;;  %v1299_v16 = vld [vmem:[%s6532_s3 + $0xd8] sm:$0xff]  ;;  %v3860_v21 = vpack.c.bf16 %v1313_v14, %v1312_v13  ;;  %v1494_v13 = vld [vmem:[%s6534_s5 + $0x8] sm:$0xff] }
  0xd1   :  { %v3830_v24 = vpack.c.bf16 %v1299_v16, %v1298_v15  ;;  %v1525_v14 = vld [vmem:[%s6534_s5 + $0x100] sm:$0xff]  ;;  %v1526_v15 = vld [vmem:[%s6534_s5 + $0x108] sm:$0xff] }
  0xd3   :  { %3617 = vmatpush1.bf16.msra.mxu0 %v5178_v22  ;;  %3809 = vmatpush1.bf16.msra.mxu1 %v5181_v23  ;;  %v1282_v22 = vld [vmem:[%s6532_s3 + $0x50] sm:$0xff]  ;;  %v1283_v23 = vld [vmem:[%s6532_s3 + $0x58] sm:$0xff] }
  0xd4   :  { %3811 = vmatprep.subr.bf16.mxu0 %v3810_v26  ;;  %3843 = vmatprep.subr.bf16.mxu1 %v3842_v27  ;;  %v1314_v26 = vld [vmem:[%s6532_s3 + $0x150] sm:$0xff]  ;;  %v1315_v27 = vld [vmem:[%s6532_s3 + $0x158] sm:$0xff]  ;;  %v3832_v31 = vpack.c.bf16 %v1283_v23, %v1282_v22 }
  0xd5   :  { %v3864_v32 = vpack.c.bf16 %v1315_v27, %v1314_v26  ;;  %v1544_v22 = vld [vmem:[%s6534_s5 + $0x198] sm:$0xff]  ;;  %v3908_v26 = vpack.c.bf16 %v1526_v15, %v1525_v14  ;;  %v1495_v27 = vld [vmem:[%s6534_s5 + $0x10] sm:$0xff]  ;;  %v1534_v14 = vld [vmem:[%s6534_s5 + $0x148] sm:$0xff] }
  0xd6   :  { %1049 = vmatmul.mubr.f32.vlgmr.msra.gmra.mrb[0].mxu0 %v5654_v19  ;;  %1262 = vmatmul.mubr.f32.vlgmr.msra.gmra.mrb[0].mxu1 %v5654_v19  ;;  %v1308_v19 = vld [vmem:[%s6532_s3 + $0x120] sm:$0xff]  ;;  %v1519_v15 = vld [vmem:[%s6534_s5 + $0xd0] sm:$0xff] }
  0xd7   :  { %3813 = vmatpush3.bf16.msra.mxu0 %v3812_v33  ;;  %3845 = vmatpush3.bf16.msra.mxu1 %v3844_v34  ;;  %v3852_v59 = vpack.c.bf16 %v1309_v53, %v1308_v19  ;;  %v1284_v33 = vld [vmem:[%s6532_s3 + $0x60] sm:$0xff]  ;;  %v3834_v34 = vpack.c.bf16 %v1301_v12, %v1300_v28  ;;  %v1319_v19 = vld [vmem:[%s6532_s3 + $0x178] sm:$0xff] }
  0xd8   :  { %3815 = vmatprep.subr.bf16.mxu0 %v3814_v37  ;;  %3847 = vmatprep.subr.bf16.mxu1 %v3846_v38  ;;  %v1316_v37 = vld [vmem:[%s6532_s3 + $0x160] sm:$0xff]  ;;  %v1317_v38 = vld [vmem:[%s6532_s3 + $0x168] sm:$0xff]  ;;  %v3836_v39 = vpack.c.bf16 %v1285_v36, %v1284_v33  ;;  %v1496_v28 = vld [vmem:[%s6534_s5 + $0x18] sm:$0xff] }
  0xd9   :  { %v3868_v40 = vpack.c.bf16 %v1317_v38, %v1316_v37  ;;  %v1545_v36 = vld [vmem:[%s6534_s5 + $0x1a0] sm:$0xff]  ;;  %v1546_v37 = vld [vmem:[%s6534_s5 + $0x1a8] sm:$0xff]  ;;  %v3880_v38 = vpack.c.bf16 %v1496_v28, %v1495_v27  ;;  %v1535_v28 = vld [vmem:[%s6534_s5 + $0x150] sm:$0xff] }
  0xdb   :  { %3817 = vmatpush3.bf16.msra.mxu0 %v3816_v46  ;;  %3849 = vmatpush3.bf16.msra.mxu1 %v3848_v47  ;;  %v1335_v46 = vld [vmem:[%s6532_s3 + $0x1f8] sm:$0xff]  ;;  %v1286_v47 = vld [vmem:[%s6532_s3 + $0x70] sm:$0xff] }
  0xdc   :  { %3819 = vmatprep.subr.bf16.mxu0 %v3818_v51  ;;  %3851 = vmatprep.subr.bf16.mxu1 %v3850_v52  ;;  %v3870_v50 = vpack.c.bf16 %v1335_v46, %v1334_v44  ;;  %v3840_v51 = vpack.c.bf16 %v1287_v48, %v1286_v47  ;;  %v1318_v52 = vld [vmem:[%s6532_s3 + $0x170] sm:$0xff]  ;;  %v1529_v46 = vld [vmem:[%s6534_s5 + $0x120] sm:$0xff]  ;;  %v1530_v47 = vld [vmem:[%s6534_s5 + $0x128] sm:$0xff] }
  0xdd   :  { %v3872_v53 = vpack.c.bf16 %v1319_v19, %v1318_v52  ;;  %v1515_v48 = vld [vmem:[%s6534_s5 + $0xb0] sm:$0xff]  ;;  %v1548_v52 = vld [vmem:[%s6534_s5 + $0x1b8] sm:$0xff] }
  0xdf   :  { %3821 = vmatpush3.bf16.msra.mxu0 %v3820_v58  ;;  %3853 = vmatpush3.bf16.msra.mxu1 %v3852_v59  ;;  %v3874_v58 = vpack.c.bf16 %v1510_v55, %v1509_v54  ;;  %v3906_v59 = vpack.c.bf16 %v1542_v57, %v1541_v56  ;;  %v1499_v54 = vld [vmem:[%s6534_s5 + $0x30] sm:$0xff]  ;;  %v1500_v55 = vld [vmem:[%s6534_s5 + $0x38] sm:$0xff] }
  0xe0   :  { %3823 = vmatprep.subr.bf16.mxu0 %v3822_v62  ;;  %3855 = vmatprep.subr.bf16.mxu1 %v3854_v63  ;;  %v787_v62 = vld [vmem:[%s6531_s2] sm:$0xf]  ;;  %v5876_v63 = vsub.s32 1, %v5637_v42 }
  0xe1   :  { %v792_v1 = vrot.slane %v787_v62, %v5867_v60  ;;  %v800_v2 = vrot.slane %v787_v62, %v5870_v61  ;;  %v804_v4 = vrot.slane %v787_v62, %v5879_v0 }
  0xe2   :  { %v796_v3 = vrot.slane %v787_v62, %v5876_v63  ;;  %v1517_v62 = vld [vmem:[%s6534_s5 + $0xc0] sm:$0xff] }
  0xe3   :  { %3825 = vmatpush3.bf16.msra.mxu0 %v3824_v6  ;;  %3857 = vmatpush3.bf16.msra.mxu1 %v3856_v7  ;;  %v1493_v7 = vld [vmem:[%s6534_s5] sm:$0xff] }
  0xe4   :  { %3827 = vmatprep.subr.bf16.mxu0 %v3826_v10  ;;  %3859 = vmatprep.subr.bf16.mxu1 %v3858_v11 }
  0xe7   :  { %3829 = vmatpush3.bf16.msra.mxu0 %v3828_v20  ;;  %3861 = vmatpush3.bf16.msra.mxu1 %v3860_v21  ;;  %v1512_v20 = vld [vmem:[%s6534_s5 + $0x98] sm:$0xff]  ;;  %v1543_v21 = vld [vmem:[%s6534_s5 + $0x190] sm:$0xff] }
  0xe8   :  { %3831 = vmatprep.subr.bf16.mxu0 %v3830_v24  ;;  %3863 = vmatprep.subr.bf16.mxu1 %v3862_v25  ;;  %v3876_v25 = vpack.c.bf16 %v1494_v13, %v1493_v7  ;;  %v3878_v33 = vpack.c.bf16 %v1512_v20, %v1511_v18  ;;  %v1502_v7 = vld [vmem:[%s6534_s5 + $0x48] sm:$0xff]  ;;  %v1533_v13 = vld [vmem:[%s6534_s5 + $0x140] sm:$0xff]  ;;  %v1520_v18 = vld [vmem:[%s6534_s5 + $0xd8] sm:$0xff] }
  0xe9   :  { %v1551_v20 = vld [vmem:[%s6534_s5 + $0x1d0] sm:$0xff] }
  0xeb   :  { %3833 = vmatpush3.bf16.msra.mxu0 %v3832_v31  ;;  %3865 = vmatpush3.bf16.msra.mxu1 %v3864_v32  ;;  %v1528_v31 = vld [vmem:[%s6534_s5 + $0x118] sm:$0xff]  ;;  %v1513_v32 = vld [vmem:[%s6534_s5 + $0xa0] sm:$0xff] }
  0xec   :  { %3835 = vmatprep.subr.bf16.mxu0 %v3834_v34  ;;  %3867 = vmatprep.subr.bf16.mxu1 %v3866_v35  ;;  %v3910_v34 = vpack.c.bf16 %v1544_v22, %v1543_v21  ;;  %v1514_v35 = vld [vmem:[%s6534_s5 + $0xa8] sm:$0xff]  ;;  %v1552_v21 = vld [vmem:[%s6534_s5 + $0x1d8] sm:$0xff] }
  0xed   :  { %v3882_v44 = vpack.c.bf16 %v1514_v35, %v1513_v32  ;;  %v3926_v27 = vpack.c.bf16 %v1552_v21, %v1551_v20  ;;  %v1554_v32 = vld [vmem:[%s6534_s5 + $0x1e8] sm:$0xff]  ;;  %v1505_v35 = vld [vmem:[%s6534_s5 + $0x60] sm:$0xff] }
  0xef   :  { %3837 = vmatpush3.bf16.msra.mxu0 %v3836_v39  ;;  %3869 = vmatpush3.bf16.msra.mxu1 %v3868_v40  ;;  %v3912_v39 = vpack.c.bf16 %v1528_v31, %v1527_v30  ;;  %v1497_v40 = vld [vmem:[%s6534_s5 + $0x20] sm:$0xff]  ;;  %v1522_v30 = vld [vmem:[%s6534_s5 + $0xe8] sm:$0xff] }
  0xf0   :  { %3839 = vmatprep.subr.bf16.mxu0 %v3838_v45  ;;  %3871 = vmatprep.subr.bf16.mxu1 %v3870_v50  ;;  %v3914_v45 = vpack.c.bf16 %v1546_v37, %v1545_v36  ;;  %v1516_v50 = vld [vmem:[%s6534_s5 + $0xb8] sm:$0xff]  ;;  %v3884_v19 = vpack.c.bf16 %v1498_v41, %v1497_v40  ;;  %v1553_v31 = vld [vmem:[%s6534_s5 + $0x1e0] sm:$0xff]  ;;  %v1506_v36 = vld [vmem:[%s6534_s5 + $0x68] sm:$0xff] }
  0xf1   :  { %v3886_v56 = vpack.c.bf16 %v1516_v50, %v1515_v48  ;;  %v1538_v40 = vld [vmem:[%s6534_s5 + $0x168] sm:$0xff]  ;;  %v1523_v41 = vld [vmem:[%s6534_s5 + $0xf0] sm:$0xff] }
  0xf2   :  { %v1507_v50 = vld [vmem:[%s6534_s5 + $0x70] sm:$0xff] }
  0xf3   :  { %3841 = vmatpush3.bf16.msra.mxu0 %v3840_v51  ;;  %3873 = vmatpush3.bf16.msra.mxu1 %v3872_v53  ;;  %v1547_v51 = vld [vmem:[%s6534_s5 + $0x1b0] sm:$0xff]  ;;  %v3916_v53 = vpack.c.bf16 %v1530_v47, %v1529_v46  ;;  %v1556_v46 = vld [vmem:[%s6534_s5 + $0x1f8] sm:$0xff]  ;;  %v3900_v47 = vpack.c.bf16 %v1506_v36, %v1505_v35  ;;  %v3138_v36 = vld [vmem:[%s6536_s7 + $0xc0] sm:$0xff]  }
  0xf4   :  { %3875 = vmatprep.subr.bf16.mxu0 %v3874_v58  ;;  %3907 = vmatprep.subr.bf16.mxu1 %v3906_v59  ;;  %v3918_v57 = vpack.c.bf16 %v1548_v52, %v1547_v51  ;;  %v1531_v58 = vld [vmem:[%s6534_s5 + $0x130] sm:$0xff]  ;;  %v1532_v59 = vld [vmem:[%s6534_s5 + $0x138] sm:$0xff] }
  0xf5   :  { %v1699_v35 = vld [vmem:[%s6535_s6 + $0x10] sm:$0xff] }
 0x1a9   :  { %v1050_v5 = vpop.f32.mrb[0].mxu0  ;;  %v1263_v6 = vpop.f32.mrb[0].mxu1 }
 0x1aa   :  { %v5888_v8 = vadd.f32 %v1050_v5, %v792_v1  ;;  %v5890_v9 = vadd.f32 %v1263_v6, %v800_v2  ;;  %v1052_v10 = vpop.f32.mrb[1].mxu0  ;;  %v1265_v11 = vpop.f32.mrb[1].mxu1  ;;  %v1518_v1 = vld [vmem:[%s6534_s5 + $0xc8] sm:$0xff]  ;;  %v1549_v2 = vld [vmem:[%s6534_s5 + $0x1c0] sm:$0xff]  ;;  %v3920_v5 = vpack.c.bf16 %v1532_v59, %v1531_v58  ;;  %v1700_v59 = vld [vmem:[%s6535_s6 + $0x18] sm:$0xff] }
 0x1ab   :  { %v5901_v16 = vadd.f32 %v1052_v10, %v796_v3  ;;  %v5903_v17 = vadd.f32 %v1265_v11, %v804_v4  ;;  %v1550_v3 = vld [vmem:[%s6534_s5 + $0x1c8] sm:$0xff]  ;;  %v3888_v4 = vpack.c.bf16 %v1500_v55, %v1499_v54  ;;  %v1501_v6 = vld [vmem:[%s6534_s5 + $0x40] sm:$0xff]  ;;  %v3890_v10 = vpack.c.bf16 %v1518_v1, %v1517_v62  ;;  %v1540_v54 = vld [vmem:[%s6534_s5 + $0x178] sm:$0xff] }
 0x1ac   :  { %v1268_v12 = vmax.f32 %v5888_v8, 0.0  ;;  %v1270_v29 = vmax.f32 %v5890_v9, 0.0  ;;  %v3922_v11 = vpack.c.bf16 %v1550_v3, %v1549_v2  ;;  %v3892_v22 = vpack.c.bf16 %v1502_v7, %v1501_v6  ;;  %v1697_v58 = vld [vmem:[%s6535_s6] sm:$0xff]  ;;  %v3123_v2 = vld [vmem:[%s6536_s7 + $0x48] sm:$0xff]   ;;  %v3125_v6 = vld [vmem:[%s6536_s7 + $0x58] sm:$0xff]  }
 0x1ad   :  { %v1269_v23 = vmax.f32 %v5901_v16, 0.0  ;;  %v1271_v24 = vmax.f32 %v5903_v17, 0.0  ;;  %vm1486_vm0 = vcmp.gt.f32.partialorder %v5901_v16, 0.0  ;;  %vm1488_vm1 = vcmp.gt.f32.partialorder %v5903_v17, 0.0  ;;  %v2988_v1 = vld [vmem:[%s6536_s7] sm:$0xff]   ;;  %v3115_v3 = vld [vmem:[%s6536_s7 + $0x8] sm:$0xff]  }
 0x1ae   :  { %vm1485_vm2 = vcmp.gt.f32.partialorder %v5888_v8, 0.0  ;;  %vm1487_vm3 = vcmp.gt.f32.partialorder %v5890_v9, 0.0  ;;  %v5544_v62 = vmov 0.0   ;;  %v3117_v7 = vld [vmem:[%s6536_s7 + $0x18] sm:$0xff]  }
 0x1af   :  { %1407 = vmatprep.mubr.f32.mxu0 %v1269_v23  ;;  %1477 = vmatprep.mubr.f32.mxu1 %v1271_v24  ;;  %v3924_v23 = vpack.c.bf16 %v1534_v14, %v1533_v13  ;;  %v1503_v24 = vld [vmem:[%s6534_s5 + $0x50] sm:$0xff]  ;;  %v3127_v13 = vld [vmem:[%s6536_s7 + $0x68] sm:$0xff]  }
 0x1b0   :  { %1408 = vmatmul.mubr.f32.vlgmr.msra.gmra.mrb[2].mxu0 %v1268_v12  ;;  %1478 = vmatmul.mubr.f32.vlgmr.msra.gmra.mrb[2].mxu1 %v1270_v29  ;;  %v1536_v12 = vld [vmem:[%s6534_s5 + $0x158] sm:$0xff]  ;;  %v1521_v29 = vld [vmem:[%s6534_s5 + $0xe0] sm:$0xff]  ;;  %v3119_v14 = vld [vmem:[%s6536_s7 + $0x28] sm:$0xff]  }
 0x1b1   :  { %3877 = vmatpush3.bf16.msra.mxu0 %v3876_v25  ;;  %3909 = vmatpush3.bf16.msra.mxu1 %v3908_v26  ;;  %v1504_v25 = vld [vmem:[%s6534_s5 + $0x58] sm:$0xff]  ;;  %v3894_v26 = vpack.c.bf16 %v1520_v18, %v1519_v15  ;;  %v3898_v37 = vpack.c.bf16 %v1522_v30, %v1521_v29  ;;  %v3128_v15 = vld [vmem:[%s6536_s7 + $0x70] sm:$0xff]  }
 0x1b2   :  { %2973 = vmatprep.mubr.msk.f32.mxu0 %vm1486_vm0, %v5543_v43  ;;  %2975 = vmatprep.mubr.msk.f32.mxu1 %vm1488_vm1, %v5543_v43  ;;  %v3120_v18 = vld [vmem:[%s6536_s7 + $0x30] sm:$0xff]  }
 0x1b3   :  { %3879 = vmatprep.subr.bf16.mxu0 %v3878_v33  ;;  %3911 = vmatprep.subr.bf16.mxu1 %v3910_v34  ;;  %v3896_v33 = vpack.c.bf16 %v1504_v25, %v1503_v24  ;;  %v3928_v34 = vpack.c.bf16 %v1536_v12, %v1535_v28 }
 0x1b5   :  { %3881 = vmatpush3.bf16.msra.mxu0 %v3880_v38  ;;  %3913 = vmatpush3.bf16.msra.mxu1 %v3912_v39  ;;  %v3930_v38 = vpack.c.bf16 %v1554_v32, %v1553_v31  ;;  %v1537_v39 = vld [vmem:[%s6534_s5 + $0x160] sm:$0xff] }
 0x1b6   :  { %3883 = vmatprep.subr.bf16.mxu0 %v3882_v44  ;;  %3915 = vmatprep.subr.bf16.mxu1 %v3914_v45  ;;  %v1524_v44 = vld [vmem:[%s6534_s5 + $0xf8] sm:$0xff]  ;;  %v1555_v45 = vld [vmem:[%s6534_s5 + $0x1f0] sm:$0xff]  ;;  %v3932_v48 = vpack.c.bf16 %v1538_v40, %v1537_v39  ;;  %v3131_v39 = vld [vmem:[%s6536_s7 + $0x88] sm:$0xff]  }
 0x1b7   :  { %v3902_v51 = vpack.c.bf16 %v1524_v44, %v1523_v41  ;;  %v3934_v52 = vpack.c.bf16 %v1556_v46, %v1555_v45  ;;  %v3140_v40 = vld [vmem:[%s6536_s7 + $0xd0] sm:$0xff]   ;;  %v3141_v44 = vld [vmem:[%s6536_s7 + $0xd8] sm:$0xff]   ;;  %v3142_v46 = vld [vmem:[%s6536_s7 + $0xe0] sm:$0xff]  }
 0x1b8   :  { %v3132_v41 = vld [vmem:[%s6536_s7 + $0x90] sm:$0xff]   ;;  %v3133_v45 = vld [vmem:[%s6536_s7 + $0x98] sm:$0xff]  }
 0x1b9   :  { %3885 = vmatpush3.bf16.msra.mxu0 %v3884_v19  ;;  %3917 = vmatpush3.bf16.msra.mxu1 %v3916_v53  ;;  %v1508_v19 = vld [vmem:[%s6534_s5 + $0x78] sm:$0xff]  ;;  %v1539_v53 = vld [vmem:[%s6534_s5 + $0x170] sm:$0xff] }
 0x1ba   :  { %3887 = vmatprep.subr.bf16.mxu0 %v3886_v56  ;;  %3919 = vmatprep.subr.bf16.mxu1 %v3918_v57  ;;  %v3904_v55 = vpack.c.bf16 %v1508_v19, %v1507_v50  ;;  %v3936_v56 = vpack.c.bf16 %v1540_v54, %v1539_v53  ;;  %v1698_v57 = vld [vmem:[%s6535_s6 + $0x8] sm:$0xff]  ;;  %v3121_v19 = vld [vmem:[%s6536_s7 + $0x38] sm:$0xff]   ;;  %v3136_v53 = vld [vmem:[%s6536_s7 + $0xb0] sm:$0xff]  }
 0x1bb   :  { %v3135_v50 = vld [vmem:[%s6536_s7 + $0xa8] sm:$0xff]   ;;  %v3145_v54 = vld [vmem:[%s6536_s7 + $0xf8] sm:$0xff]  }
 0x1bd   :  { %3889 = vmatpush3.bf16.msra.mxu0 %v3888_v4  ;;  %3921 = vmatpush3.bf16.msra.mxu1 %v3920_v5  ;;  %v3124_v4 = vld [vmem:[%s6536_s7 + $0x50] sm:$0xff]  }
 0x1be   :  { %3891 = vmatprep.subr.bf16.mxu0 %v3890_v10  ;;  %3923 = vmatprep.subr.bf16.mxu1 %v3922_v11  ;;  %v3116_v5 = vld [vmem:[%s6536_s7 + $0x10] sm:$0xff]   ;;  %v3126_v10 = vld [vmem:[%s6536_s7 + $0x60] sm:$0xff]  }
 0x1bf   :  { %v3118_v11 = vld [vmem:[%s6536_s7 + $0x20] sm:$0xff]  }
 0x1c1   :  { %3893 = vmatpush3.bf16.msra.mxu0 %v3892_v22  ;;  %3925 = vmatpush3.bf16.msra.mxu1 %v3924_v23  ;;  %v2972_v22 = vld [vmem:[%s6533_s4] ss:$0 sm:$0xff] }
 0x1c2   :  { %3895 = vmatprep.subr.bf16.mxu0 %v3894_v26  ;;  %3927 = vmatprep.subr.bf16.mxu1 %v3926_v27 }
 0x1c5   :  { %3897 = vmatpush3.bf16.msra.mxu0 %v3896_v33  ;;  %3929 = vmatpush3.bf16.msra.mxu1 %v3928_v34 }
 0x1c6   :  { %3899 = vmatprep.subr.bf16.mxu0 %v3898_v37  ;;  %3931 = vmatprep.subr.bf16.mxu1 %v3930_v38  ;;  %v3130_v37 = vld [vmem:[%s6536_s7 + $0x80] sm:$0xff]   ;;  %v3139_v38 = vld [vmem:[%s6536_s7 + $0xc8] sm:$0xff]  }
 0x1c9   :  { %3901 = vmatpush3.bf16.msra.mxu0 %v3900_v47  ;;  %3933 = vmatpush3.bf16.msra.mxu1 %v3932_v48  ;;  %v3134_v47 = vld [vmem:[%s6536_s7 + $0xa0] sm:$0xff]   ;;  %v3143_v48 = vld [vmem:[%s6536_s7 + $0xe8] sm:$0xff]  }
 0x1ca   :  { %3903 = vmatprep.subr.bf16.mxu0 %v3902_v51  ;;  %3935 = vmatprep.subr.bf16.mxu1 %v3934_v52  ;;  %v3129_v51 = vld [vmem:[%s6536_s7 + $0x78] sm:$0xff]   ;;  %v3144_v52 = vld [vmem:[%s6536_s7 + $0xf0] sm:$0xff]  }
 0x1cd   :  { %3905 = vmatpush3.bf16.msra.mxu0 %v3904_v55  ;;  %3937 = vmatpush3.bf16.msra.mxu1 %v3936_v56  ;;  %v3137_v55 = vld [vmem:[%s6536_s7 + $0xb8] sm:$0xff]   ;;  %v5204_v56 = vld [vmem:[#allocation2 + $0x4] ss:$16 sps:$4 sm:$0xff]  }
 0x1ce   :  { %1705 = vmatprep.subr.mxu1 %v1698_v57  ;;  %v5182_v57 = vld [vmem:[%s6537_s8 + $0x4] ss:$8 sps:$4 sm:$0xff]  }
 0x1d0   :  { %2974 = vmatmul.mubr.msk.f32.vlgmr.msra.gmra.mrb[4].mxu0 %vm1485_vm2, %v5543_v43  ;;  %2976 = vmatmul.mubr.msk.f32.vlgmr.msra.gmra.mrb[4].mxu1 %vm1487_vm3, %v5543_v43  ;;  %v3122_v43 = vld [vmem:[%s6536_s7 + $0x40] sm:$0xff]  }
 0x1d1   :  { %1706 = vmatpush1.msra.mxu1 %v1697_v58  ;;  %1769 = vmatprep.mubr.f32.mxu1 %v5544_v62 }
 0x1d2   :  { %1776 = vmatprep.subr.mxu1 %v1700_v59  ;;  %3939 = vmatprep.subr.bf16.mxu0 %v3122_v43 }
 0x1d3   :  { %3941 = vmatpush3.bf16.msra.mxu0 %v2988_v1  ;;  %v5184_v1 = vld [vmem:[%s6537_s8] ss:$8 sps:$4 sm:$0xff]  }
 0x1d4   :  { %3943 = vmatprep.subr.bf16.mxu0 %v3123_v2 }
 0x1d7   :  { %3945 = vmatpush3.bf16.msra.mxu0 %v3115_v3 }
 0x1d8   :  { %3947 = vmatprep.subr.bf16.mxu0 %v3124_v4 }
 0x1db   :  { %3949 = vmatpush3.bf16.msra.mxu0 %v3116_v5 }
 0x1dc   :  { %3951 = vmatprep.subr.bf16.mxu0 %v3125_v6 }
 0x1df   :  { %3953 = vmatpush3.bf16.msra.mxu0 %v3117_v7  ;;  %v5206_v7 = vld [vmem:[#allocation2 + $0x24] ss:$16 sps:$4 sm:$0xff]  }
 0x1e0   :  { %3955 = vmatprep.subr.bf16.mxu0 %v3126_v10  ;;  %v5207_v10 = vld [vmem:[#allocation2 + $0x20] ss:$16 sps:$4 sm:$0xff]  }
 0x1e3   :  { %3957 = vmatpush3.bf16.msra.mxu0 %v3118_v11  ;;  %v5209_v11 = vld [vmem:[#allocation2 + $0x40] ss:$16 sps:$4 sm:$0xff]  }
 0x1e4   :  { %3959 = vmatprep.subr.bf16.mxu0 %v3127_v13  ;;  %v5210_v13 = vld [vmem:[#allocation2 + $0x64] ss:$16 sps:$4 sm:$0xff]  }
 0x1e7   :  { %3961 = vmatpush3.bf16.msra.mxu0 %v3119_v14  ;;  %v5212_v14 = vld [vmem:[#allocation2 + $0x84] ss:$16 sps:$4 sm:$0xff]  }
 0x1e8   :  { %3963 = vmatprep.subr.bf16.mxu0 %v3128_v15  ;;  %v5215_v15 = vld [vmem:[#allocation2 + $0xa0] ss:$16 sps:$4 sm:$0xff]  }
 0x1eb   :  { %3965 = vmatpush3.bf16.msra.mxu0 %v3120_v18  ;;  %v5216_v18 = vld [vmem:[#allocation2 + $0xc4] ss:$16 sps:$4 sm:$0xff]  }
 0x1ec   :  { %3967 = vmatprep.subr.bf16.mxu0 %v3129_v51 }
 0x1ef   :  { %3969 = vmatpush3.bf16.msra.mxu0 %v3121_v19 }
 0x1f0   :  { %4003 = vmatprep.subr.bf16.mxu0 %v5182_v57  ;;  %v5239_v57 = vld [vmem:[#allocation2 + $0x2c] ss:$16 sps:$4 sm:$0xff]  }
 0x283   :  { %v3178_v20 = vpop.f32.mrb[2].mxu0  ;;  %v3213_v21 = vpop.f32.mrb[2].mxu1 }
 0x284   :  { %v3179_v23 = vpop.f32.mrb[3].mxu0  ;;  %v3214_v24 = vpop.f32.mrb[3].mxu1 }
 0x285   :  { %v3180_v25 = vadd.f32 %v3179_v23, %v3178_v20  ;;  %v3215_v26 = vadd.f32 %v3214_v24, %v3213_v21  ;;  %v5217_v20 = vld [vmem:[#allocation2 + $0xc0] ss:$16 sps:$4 sm:$0xff]   ;;  %v5218_v21 = vld [vmem:[#allocation2 + $0xe4] ss:$16 sps:$4 sm:$0xff]  }
 0x286   :  { %v5220_v23 = vld [vmem:[#allocation2 + $0x104] ss:$16 sps:$4 sm:$0xff]   ;;  %v5221_v24 = vld [vmem:[#allocation2 + $0x100] ss:$16 sps:$4 sm:$0xff]  }
 0x287   :  { %v1410_v27 = vadd.f32 %v3180_v25, %v2972_v22  ;;  %v5219_v22 = vld [vmem:[#allocation2 + $0xe0] ss:$16 sps:$4 sm:$0xff]   ;;  %v5222_v25 = vld [vmem:[#allocation2 + $0x124] ss:$16 sps:$4 sm:$0xff]  }
 0x289   :  { %v1480_v28 = vadd.f32 %v3215_v26, %v1410_v27  ;;  %v5223_v26 = vld [vmem:[#allocation2 + $0x120] ss:$16 sps:$4 sm:$0xff]   ;;  %v5224_v27 = vld [vmem:[#allocation2 + $0x144] ss:$16 sps:$4 sm:$0xff]  }
 0x28b   :  { %1484 = vst.msk [vmem:[#allocation5] sm:$0x3] %vm1483_vm4, %v1480_v28  ;;  %v5225_v28 = vld [vmem:[#allocation2 + $0x140] ss:$16 sps:$4 sm:$0xff]  }
 0x2a3   :  { %v3248_v12 = vpop.f32.mrb[4].mxu0  ;;  %v3283_v29 = vpop.f32.mrb[4].mxu1 }
 0x2a4   :  { %v3249_v30 = vpop.f32.mrb[5].mxu0  ;;  %v3284_v31 = vpop.f32.mrb[5].mxu1 }
 0x2a5   :  { %v3250_v32 = vadd.f32 %v3249_v30, %v3248_v12  ;;  %v3285_v33 = vadd.f32 %v3284_v31, %v3283_v29  ;;  %v5226_v12 = vld [vmem:[#allocation2 + $0x164] ss:$16 sps:$4 sm:$0xff]   ;;  %v5227_v29 = vld [vmem:[#allocation2 + $0x160] ss:$16 sps:$4 sm:$0xff]  }
 0x2a6   :  { %v5228_v30 = vld [vmem:[#allocation2 + $0x184] ss:$16 sps:$4 sm:$0xff]   ;;  %v5229_v31 = vld [vmem:[#allocation2 + $0x180] ss:$16 sps:$4 sm:$0xff]  }
 0x2a7   :  { %v1694_v34 = vadd.f32 %v3285_v33, %v3250_v32  ;;  %v5230_v32 = vld [vmem:[#allocation2 + $0x1a4] ss:$16 sps:$4 sm:$0xff]   ;;  %v5231_v33 = vld [vmem:[#allocation2 + $0x1a0] ss:$16 sps:$4 sm:$0xff]  }
 0x2a9   :  { %2977 = vmatmul.mubr.msk.f32.vlgmr.msra.gmra.mrb[6].mxu1 %vm1701_vm5, %v1694_v34 }
 0x2aa   :  { %1777 = vmatpush1.msra.mxu1 %v1699_v35  ;;  %1840 = vmatprep.mubr.f32.mxu1 %v5544_v62  ;;  %v5233_v35 = vld [vmem:[#allocation2 + $0x1c0] ss:$16 sps:$4 sm:$0xff]  }
 0x2ab   :  { %3971 = vmatprep.subr.bf16.mxu1 %v3138_v36  ;;  %v5234_v36 = vld [vmem:[#allocation2 + $0x1e4] ss:$16 sps:$4 sm:$0xff]  }
 0x2ad   :  { %2978 = vmatmul.mubr.msk.f32.vlgmr.msra.gmra.mrb[8].mxu1 %vm1701_vm5, %v1694_v34  ;;  %v5232_v34 = vld [vmem:[#allocation2 + $0x1c4] ss:$16 sps:$4 sm:$0xff]  }
 0x2ae   :  { %3973 = vmatpush3.bf16.msra.mxu1 %v3130_v37  ;;  %v5235_v37 = vld [vmem:[#allocation2 + $0x1e0] ss:$16 sps:$4 sm:$0xff]  }
 0x2af   :  { %3975 = vmatprep.subr.bf16.mxu1 %v3139_v38  ;;  %v5236_v38 = vld [vmem:[#allocation2 + $0x204] ss:$16 sps:$4 sm:$0xff]  }
 0x2b2   :  { %3977 = vmatpush3.bf16.msra.mxu1 %v3131_v39  ;;  %v5185_v39 = vld [vmem:[%s6537_s8 + $0x14] ss:$8 sps:$4 sm:$0xff]  }
 0x2b3   :  { %3979 = vmatprep.subr.bf16.mxu1 %v3140_v40  ;;  %v5187_v40 = vld [vmem:[%s6537_s8 + $0x10] ss:$8 sps:$4 sm:$0xff]  }
 0x2b6   :  { %3981 = vmatpush3.bf16.msra.mxu1 %v3132_v41  ;;  %v5188_v41 = vld [vmem:[%s6537_s8 + $0x24] ss:$8 sps:$4 sm:$0xff]  }
 0x2b7   :  { %3983 = vmatprep.subr.bf16.mxu1 %v3141_v44  ;;  %v5190_v44 = vld [vmem:[%s6537_s8 + $0x20] ss:$8 sps:$4 sm:$0xff]  }
 0x2ba   :  { %3985 = vmatpush3.bf16.msra.mxu1 %v3133_v45  ;;  %v5191_v45 = vld [vmem:[%s6537_s8 + $0x34] ss:$8 sps:$4 sm:$0xff]  }
 0x2bb   :  { %3987 = vmatprep.subr.bf16.mxu1 %v3142_v46  ;;  %v5193_v46 = vld [vmem:[%s6537_s8 + $0x30] ss:$8 sps:$4 sm:$0xff]  }
 0x2be   :  { %3989 = vmatpush3.bf16.msra.mxu1 %v3134_v47  ;;  %v5237_v47 = vld [vmem:[#allocation2 + $0xc] ss:$16 sps:$4 sm:$0xff]  }
 0x2bf   :  { %3991 = vmatprep.subr.bf16.mxu1 %v3143_v48 }
 0x2c2   :  { %3993 = vmatpush3.bf16.msra.mxu1 %v3135_v50 }
 0x2c3   :  { %3995 = vmatprep.subr.bf16.mxu1 %v3144_v52 }
 0x2c6   :  { %3997 = vmatpush3.bf16.msra.mxu1 %v3136_v53 }
 0x2c7   :  { %3999 = vmatprep.subr.bf16.mxu1 %v3145_v54 }
 0x2ca   :  { %4001 = vmatpush3.bf16.msra.mxu1 %v3137_v55 }
 0x2cb   :  { %4019 = vmatprep.subr.bf16.mxu1 %v5204_v56  ;;  %v5238_v56 = vld [vmem:[#allocation2 + $0x8] ss:$16 sps:$4 sm:$0xff]  }
 0x37c   :  { %v1771_v58 = vpop.f32.mrb[6].mxu1 }
 0x37d   :  { %v1773_v59 = vpop.f32.mrb[7].mxu1  ;;  %v1847_v2 = vmul.f32 %v5888_v8, %v1771_v58  ;;  %v5208_v8 = vld [vmem:[#allocation2 + $0x44] ss:$16 sps:$4 sm:$0xff]   ;;  %v5240_v58 = vld [vmem:[#allocation2 + $0x28] ss:$16 sps:$4 sm:$0xff]  }
 0x37e   :  { %v1848_v43 = vmul.f32 %v5901_v16, %v1773_v59  ;;  %v5205_v16 = vld [vmem:[#allocation2] ss:$16 sps:$4 sm:$0xff]   ;;  %v5241_v59 = vld [vmem:[#allocation2 + $0x4c] ss:$16 sps:$4 sm:$0xff]  }
 0x380   :  { %v1842_v3 = vpop.f32.mrb[8].mxu1  ;;  %1915 = vmatprep.mubr.f32.mxu0 %v1848_v43  ;;  %v5242_v43 = vld [vmem:[#allocation2 + $0x48] ss:$16 sps:$4 sm:$0xff]  }
 0x381   :  { %v1844_v4 = vpop.f32.mrb[9].mxu1  ;;  %1916 = vmatmul.mubr.f32.vlgmr.msra.gmra.mrb[6].mxu0 %v1847_v2  ;;  %v1849_v6 = vmul.f32 %v5890_v9, %v1842_v3  ;;  %v5214_v9 = vld [vmem:[#allocation2 + $0xa4] ss:$16 sps:$4 sm:$0xff]   ;;  %v5244_v2 = vld [vmem:[#allocation2 + $0x68] ss:$16 sps:$4 sm:$0xff]  }
 0x382   :  { %v1850_v5 = vmul.f32 %v5903_v17, %v1844_v4  ;;  %4005 = vmatpush1.bf16.msra.mxu0 %v5184_v1  ;;  %2060 = vmatprep.mubr.f32.mxu0 %v5544_v62  ;;  %v5211_v17 = vld [vmem:[#allocation2 + $0x60] ss:$16 sps:$4 sm:$0xff]   ;;  %v5243_v1 = vld [vmem:[#allocation2 + $0x6c] ss:$16 sps:$4 sm:$0xff]   ;;  %v5246_v4 = vld [vmem:[#allocation2 + $0x88] ss:$16 sps:$4 sm:$0xff]  }
 0x383   :  { %v5213_v62 = vld [vmem:[#allocation2 + $0x80] ss:$16 sps:$4 sm:$0xff]   ;;  %4007 = vmatprep.subr.bf16.mxu0 %v5185_v39  ;;  %v5245_v3 = vld [vmem:[#allocation2 + $0x8c] ss:$16 sps:$4 sm:$0xff]  }
 0x384   :  { %1985 = vmatprep.mubr.f32.mxu1 %v1850_v5  ;;  %v5247_v5 = vld [vmem:[#allocation2 + $0xac] ss:$16 sps:$4 sm:$0xff]  }
 0x385   :  { %1986 = vmatmul.mubr.f32.vlgmr.msra.gmra.mrb[10].mxu1 %v1849_v6  ;;  %v5248_v6 = vld [vmem:[#allocation2 + $0xa8] ss:$16 sps:$4 sm:$0xff]  }
 0x386   :  { %4021 = vmatpush1.bf16.msra.mxu1 %v5205_v16  ;;  %4009 = vmatpush1.bf16.msra.mxu0 %v5187_v40  ;;  %v5249_v16 = vld [vmem:[#allocation2 + $0xcc] ss:$16 sps:$4 sm:$0xff]  }
 0x387   :  { %4023 = vmatprep.subr.bf16.mxu1 %v5206_v7  ;;  %4011 = vmatprep.subr.bf16.mxu0 %v5188_v41  ;;  %v5250_v7 = vld [vmem:[#allocation2 + $0xc8] ss:$16 sps:$4 sm:$0xff]  }
 0x38a   :  { %4025 = vmatpush1.bf16.msra.mxu1 %v5207_v10  ;;  %4013 = vmatpush1.bf16.msra.mxu0 %v5190_v44  ;;  %v5251_v10 = vld [vmem:[#allocation2 + $0xec] ss:$16 sps:$4 sm:$0xff]  }
 0x38b   :  { %4027 = vmatprep.subr.bf16.mxu1 %v5208_v8  ;;  %4015 = vmatprep.subr.bf16.mxu0 %v5191_v45  ;;  %v5252_v8 = vld [vmem:[#allocation2 + $0xe8] ss:$16 sps:$4 sm:$0xff]  }
 0x38e   :  { %4029 = vmatpush1.bf16.msra.mxu1 %v5209_v11  ;;  %4017 = vmatpush1.bf16.msra.mxu0 %v5193_v46  ;;  %v5253_v11 = vld [vmem:[#allocation2 + $0x10c] ss:$16 sps:$4 sm:$0xff]  }
 0x38f   :  { %4031 = vmatprep.subr.bf16.mxu1 %v5210_v13  ;;  %4211 = vmatprep.subr.bf16.mxu0 %v5237_v47  ;;  %v5254_v13 = vld [vmem:[#allocation2 + $0x108] ss:$16 sps:$4 sm:$0xff]  }
 0x392   :  { %4033 = vmatpush1.bf16.msra.mxu1 %v5211_v17  ;;  %v5255_v17 = vld [vmem:[#allocation2 + $0x12c] ss:$16 sps:$4 sm:$0xff]  }
 0x393   :  { %4035 = vmatprep.subr.bf16.mxu1 %v5212_v14  ;;  %v5256_v14 = vld [vmem:[#allocation2 + $0x128] ss:$16 sps:$4 sm:$0xff]  }
 0x396   :  { %4037 = vmatpush1.bf16.msra.mxu1 %v5213_v62  ;;  %v5257_v62 = vld [vmem:[#allocation2 + $0x14c] ss:$16 sps:$4 sm:$0xff]  }
 0x397   :  { %4039 = vmatprep.subr.bf16.mxu1 %v5214_v9  ;;  %v5258_v9 = vld [vmem:[#allocation2 + $0x148] ss:$16 sps:$4 sm:$0xff]  }
 0x39a   :  { %4041 = vmatpush1.bf16.msra.mxu1 %v5215_v15  ;;  %v5259_v15 = vld [vmem:[#allocation2 + $0x16c] ss:$16 sps:$4 sm:$0xff]  }
 0x39b   :  { %4043 = vmatprep.subr.bf16.mxu1 %v5216_v18  ;;  %v5260_v18 = vld [vmem:[#allocation2 + $0x168] ss:$16 sps:$4 sm:$0xff]  }
 0x39e   :  { %4045 = vmatpush1.bf16.msra.mxu1 %v5217_v20  ;;  %v5261_v20 = vld [vmem:[#allocation2 + $0x18c] ss:$16 sps:$4 sm:$0xff]  }
 0x39f   :  { %4047 = vmatprep.subr.bf16.mxu1 %v5218_v21  ;;  %v5262_v21 = vld [vmem:[#allocation2 + $0x188] ss:$16 sps:$4 sm:$0xff]  }
 0x3a2   :  { %4049 = vmatpush1.bf16.msra.mxu1 %v5219_v22  ;;  %v5263_v22 = vld [vmem:[#allocation2 + $0x1ac] ss:$16 sps:$4 sm:$0xff]  }
 0x3a3   :  { %4051 = vmatprep.subr.bf16.mxu1 %v5220_v23  ;;  %v5264_v23 = vld [vmem:[#allocation2 + $0x1a8] ss:$16 sps:$4 sm:$0xff]  }
 0x3a6   :  { %4053 = vmatpush1.bf16.msra.mxu1 %v5221_v24  ;;  %v5265_v24 = vld [vmem:[#allocation2 + $0x1cc] ss:$16 sps:$4 sm:$0xff]  }
 0x3a7   :  { %4055 = vmatprep.subr.bf16.mxu1 %v5222_v25  ;;  %v5266_v25 = vld [vmem:[#allocation2 + $0x1c8] ss:$16 sps:$4 sm:$0xff]  }
 0x3aa   :  { %4057 = vmatpush1.bf16.msra.mxu1 %v5223_v26  ;;  %v5267_v26 = vld [vmem:[#allocation2 + $0x1ec] ss:$16 sps:$4 sm:$0xff]  }
 0x3ab   :  { %4059 = vmatprep.subr.bf16.mxu1 %v5224_v27  ;;  %v5268_v27 = vld [vmem:[#allocation2 + $0x1e8] ss:$16 sps:$4 sm:$0xff]  }
 0x3ae   :  { %4061 = vmatpush1.bf16.msra.mxu1 %v5225_v28  ;;  %v5269_v28 = vld [vmem:[#allocation2 + $0x20c] ss:$16 sps:$4 sm:$0xff]  }
 0x3af   :  { %4063 = vmatprep.subr.bf16.mxu1 %v5226_v12 }
 0x3b2   :  { %4065 = vmatpush1.bf16.msra.mxu1 %v5227_v29 }
 0x3b3   :  { %4067 = vmatprep.subr.bf16.mxu1 %v5228_v30 }
 0x3b6   :  { %4069 = vmatpush1.bf16.msra.mxu1 %v5229_v31 }
 0x3b7   :  { %4071 = vmatprep.subr.bf16.mxu1 %v5230_v32 }
 0x3ba   :  { %4073 = vmatpush1.bf16.msra.mxu1 %v5231_v33 }
 0x3bb   :  { %4075 = vmatprep.subr.bf16.mxu1 %v5232_v34 }
 0x3be   :  { %4077 = vmatpush1.bf16.msra.mxu1 %v5233_v35 }
 0x3bf   :  { %4079 = vmatprep.subr.bf16.mxu1 %v5234_v36 }
 0x3c2   :  { %4081 = vmatpush1.bf16.msra.mxu1 %v5235_v37 }
 0x3c3   :  { %4083 = vmatprep.subr.bf16.mxu1 %v5236_v38 }
 0x454   :  { %v3318_v48 = vpop.f32.mrb[6].mxu0 }
 0x455   :  { %v3319_v50 = vpop.f32.mrb[7].mxu0 }
 0x456   :  { %v3320_v51 = vadd.f32 %v3319_v50, %v3318_v48 }
 0x458   :  { %v3353_v52 = vpop.f32.mrb[10].mxu1 }
 0x459   :  { %v3354_v19 = vpop.f32.mrb[11].mxu1 }
 0x45a   :  { %v3355_v53 = vadd.f32 %v3354_v19, %v3353_v52 }
 0x45c   :  { %v1988_v54 = vadd.f32 %v3355_v53, %v3320_v51 }
 0x45e   :  { %v1991_v55 = vmax.f32 %v1988_v54, 0.0 }
 0x460   :  { %2979 = vmatmul.mubr.msk.f32.vlgmr.msra.gmra.mrb[8].mxu0 %vm1992_vm6, %v1991_v55 }
 0x461   :  { %4213 = vmatpush1.bf16.msra.mxu0 %v5238_v56 }
 0x462   :  { %4215 = vmatprep.subr.bf16.mxu0 %v5239_v57 }
 0x465   :  { %4217 = vmatpush1.bf16.msra.mxu0 %v5240_v58  ;;  %v2151_v58 = vsub.s32 4, %v5637_v42 }
 0x466   :  { %4219 = vmatprep.subr.bf16.mxu0 %v5241_v59  ;;  %v2131_v59 = vld [vmem:[%s6538_s9] sm:$0x3f] }
 0x469   :  { %4221 = vmatpush1.bf16.msra.mxu0 %v5242_v43  ;;  %v2155_v43 = vsub.s32 5, %v5637_v42 }
 0x46a   :  { %4223 = vmatprep.subr.bf16.mxu0 %v5243_v1  ;;  %v2136_v1 = vrot.slane %v2131_v59, %v5867_v60 }
 0x46d   :  { %4225 = vmatpush1.bf16.msra.mxu0 %v5244_v2  ;;  %v2144_v2 = vrot.slane %v2131_v59, %v5870_v61 }
 0x46e   :  { %4227 = vmatprep.subr.bf16.mxu0 %v5245_v3  ;;  %v2152_v3 = vrot.slane %v2131_v59, %v2151_v58  ;;  %v5291_v58 = vld [vmem:[#allocation2 + $0x2ac] ss:$16 sps:$4 sm:$0xff]  }
 0x471   :  { %4229 = vmatpush1.bf16.msra.mxu0 %v5246_v4  ;;  %v2140_v4 = vrot.slane %v2131_v59, %v5876_v63 }
 0x472   :  { %4231 = vmatprep.subr.bf16.mxu0 %v5247_v5  ;;  %v2148_v5 = vrot.slane %v2131_v59, %v5879_v0 }
 0x475   :  { %4233 = vmatpush1.bf16.msra.mxu0 %v5248_v6  ;;  %v2156_v6 = vrot.slane %v2131_v59, %v2155_v43  ;;  %v5292_v59 = vld [vmem:[#allocation2 + $0x2a0] ss:$16 sps:$4 sm:$0xff]   ;;  %v5293_v43 = vld [vmem:[#allocation2 + $0x2a8] ss:$16 sps:$4 sm:$0xff]  }
 0x476   :  { %4235 = vmatprep.subr.bf16.mxu0 %v5249_v16 }
 0x479   :  { %4237 = vmatpush1.bf16.msra.mxu0 %v5250_v7 }
 0x47a   :  { %4239 = vmatprep.subr.bf16.mxu0 %v5251_v10 }
 0x47d   :  { %4241 = vmatpush1.bf16.msra.mxu0 %v5252_v8 }
 0x47e   :  { %4243 = vmatprep.subr.bf16.mxu0 %v5253_v11 }
 0x481   :  { %4245 = vmatpush1.bf16.msra.mxu0 %v5254_v13 }
 0x482   :  { %4247 = vmatprep.subr.bf16.mxu0 %v5255_v17 }
 0x485   :  { %4249 = vmatpush1.bf16.msra.mxu0 %v5256_v14 }
 0x486   :  { %4251 = vmatprep.subr.bf16.mxu0 %v5257_v62 }
 0x489   :  { %4253 = vmatpush1.bf16.msra.mxu0 %v5258_v9 }
 0x48a   :  { %4255 = vmatprep.subr.bf16.mxu0 %v5259_v15 }
 0x48d   :  { %4257 = vmatpush1.bf16.msra.mxu0 %v5260_v18 }
 0x48e   :  { %4259 = vmatprep.subr.bf16.mxu0 %v5261_v20 }
 0x491   :  { %4261 = vmatpush1.bf16.msra.mxu0 %v5262_v21 }
 0x492   :  { %4263 = vmatprep.subr.bf16.mxu0 %v5263_v22 }
 0x495   :  { %4265 = vmatpush1.bf16.msra.mxu0 %v5264_v23  ;;  %v5270_v23 = vld [vmem:[%s6529_s0 + $0x8] sm:$0xf] }
 0x496   :  { %4267 = vmatprep.subr.bf16.mxu0 %v5265_v24 }
 0x499   :  { %4269 = vmatpush1.bf16.msra.mxu0 %v5266_v25  ;;  %v5271_v25 = vld [vmem:[%s6529_s0] sm:$0xff] }
 0x49a   :  { %4271 = vmatprep.subr.bf16.mxu0 %v5267_v26 }
 0x49d   :  { %4273 = vmatpush1.bf16.msra.mxu0 %v5268_v27 }
 0x49e   :  { %4275 = vmatprep.subr.bf16.mxu0 %v5269_v28 }
 0x533   :  { %v2062_v12 = vpop.f32.mrb[8].mxu0 }
 0x534   :  { %v2064_v29 = vpop.f32.mrb[9].mxu0  ;;  %v2068_v30 = vsel %vm2067_vm7, %v2062_v12, inf  ;;  %v2073_v31 = vsel %vm2067_vm7, %v2062_v12, -inf }
 0x535   :  { %v2069_v32 = vsel %vm2067_vm7, %v2064_v29, inf  ;;  %v2074_v33 = vsel %vm2067_vm7, %v2064_v29, -inf }
 0x536   :  { %v2070_v34 = vmin.f32 %v2068_v30, %v2069_v32  ;;  %v2075_v35 = vmax.f32 %v2073_v31, %v2074_v33 }
 0x538   :  { %2071 = vmin.xlane.f32.xlu0 %v2070_v34 }
 0x53c   :  { %2076 = vmax.xlane.f32.xlu0 %v2075_v35 }
 0x5c5   :  { %v2072_v36 = vpop.xlane.xlu0 %2071 }
 0x5c6   :  { %v2078_v40 = vsub.f32 %v2062_v12, %v2072_v36  ;;  %v2079_v41 = vsub.f32 %v2064_v29, %v2072_v36 }
 0x5c9   :  { %v2077_v37 = vpop.xlane.xlu0 %2076 }
 0x5ca   :  { %v2080_v38 = vsub.f32 %v2077_v37, %v2072_v36  ;;  %v5272_v37 = vld [vmem:[#allocation2 + $0x200] ss:$16 sps:$4 sm:$0xff]  }
 0x5cc   :  { %v2081_v39 = vadd.f32 2.220446e-16, %v2080_v38  ;;  %v5273_v38 = vld [vmem:[#allocation2 + $0x208] ss:$16 sps:$4 sm:$0xff]  }
 0x5ce   :  { %5194 = vrcp.f32 %v2081_v39  ;;  %v5274_v39 = vld [vmem:[#allocation2 + $0x224] ss:$16 sps:$4 sm:$0xff]  }
 0x5d8   :  { %v5195_v44 = vpop.eup %5194 }
 0x5d9   :  { %v2083_v45 = vmul.f32 %v5195_v44, %v2078_v40  ;;  %v2084_v46 = vmul.f32 %v5195_v44, %v2079_v41  ;;  %v5275_v40 = vld [vmem:[#allocation2 + $0x22c] ss:$16 sps:$4 sm:$0xff]   ;;  %v5276_v41 = vld [vmem:[#allocation2 + $0x220] ss:$16 sps:$4 sm:$0xff]   ;;  %v5277_v44 = vld [vmem:[#allocation2 + $0x228] ss:$16 sps:$4 sm:$0xff]  }
 0x5db   :  { %v2980_v47 = vadd.f32 -0.5, %v2083_v45  ;;  %v2981_v48 = vadd.f32 -0.5, %v2084_v46  ;;  %v2103_v50 = vcombine.low %v2083_v45, %v2084_v46  ;;  %v5278_v45 = vld [vmem:[#allocation2 + $0x244] ss:$16 sps:$4 sm:$0xff]   ;;  %v5279_v46 = vld [vmem:[#allocation2 + $0x24c] ss:$16 sps:$4 sm:$0xff]  }
 0x5dd   :  { %v2982_v51 = vmul.f32 -30.0, %v2980_v47  ;;  %v2983_v52 = vmul.f32 -30.0, %v2981_v48  ;;  %2984 = vst.sshfl [vmem:[#allocation8] sm:$0x33 pattern:$0x76325410] %v2103_v50 }
 0x5de   :  { %v5280_v47 = vld [vmem:[#allocation2 + $0x240] ss:$16 sps:$4 sm:$0xff]   ;;  %v5281_v48 = vld [vmem:[#allocation2 + $0x248] ss:$16 sps:$4 sm:$0xff]   ;;  %v5282_v50 = vld [vmem:[#allocation2 + $0x264] ss:$16 sps:$4 sm:$0xff]  }
 0x5df   :  { %v2091_v19 = vmul.f32 1.442695, %v2982_v51  ;;  %v2093_v53 = vmul.f32 1.442695, %v2983_v52  ;;  %v5283_v51 = vld [vmem:[#allocation2 + $0x26c] ss:$16 sps:$4 sm:$0xff]  }
 0x5e0   :  { %v5284_v52 = vld [vmem:[#allocation2 + $0x260] ss:$16 sps:$4 sm:$0xff]  }
 0x5e1   :  { %5196 = vpow2.f32 %v2091_v19  ;;  %v5285_v19 = vld [vmem:[#allocation2 + $0x268] ss:$16 sps:$4 sm:$0xff]  }
 0x5e2   :  { %5198 = vpow2.f32 %v2093_v53  ;;  %v5286_v53 = vld [vmem:[#allocation2 + $0x284] ss:$16 sps:$4 sm:$0xff]  }
 0x5eb   :  { %v5197_v54 = vpop.eup %5196 }
 0x5ec   :  { %v5199_v55 = vpop.eup %5198  ;;  %v2095_v56 = vadd.f32 1.0, %v5197_v54  ;;  %v5287_v54 = vld [vmem:[#allocation2 + $0x28c] ss:$16 sps:$4 sm:$0xff]  }
 0x5ed   :  { %v2096_v57 = vadd.f32 1.0, %v5199_v55  ;;  %v5288_v55 = vld [vmem:[#allocation2 + $0x280] ss:$16 sps:$4 sm:$0xff]  }
 0x5ee   :  { %5200 = vrcp.f32 %v2095_v56  ;;  %v5289_v56 = vld [vmem:[#allocation2 + $0x288] ss:$16 sps:$4 sm:$0xff]  }
 0x5ef   :  { %5202 = vrcp.f32 %v2096_v57  ;;  %v5290_v57 = vld [vmem:[#allocation2 + $0x2a4] ss:$16 sps:$4 sm:$0xff]  }
 0x5f8   :  { %v5201_v16 = vpop.eup %5200 }
 0x5f9   :  { %v5203_v7 = vpop.eup %5202  ;;  %v2163_v10 = vmul.f32 %v5201_v16, %v2136_v1  ;;  %v2165_v8 = vmul.f32 %v5201_v16, %v2144_v2  ;;  %v2167_v11 = vmul.f32 %v5201_v16, %v2152_v3  ;;  %v5294_v1 = vld [vmem:[#allocation2 + $0x2c4] ss:$16 sps:$4 sm:$0xff]   ;;  %v5295_v2 = vld [vmem:[#allocation2 + $0x2cc] ss:$16 sps:$4 sm:$0xff]   ;;  %v5296_v3 = vld [vmem:[#allocation2 + $0x2c0] ss:$16 sps:$4 sm:$0xff]  }
 0x5fa   :  { %v2115_v13 = vcombine.low %v5201_v16, %v5203_v7  ;;  %v2164_v17 = vmul.f32 %v5203_v7, %v2140_v4  ;;  %v2166_v14 = vmul.f32 %v5203_v7, %v2148_v5  ;;  %v2168_v62 = vmul.f32 %v5203_v7, %v2156_v6  ;;  %v5297_v4 = vld [vmem:[#allocation2 + $0x2c8] ss:$16 sps:$4 sm:$0xff]   ;;  %v5298_v5 = vld [vmem:[#allocation2 + $0x2e4] ss:$16 sps:$4 sm:$0xff]   ;;  %v5299_v6 = vld [vmem:[#allocation2 + $0x2ec] ss:$16 sps:$4 sm:$0xff]  }
 0x5fb   :  { %v5300_v16 = vld [vmem:[#allocation2 + $0x2e0] ss:$16 sps:$4 sm:$0xff]   ;;  %v5301_v7 = vld [vmem:[#allocation2 + $0x2e8] ss:$16 sps:$4 sm:$0xff]  }
 0x5fc   :  { %v2122_v42 = vrot.slane %v2115_v13, %v5640_v49  ;;  %v2175_v9 = vcombine.low %v2163_v10, %v2164_v17  ;;  %v2176_v15 = vcombine.low %v2165_v8, %v2166_v14  ;;  %2985 = vst.sshfl [vmem:[#allocation9] sm:$0x33 pattern:$0x76325410] %v2115_v13  ;;  %v2192_v18 = vcombine.low %v2167_v11, %v2168_v62  ;;  %v5302_v10 = vld [vmem:[#allocation2 + $0x304] ss:$16 sps:$4 sm:$0xff]  }
 0x5fd   :  { %v5303_v8 = vld [vmem:[#allocation2 + $0x30c] ss:$16 sps:$4 sm:$0xff]   ;;  %v5304_v11 = vld [vmem:[#allocation2 + $0x300] ss:$16 sps:$4 sm:$0xff]   ;;  %v5305_v13 = vld [vmem:[#allocation2 + $0x308] ss:$16 sps:$4 sm:$0xff]  }
 0x5fe   :  { %v2125_v20 = vcombine.low %v2122_v42, %v2122_v42  ;;  %v2183_v21 = vrot.slane %v2175_v9, %v5640_v49  ;;  %v2190_v22 = vrot.slane %v2176_v15, %v5640_v49  ;;  %v2128_v24 = vmul.f32 %v5270_v23, %v2122_v42  ;;  %v5306_v17 = vld [vmem:[#allocation2 + $0x324] ss:$16 sps:$4 sm:$0xff]   ;;  %v5307_v14 = vld [vmem:[#allocation2 + $0x32c] ss:$16 sps:$4 sm:$0xff]   ;;  %v5308_v62 = vld [vmem:[#allocation2 + $0x320] ss:$16 sps:$4 sm:$0xff]  }
 0x5ff   :  { %v2199_v12 = vrot.slane %v2192_v18, %v5640_v49  ;;  %v5309_v42 = vld [vmem:[#allocation2 + $0x328] ss:$16 sps:$4 sm:$0xff]   ;;  %v5310_v9 = vld [vmem:[#allocation2 + $0x344] ss:$16 sps:$4 sm:$0xff]   ;;  %v5311_v15 = vld [vmem:[#allocation2 + $0x34c] ss:$16 sps:$4 sm:$0xff]  }
 0x600   :  { %v2127_v26 = vmul.f32 %v5271_v25, %v2125_v20  ;;  %v2191_v27 = vcombine.low %v2183_v21, %v2190_v22  ;;  %v2130_v28 = vsub.f32 %v5270_v23, %v2128_v24  ;;  %v5312_v18 = vld [vmem:[#allocation2 + $0x340] ss:$16 sps:$4 sm:$0xff]   ;;  %v5313_v20 = vld [vmem:[#allocation2 + $0x348] ss:$16 sps:$4 sm:$0xff]   ;;  %v5314_v21 = vld [vmem:[#allocation2 + $0x364] ss:$16 sps:$4 sm:$0xff]  }
 0x601   :  { %v5315_v22 = vld [vmem:[#allocation2 + $0x36c] ss:$16 sps:$4 sm:$0xff]   ;;  %v5316_v23 = vld [vmem:[#allocation2 + $0x360] ss:$16 sps:$4 sm:$0xff]   ;;  %v5317_v24 = vld [vmem:[#allocation2 + $0x368] ss:$16 sps:$4 sm:$0xff]  }
 0x602   :  { %v2129_v29 = vsub.f32 %v5271_v25, %v2127_v26  ;;  %v6247_v30 = vadd.f32 %v2199_v12, %v2130_v28  ;;  %v5318_v25 = vld [vmem:[#allocation2 + $0x384] ss:$16 sps:$4 sm:$0xff]   ;;  %v5319_v26 = vld [vmem:[#allocation2 + $0x38c] ss:$16 sps:$4 sm:$0xff]   ;;  %v5321_v28 = vld [vmem:[#allocation2 + $0x388] ss:$16 sps:$4 sm:$0xff]  }
 0x603   :  { %v5322_v12 = vld [vmem:[#allocation2 + $0x3a4] ss:$16 sps:$4 sm:$0xff]  }
 0x604   :  { %v2202_v31 = vadd.f32 %v2191_v27, %v2129_v29  ;;  %2205 = vst [vmem:[#allocation11 + $0x8] sm:$0xf] %v6247_v30  ;;  %v5320_v27 = vld [vmem:[#allocation2 + $0x380] ss:$16 sps:$4 sm:$0xff]   ;;  %v5323_v29 = vld [vmem:[#allocation2 + $0x3ac] ss:$16 sps:$4 sm:$0xff]  }
 0x606   :  { %v2237_v32 = vrot.slane %v2202_v31, %v5640_v49  ;;  %2204 = vst [vmem:[#allocation11] sm:$0xff] %v2202_v31  ;;  %v2230_v33 = vcombine.high %v2202_v31, %v2202_v31  ;;  %v5324_v31 = vld [vmem:[#allocation2 + $0x3a0] ss:$16 sps:$4 sm:$0xff]  }
 0x608   :  { %v2245_v34 = vcombine.high %v2237_v32, %v2237_v32  ;;  %v6252_v35 = vrot.slane %v2230_v33, %v5640_v49  ;;  %v5326_v33 = vld [vmem:[#allocation2 + $0x3c4] ss:$16 sps:$4 sm:$0xff]  }
 0x60a   :  { %2325 = vmatprep.mubr.f32.mxu1 %v2245_v34  ;;  %2538 = vmatprep.mubr.f32.mxu0 %v2245_v34  ;;  %v2246_v36 = vcombine.high %v6252_v35, %v6252_v35  ;;  %v5327_v34 = vld [vmem:[#allocation2 + $0x3cc] ss:$16 sps:$4 sm:$0xff]  }
 0x60b   :  { %2326 = vmatmul.mubr.f32.vlgmr.msra.gmra.mrb[12].mxu1 %v2237_v32  ;;  %2539 = vmatmul.mubr.f32.vlgmr.msra.gmra.mrb[10].mxu0 %v2237_v32  ;;  %v5325_v32 = vld [vmem:[#allocation2 + $0x3a8] ss:$16 sps:$4 sm:$0xff]  }
 0x60c   :  { %4085 = vmatpush1.bf16.msra.mxu1 %v5272_v37  ;;  %4277 = vmatpush1.bf16.msra.mxu0 %v5273_v38  ;;  %v5329_v37 = vld [vmem:[#allocation2 + $0x3c8] ss:$16 sps:$4 sm:$0xff]   ;;  %v5330_v38 = vld [vmem:[#allocation2 + $0x3e4] ss:$16 sps:$4 sm:$0xff]  }
 0x60d   :  { %2396 = vmatprep.mubr.f32.mxu1 %v2246_v36  ;;  %2609 = vmatprep.mubr.f32.mxu0 %v2246_v36  ;;  %v5328_v36 = vld [vmem:[#allocation2 + $0x3c0] ss:$16 sps:$4 sm:$0xff]  }
 0x60e   :  { %4087 = vmatprep.subr.bf16.mxu1 %v5274_v39  ;;  %4279 = vmatprep.subr.bf16.mxu0 %v5275_v40  ;;  %v5331_v39 = vld [vmem:[#allocation2 + $0x3ec] ss:$16 sps:$4 sm:$0xff]   ;;  %v6258_v40 = vrot.slane %v6247_v30, %v5640_v49  ;;  %v5337_v49 = vld [vmem:[#allocation2 + $0x408] ss:$16 sps:$4 sm:$0xff]   ;;  %v5338_v30 = vld [vmem:[#allocation2 + $0x424] ss:$16 sps:$4 sm:$0xff]  }
 0x610   :  { %4089 = vmatpush1.bf16.msra.mxu1 %v5276_v41  ;;  %4281 = vmatpush1.bf16.msra.mxu0 %v5277_v44  ;;  %v5332_v41 = vld [vmem:[#allocation2 + $0x3e0] ss:$16 sps:$4 sm:$0xff]   ;;  %v5333_v44 = vld [vmem:[#allocation2 + $0x3e8] ss:$16 sps:$4 sm:$0xff]  }
 0x611   :  { %4091 = vmatprep.subr.bf16.mxu1 %v5278_v45  ;;  %4283 = vmatprep.subr.bf16.mxu0 %v5279_v46  ;;  %v5334_v45 = vld [vmem:[#allocation2 + $0x404] ss:$16 sps:$4 sm:$0xff]   ;;  %v5335_v46 = vld [vmem:[#allocation2 + $0x40c] ss:$16 sps:$4 sm:$0xff]  }
 0x614   :  { %4093 = vmatpush1.bf16.msra.mxu1 %v5280_v47  ;;  %4285 = vmatpush1.bf16.msra.mxu0 %v5281_v48  ;;  %v2254_v47 = vcombine.high %v6258_v40, %v6258_v40  ;;  %v5336_v48 = vld [vmem:[#allocation2 + $0x400] ss:$16 sps:$4 sm:$0xff]  }
 0x615   :  { %4095 = vmatprep.subr.bf16.mxu1 %v5282_v50  ;;  %4287 = vmatprep.subr.bf16.mxu0 %v5283_v51  ;;  %v5339_v50 = vld [vmem:[#allocation2 + $0x42c] ss:$16 sps:$4 sm:$0xff]   ;;  %v5340_v51 = vld [vmem:[#allocation2 + $0x420] ss:$16 sps:$4 sm:$0xff]  }
 0x618   :  { %4097 = vmatpush1.bf16.msra.mxu1 %v5284_v52  ;;  %4289 = vmatpush1.bf16.msra.mxu0 %v5285_v19  ;;  %v5341_v52 = vld [vmem:[#allocation2 + $0x428] ss:$16 sps:$4 sm:$0xff]   ;;  %v5342_v19 = vld [vmem:[#allocation2 + $0x444] ss:$16 sps:$4 sm:$0xff]  }
 0x619   :  { %4099 = vmatprep.subr.bf16.mxu1 %v5286_v53  ;;  %4291 = vmatprep.subr.bf16.mxu0 %v5287_v54  ;;  %v5343_v53 = vld [vmem:[#allocation2 + $0x44c] ss:$16 sps:$4 sm:$0xff]   ;;  %v5344_v54 = vld [vmem:[#allocation2 + $0x440] ss:$16 sps:$4 sm:$0xff]  }
 0x61c   :  { %4101 = vmatpush1.bf16.msra.mxu1 %v5288_v55  ;;  %4293 = vmatpush1.bf16.msra.mxu0 %v5289_v56  ;;  %v5346_v55 = vld [vmem:[#allocation2 + $0x464] ss:$16 sps:$4 sm:$0xff]   ;;  %v5347_v56 = vld [vmem:[#allocation2 + $0x46c] ss:$16 sps:$4 sm:$0xff]  }
 0x61d   :  { %4103 = vmatprep.subr.bf16.mxu1 %v5290_v57  ;;  %4295 = vmatprep.subr.bf16.mxu0 %v5291_v58  ;;  %v5348_v57 = vld [vmem:[#allocation2 + $0x460] ss:$16 sps:$4 sm:$0xff]   ;;  %v5349_v58 = vld [vmem:[#allocation2 + $0x468] ss:$16 sps:$4 sm:$0xff]  }
 0x620   :  { %4105 = vmatpush1.bf16.msra.mxu1 %v5292_v59  ;;  %4297 = vmatpush1.bf16.msra.mxu0 %v5293_v43  ;;  %v5350_v59 = vld [vmem:[#allocation2 + $0x484] ss:$16 sps:$4 sm:$0xff]   ;;  %v5351_v43 = vld [vmem:[#allocation2 + $0x48c] ss:$16 sps:$4 sm:$0xff]  }
 0x621   :  { %4107 = vmatprep.subr.bf16.mxu1 %v5294_v1  ;;  %4299 = vmatprep.subr.bf16.mxu0 %v5295_v2  ;;  %v5352_v1 = vld [vmem:[#allocation2 + $0x480] ss:$16 sps:$4 sm:$0xff]   ;;  %v5353_v2 = vld [vmem:[#allocation2 + $0x488] ss:$16 sps:$4 sm:$0xff]  }
 0x624   :  { %4109 = vmatpush1.bf16.msra.mxu1 %v5296_v3  ;;  %4301 = vmatpush1.bf16.msra.mxu0 %v5297_v4  ;;  %v5354_v3 = vld [vmem:[#allocation2 + $0x4a4] ss:$16 sps:$4 sm:$0xff]   ;;  %v5355_v4 = vld [vmem:[#allocation2 + $0x4ac] ss:$16 sps:$4 sm:$0xff]  }
 0x625   :  { %4111 = vmatprep.subr.bf16.mxu1 %v5298_v5  ;;  %4303 = vmatprep.subr.bf16.mxu0 %v5299_v6  ;;  %v5356_v5 = vld [vmem:[#allocation2 + $0x4a0] ss:$16 sps:$4 sm:$0xff]   ;;  %v5357_v6 = vld [vmem:[#allocation2 + $0x4a8] ss:$16 sps:$4 sm:$0xff]  }
 0x628   :  { %4113 = vmatpush1.bf16.msra.mxu1 %v5300_v16  ;;  %4305 = vmatpush1.bf16.msra.mxu0 %v5301_v7  ;;  %v5358_v16 = vld [vmem:[#allocation2 + $0x4c4] ss:$16 sps:$4 sm:$0xff]   ;;  %v5359_v7 = vld [vmem:[#allocation2 + $0x4cc] ss:$16 sps:$4 sm:$0xff]  }
 0x629   :  { %4115 = vmatprep.subr.bf16.mxu1 %v5302_v10  ;;  %4307 = vmatprep.subr.bf16.mxu0 %v5303_v8  ;;  %v5360_v10 = vld [vmem:[#allocation2 + $0x4c0] ss:$16 sps:$4 sm:$0xff]   ;;  %v5361_v8 = vld [vmem:[#allocation2 + $0x4c8] ss:$16 sps:$4 sm:$0xff]  }
 0x62c   :  { %4117 = vmatpush1.bf16.msra.mxu1 %v5304_v11  ;;  %4309 = vmatpush1.bf16.msra.mxu0 %v5305_v13  ;;  %v5362_v11 = vld [vmem:[#allocation2 + $0x4e4] ss:$16 sps:$4 sm:$0xff]   ;;  %v5363_v13 = vld [vmem:[#allocation2 + $0x4ec] ss:$16 sps:$4 sm:$0xff]  }
 0x62d   :  { %4119 = vmatprep.subr.bf16.mxu1 %v5306_v17  ;;  %4311 = vmatprep.subr.bf16.mxu0 %v5307_v14  ;;  %v5364_v17 = vld [vmem:[#allocation2 + $0x4e0] ss:$16 sps:$4 sm:$0xff]   ;;  %v5365_v14 = vld [vmem:[#allocation2 + $0x4e8] ss:$16 sps:$4 sm:$0xff]  }
 0x630   :  { %4121 = vmatpush1.bf16.msra.mxu1 %v5308_v62  ;;  %4313 = vmatpush1.bf16.msra.mxu0 %v5309_v42  ;;  %v5366_v62 = vld [vmem:[#allocation2 + $0x504] ss:$16 sps:$4 sm:$0xff]   ;;  %v5367_v42 = vld [vmem:[#allocation2 + $0x50c] ss:$16 sps:$4 sm:$0xff]  }
 0x631   :  { %4123 = vmatprep.subr.bf16.mxu1 %v5310_v9  ;;  %4315 = vmatprep.subr.bf16.mxu0 %v5311_v15  ;;  %v5368_v9 = vld [vmem:[#allocation2 + $0x500] ss:$16 sps:$4 sm:$0xff]   ;;  %v5369_v15 = vld [vmem:[#allocation2 + $0x508] ss:$16 sps:$4 sm:$0xff]  }
 0x634   :  { %4125 = vmatpush1.bf16.msra.mxu1 %v5312_v18  ;;  %4317 = vmatpush1.bf16.msra.mxu0 %v5313_v20  ;;  %v5370_v18 = vld [vmem:[#allocation2 + $0x524] ss:$16 sps:$4 sm:$0xff]   ;;  %v5371_v20 = vld [vmem:[#allocation2 + $0x52c] ss:$16 sps:$4 sm:$0xff]  }
 0x635   :  { %4127 = vmatprep.subr.bf16.mxu1 %v5314_v21  ;;  %4319 = vmatprep.subr.bf16.mxu0 %v5315_v22  ;;  %v5372_v21 = vld [vmem:[#allocation2 + $0x520] ss:$16 sps:$4 sm:$0xff]   ;;  %v5373_v22 = vld [vmem:[#allocation2 + $0x528] ss:$16 sps:$4 sm:$0xff]  }
 0x638   :  { %4129 = vmatpush1.bf16.msra.mxu1 %v5316_v23  ;;  %4321 = vmatpush1.bf16.msra.mxu0 %v5317_v24  ;;  %v5374_v23 = vld [vmem:[#allocation2 + $0x544] ss:$16 sps:$4 sm:$0xff]   ;;  %v5375_v24 = vld [vmem:[#allocation2 + $0x54c] ss:$16 sps:$4 sm:$0xff]  }
 0x639   :  { %4131 = vmatprep.subr.bf16.mxu1 %v5318_v25  ;;  %4323 = vmatprep.subr.bf16.mxu0 %v5319_v26  ;;  %v5376_v25 = vld [vmem:[#allocation2 + $0x540] ss:$16 sps:$4 sm:$0xff]   ;;  %v5377_v26 = vld [vmem:[#allocation2 + $0x548] ss:$16 sps:$4 sm:$0xff]  }
 0x63c   :  { %4133 = vmatpush1.bf16.msra.mxu1 %v5320_v27  ;;  %4325 = vmatpush1.bf16.msra.mxu0 %v5321_v28  ;;  %v5378_v27 = vld [vmem:[#allocation2 + $0x564] ss:$16 sps:$4 sm:$0xff]   ;;  %v5379_v28 = vld [vmem:[#allocation2 + $0x56c] ss:$16 sps:$4 sm:$0xff]  }
 0x63d   :  { %4135 = vmatprep.subr.bf16.mxu1 %v5322_v12  ;;  %4327 = vmatprep.subr.bf16.mxu0 %v5323_v29  ;;  %v5380_v12 = vld [vmem:[#allocation2 + $0x560] ss:$16 sps:$4 sm:$0xff]   ;;  %v5381_v29 = vld [vmem:[#allocation2 + $0x568] ss:$16 sps:$4 sm:$0xff]  }
 0x640   :  { %4137 = vmatpush1.bf16.msra.mxu1 %v5324_v31  ;;  %4329 = vmatpush1.bf16.msra.mxu0 %v5325_v32  ;;  %v5382_v31 = vld [vmem:[#allocation2 + $0x584] ss:$16 sps:$4 sm:$0xff]   ;;  %v5383_v32 = vld [vmem:[#allocation2 + $0x58c] ss:$16 sps:$4 sm:$0xff]  }
 0x641   :  { %4139 = vmatprep.subr.bf16.mxu1 %v5326_v33  ;;  %4331 = vmatprep.subr.bf16.mxu0 %v5327_v34  ;;  %v5384_v33 = vld [vmem:[#allocation2 + $0x580] ss:$16 sps:$4 sm:$0xff]   ;;  %v5385_v34 = vld [vmem:[#allocation2 + $0x588] ss:$16 sps:$4 sm:$0xff]  }
 0x644   :  { %4141 = vmatpush1.bf16.msra.mxu1 %v5328_v36  ;;  %4333 = vmatpush1.bf16.msra.mxu0 %v5329_v37  ;;  %v5386_v36 = vld [vmem:[#allocation2 + $0x5a4] ss:$16 sps:$4 sm:$0xff]   ;;  %v5387_v37 = vld [vmem:[#allocation2 + $0x5ac] ss:$16 sps:$4 sm:$0xff]  }
 0x645   :  { %4143 = vmatprep.subr.bf16.mxu1 %v5330_v38  ;;  %4335 = vmatprep.subr.bf16.mxu0 %v5331_v39  ;;  %v5388_v38 = vld [vmem:[#allocation2 + $0x5a0] ss:$16 sps:$4 sm:$0xff]   ;;  %v5389_v39 = vld [vmem:[#allocation2 + $0x5a8] ss:$16 sps:$4 sm:$0xff]  }
 0x648   :  { %4145 = vmatpush1.bf16.msra.mxu1 %v5332_v41  ;;  %4337 = vmatpush1.bf16.msra.mxu0 %v5333_v44  ;;  %v5390_v41 = vld [vmem:[#allocation2 + $0x5c4] ss:$16 sps:$4 sm:$0xff]   ;;  %v5391_v44 = vld [vmem:[#allocation2 + $0x5cc] ss:$16 sps:$4 sm:$0xff]  }
 0x649   :  { %4147 = vmatprep.subr.bf16.mxu1 %v5334_v45  ;;  %4339 = vmatprep.subr.bf16.mxu0 %v5335_v46  ;;  %v2707_v45 = vld [vmem:[%s6532_s3 + $0x80] sm:$0xff]  ;;  %v2708_v46 = vld [vmem:[%s6532_s3 + $0x88] sm:$0xff] }
 0x64b   :  { %2397 = vmatmul.mubr.f32.vlgmr.msra.gmra.mrb[12].mxu1 %v6252_v35  ;;  %2610 = vmatmul.mubr.f32.vlgmr.msra.gmra.mrb[10].mxu0 %v6252_v35  ;;  %v5345_v35 = vld [vmem:[#allocation2 + $0x448] ss:$16 sps:$4 sm:$0xff]  }
 0x64c   :  { %4149 = vmatpush1.bf16.msra.mxu1 %v5336_v48  ;;  %2467 = vmatprep.mubr.f32.mxu1 %v2254_v47  ;;  %v2740_v48 = vld [vmem:[%s6532_s3 + $0x188] sm:$0xff] }
 0x64d   :  { %4341 = vmatpush1.bf16.msra.mxu0 %v5337_v49  ;;  %2680 = vmatprep.mubr.f32.mxu0 %v2254_v47  ;;  %v2739_v47 = vld [vmem:[%s6532_s3 + $0x180] sm:$0xff] }
 0x64e   :  { %4151 = vmatprep.subr.bf16.mxu1 %v5338_v30  ;;  %4343 = vmatprep.subr.bf16.mxu0 %v5339_v50  ;;  %v5392_v49 = vld [vmem:[#allocation2 + $0x5c0] ss:$16 sps:$4 sm:$0xff]   ;;  %v5393_v30 = vld [vmem:[#allocation2 + $0x5c8] ss:$16 sps:$4 sm:$0xff]   ;;  %v5394_v50 = vld [vmem:[#allocation2 + $0x5e4] ss:$16 sps:$4 sm:$0xff]  }
 0x650   :  { %4153 = vmatpush1.bf16.msra.mxu1 %v5340_v51  ;;  %v4402_v51 = vpack.c.bf16 %v2708_v46, %v2707_v45  ;;  %v2700_v45 = vld [vmem:[%s6532_s3 + $0x48] sm:$0xff]  ;;  %v2731_v46 = vld [vmem:[%s6532_s3 + $0x140] sm:$0xff] }
 0x651   :  { %4345 = vmatpush1.bf16.msra.mxu0 %v5341_v52  ;;  %4155 = vmatprep.subr.bf16.mxu1 %v5342_v19  ;;  %v2691_v52 = vld [vmem:[%s6532_s3] sm:$0xff]  ;;  %v2692_v19 = vld [vmem:[%s6532_s3 + $0x8] sm:$0xff] }
 0x652   :  { %4347 = vmatprep.subr.bf16.mxu0 %v5343_v53  ;;  %v2723_v53 = vld [vmem:[%s6532_s3 + $0x100] sm:$0xff] }
 0x654   :  { %4157 = vmatpush1.bf16.msra.mxu1 %v5344_v54  ;;  %v5395_v54 = vld [vmem:[#allocation2 + $0x5ec] ss:$16 sps:$4 sm:$0xff]  }
 0x655   :  { %4349 = vmatpush1.bf16.msra.mxu0 %v5345_v35  ;;  %4159 = vmatprep.subr.bf16.mxu1 %v5346_v55  ;;  %v4434_v35 = vpack.c.bf16 %v2740_v48, %v2739_v47  ;;  %v2724_v55 = vld [vmem:[%s6532_s3 + $0x108] sm:$0xff] }
 0x656   :  { %4351 = vmatprep.subr.bf16.mxu0 %v5347_v56  ;;  %v2709_v56 = vld [vmem:[%s6532_s3 + $0x90] sm:$0xff]  ;;  %v2732_v48 = vld [vmem:[%s6532_s3 + $0x148] sm:$0xff] }
 0x658   :  { %4161 = vmatpush1.bf16.msra.mxu1 %v5348_v57  ;;  %v2710_v57 = vld [vmem:[%s6532_s3 + $0x98] sm:$0xff] }
 0x659   :  { %4353 = vmatpush1.bf16.msra.mxu0 %v5349_v58  ;;  %4163 = vmatprep.subr.bf16.mxu1 %v5350_v59  ;;  %v2741_v58 = vld [vmem:[%s6532_s3 + $0x190] sm:$0xff]  ;;  %v2742_v59 = vld [vmem:[%s6532_s3 + $0x198] sm:$0xff] }
 0x65a   :  { %4355 = vmatprep.subr.bf16.mxu0 %v5351_v43  ;;  %v5396_v43 = vld [vmem:[#allocation2 + $0x5e0] ss:$16 sps:$4 sm:$0xff]  }
 0x65c   :  { %4165 = vmatpush1.bf16.msra.mxu1 %v5352_v1  ;;  %v4404_v1 = vpack.c.bf16 %v2692_v19, %v2691_v52  ;;  %v4452_v19 = vpack.c.bf16 %v2732_v48, %v2731_v46 }
 0x65d   :  { %4357 = vmatpush1.bf16.msra.mxu0 %v5353_v2  ;;  %4167 = vmatprep.subr.bf16.mxu1 %v5354_v3  ;;  %v5397_v2 = vld [vmem:[#allocation2 + $0x5e8] ss:$16 sps:$4 sm:$0xff]   ;;  %v4436_v3 = vpack.c.bf16 %v2724_v55, %v2723_v53  ;;  %v2733_v55 = vld [vmem:[%s6532_s3 + $0x150] sm:$0xff] }
 0x65e   :  { %4359 = vmatprep.subr.bf16.mxu0 %v5355_v4  ;;  %v4406_v4 = vpack.c.bf16 %v2710_v57, %v2709_v56  ;;  %v2734_v57 = vld [vmem:[%s6532_s3 + $0x158] sm:$0xff] }
 0x660   :  { %4169 = vmatpush1.bf16.msra.mxu1 %v5356_v5  ;;  %v2693_v5 = vld [vmem:[%s6532_s3 + $0x10] sm:$0xff] }
 0x661   :  { %4361 = vmatpush1.bf16.msra.mxu0 %v5357_v6  ;;  %4171 = vmatprep.subr.bf16.mxu1 %v5358_v16  ;;  %v2694_v6 = vld [vmem:[%s6532_s3 + $0x18] sm:$0xff]  ;;  %v2725_v16 = vld [vmem:[%s6532_s3 + $0x110] sm:$0xff] }
 0x662   :  { %4363 = vmatprep.subr.bf16.mxu0 %v5359_v7  ;;  %v4438_v7 = vpack.c.bf16 %v2742_v59, %v2741_v58  ;;  %v2719_v58 = vld [vmem:[%s6532_s3 + $0xe0] sm:$0xff]  ;;  %v2720_v59 = vld [vmem:[%s6532_s3 + $0xe8] sm:$0xff] }
 0x664   :  { %4173 = vmatpush1.bf16.msra.mxu1 %v5360_v10  ;;  %v2726_v10 = vld [vmem:[%s6532_s3 + $0x118] sm:$0xff] }
 0x665   :  { %4365 = vmatpush1.bf16.msra.mxu0 %v5361_v8  ;;  %4175 = vmatprep.subr.bf16.mxu1 %v5362_v11  ;;  %v2711_v8 = vld [vmem:[%s6532_s3 + $0xa0] sm:$0xff]  ;;  %v2712_v11 = vld [vmem:[%s6532_s3 + $0xa8] sm:$0xff] }
 0x666   :  { %4367 = vmatprep.subr.bf16.mxu0 %v5363_v13  ;;  %v2743_v13 = vld [vmem:[%s6532_s3 + $0x1a0] sm:$0xff] }
 0x668   :  { %4177 = vmatpush1.bf16.msra.mxu1 %v5364_v17  ;;  %v2744_v17 = vld [vmem:[%s6532_s3 + $0x1a8] sm:$0xff] }
 0x669   :  { %4369 = vmatpush1.bf16.msra.mxu0 %v5365_v14  ;;  %4179 = vmatprep.subr.bf16.mxu1 %v5366_v62  ;;  %v4408_v14 = vpack.c.bf16 %v2694_v6, %v2693_v5  ;;  %v4440_v62 = vpack.c.bf16 %v2726_v10, %v2725_v16  ;;  %v2703_v6 = vld [vmem:[%s6532_s3 + $0x60] sm:$0xff]  ;;  %v2704_v16 = vld [vmem:[%s6532_s3 + $0x68] sm:$0xff] }
 0x66a   :  { %4371 = vmatprep.subr.bf16.mxu0 %v5367_v42  ;;  %v4410_v42 = vpack.c.bf16 %v2712_v11, %v2711_v8  ;;  %v4428_v10 = vpack.c.bf16 %v2704_v16, %v2703_v6  ;;  %v2736_v8 = vld [vmem:[%s6532_s3 + $0x168] sm:$0xff] }
 0x66c   :  { %4181 = vmatpush1.bf16.msra.mxu1 %v5368_v9  ;;  %v2695_v9 = vld [vmem:[%s6532_s3 + $0x20] sm:$0xff] }
 0x66d   :  { %4373 = vmatpush1.bf16.msra.mxu0 %v5369_v15  ;;  %4183 = vmatprep.subr.bf16.mxu1 %v5370_v18  ;;  %v2696_v15 = vld [vmem:[%s6532_s3 + $0x28] sm:$0xff]  ;;  %v2727_v18 = vld [vmem:[%s6532_s3 + $0x120] sm:$0xff] }
 0x66e   :  { %4375 = vmatprep.subr.bf16.mxu0 %v5371_v20  ;;  %v2728_v20 = vld [vmem:[%s6532_s3 + $0x128] sm:$0xff] }
 0x670   :  { %4185 = vmatpush1.bf16.msra.mxu1 %v5372_v21  ;;  %v2713_v21 = vld [vmem:[%s6532_s3 + $0xb0] sm:$0xff] }
 0x671   :  { %4377 = vmatpush1.bf16.msra.mxu0 %v5373_v22  ;;  %4187 = vmatprep.subr.bf16.mxu1 %v5374_v23  ;;  %v2714_v22 = vld [vmem:[%s6532_s3 + $0xb8] sm:$0xff]  ;;  %v2745_v23 = vld [vmem:[%s6532_s3 + $0x1b0] sm:$0xff] }
 0x672   :  { %4379 = vmatprep.subr.bf16.mxu0 %v5375_v24  ;;  %v2746_v24 = vld [vmem:[%s6532_s3 + $0x1b8] sm:$0xff] }
 0x674   :  { %4189 = vmatpush1.bf16.msra.mxu1 %v5376_v25  ;;  %v4412_v25 = vpack.c.bf16 %v2696_v15, %v2695_v9  ;;  %v2705_v9 = vld [vmem:[%s6532_s3 + $0x70] sm:$0xff]  ;;  %v2706_v15 = vld [vmem:[%s6532_s3 + $0x78] sm:$0xff] }
 0x675   :  { %4381 = vmatpush1.bf16.msra.mxu0 %v5377_v26  ;;  %4191 = vmatprep.subr.bf16.mxu1 %v5378_v27  ;;  %v4444_v26 = vpack.c.bf16 %v2728_v20, %v2727_v18  ;;  %v4414_v27 = vpack.c.bf16 %v2714_v22, %v2713_v21  ;;  %v2737_v20 = vld [vmem:[%s6532_s3 + $0x170] sm:$0xff]  ;;  %v2738_v21 = vld [vmem:[%s6532_s3 + $0x178] sm:$0xff] }
 0x676   :  { %4383 = vmatprep.subr.bf16.mxu0 %v5379_v28  ;;  %v2697_v28 = vld [vmem:[%s6532_s3 + $0x30] sm:$0xff]  ;;  %v4464_v22 = vpack.c.bf16 %v2738_v21, %v2737_v20 }
 0x678   :  { %4193 = vmatpush1.bf16.msra.mxu1 %v5380_v12  ;;  %v2698_v12 = vld [vmem:[%s6532_s3 + $0x38] sm:$0xff] }
 0x679   :  { %4385 = vmatpush1.bf16.msra.mxu0 %v5381_v29  ;;  %4195 = vmatprep.subr.bf16.mxu1 %v5382_v31  ;;  %v2729_v29 = vld [vmem:[%s6532_s3 + $0x130] sm:$0xff]  ;;  %v4446_v31 = vpack.c.bf16 %v2746_v24, %v2745_v23  ;;  %v2206_v23 = vld [vmem:[%s6531_s2] sm:$0xf]  ;;  %s5545_s2 = smov [#allocation9]  }
 0x67a   :  { %4387 = vmatprep.subr.bf16.mxu0 %v5383_v32  ;;  %v2730_v32 = vld [vmem:[%s6532_s3 + $0x138] sm:$0xff]  ;;  %v2211_v24 = vrot.slane %v2206_v23, %v5867_v60 }
 0x67c   :  { %4197 = vmatpush1.bf16.msra.mxu1 %v5384_v33  ;;  %v2715_v33 = vld [vmem:[%s6532_s3 + $0xc0] sm:$0xff] }
 0x67d   :  { %4389 = vmatpush1.bf16.msra.mxu0 %v5385_v34  ;;  %4199 = vmatprep.subr.bf16.mxu1 %v5386_v36  ;;  %v2716_v34 = vld [vmem:[%s6532_s3 + $0xc8] sm:$0xff]  ;;  %v2747_v36 = vld [vmem:[%s6532_s3 + $0x1c0] sm:$0xff] }
 0x67e   :  { %4391 = vmatprep.subr.bf16.mxu0 %v5387_v37  ;;  %v2748_v37 = vld [vmem:[%s6532_s3 + $0x1c8] sm:$0xff] }
 0x67f   :  { %v4450_v47 = vpack.c.bf16 %v2748_v37, %v2747_v36 }
 0x680   :  { %4201 = vmatpush1.bf16.msra.mxu1 %v5388_v38  ;;  %v4416_v38 = vpack.c.bf16 %v2698_v12, %v2697_v28 }
 0x681   :  { %4393 = vmatpush1.bf16.msra.mxu0 %v5389_v39  ;;  %4203 = vmatprep.subr.bf16.mxu1 %v5390_v41  ;;  %v4448_v39 = vpack.c.bf16 %v2730_v32, %v2729_v29  ;;  %v4418_v41 = vpack.c.bf16 %v2716_v34, %v2715_v33 }
 0x682   :  { %4395 = vmatprep.subr.bf16.mxu0 %v5391_v44  ;;  %v2699_v44 = vld [vmem:[%s6532_s3 + $0x40] sm:$0xff] }
 0x683   :  { %v4420_v52 = vpack.c.bf16 %v2700_v45, %v2699_v44 }
 0x684   :  { %4205 = vmatpush1.bf16.msra.mxu1 %v5392_v49  ;;  %v2717_v49 = vld [vmem:[%s6532_s3 + $0xd0] sm:$0xff] }
 0x685   :  { %4397 = vmatpush1.bf16.msra.mxu0 %v5393_v30  ;;  %4207 = vmatprep.subr.bf16.mxu1 %v5394_v50  ;;  %v2718_v30 = vld [vmem:[%s6532_s3 + $0xd8] sm:$0xff]  ;;  %v2749_v50 = vld [vmem:[%s6532_s3 + $0x1d0] sm:$0xff] }
 0x686   :  { %4399 = vmatprep.subr.bf16.mxu0 %v5395_v54  ;;  %v4422_v53 = vpack.c.bf16 %v2718_v30, %v2717_v49  ;;  %v2701_v54 = vld [vmem:[%s6532_s3 + $0x50] sm:$0xff] }
 0x688   :  { %4209 = vmatpush1.bf16.msra.mxu1 %v5396_v43  ;;  %v2751_v43 = vld [vmem:[%s6532_s3 + $0x1e0] sm:$0xff] }
 0x689   :  { %4401 = vmatpush1.bf16.msra.mxu0 %v5397_v2  ;;  %4403 = vmatprep.subr.bf16.mxu1 %v4402_v51  ;;  %v2750_v51 = vld [vmem:[%s6532_s3 + $0x1d8] sm:$0xff] }
 0x68a   :  { %4435 = vmatprep.subr.bf16.mxu0 %v4434_v35  ;;  %v2702_v35 = vld [vmem:[%s6532_s3 + $0x58] sm:$0xff]  ;;  %v4454_v56 = vpack.c.bf16 %v2750_v51, %v2749_v50 }
 0x68b   :  { %2468 = vmatmul.mubr.f32.vlgmr.msra.gmra.mrb[12].mxu1 %v6258_v40  ;;  %v4424_v2 = vpack.c.bf16 %v2702_v35, %v2701_v54 }
 0x68c   :  { %2681 = vmatmul.mubr.f32.vlgmr.msra.gmra.mrb[10].mxu0 %v6258_v40  ;;  %4405 = vmatpush3.bf16.msra.mxu1 %v4404_v1  ;;  %v4442_v40 = vpack.c.bf16 %v2744_v17, %v2743_v13  ;;  %v2752_v1 = vld [vmem:[%s6532_s3 + $0x1e8] sm:$0xff]  ;;  %v2721_v13 = vld [vmem:[%s6532_s3 + $0xf0] sm:$0xff]  ;;  %v2722_v17 = vld [vmem:[%s6532_s3 + $0xf8] sm:$0xff] }
 0x68d   :  { %4437 = vmatpush3.bf16.msra.mxu0 %v4436_v3  ;;  %4407 = vmatprep.subr.bf16.mxu1 %v4406_v4  ;;  %v4456_v3 = vpack.c.bf16 %v2734_v57, %v2733_v55  ;;  %v4426_v4 = vpack.c.bf16 %v2720_v59, %v2719_v58  ;;  %v4458_v5 = vpack.c.bf16 %v2752_v1, %v2751_v43 }
 0x68e   :  { %4439 = vmatprep.subr.bf16.mxu0 %v4438_v7  ;;  %v2735_v7 = vld [vmem:[%s6532_s3 + $0x160] sm:$0xff] }
 0x68f   :  { %v4460_v11 = vpack.c.bf16 %v2736_v8, %v2735_v7 }
 0x690   :  { %4409 = vmatpush3.bf16.msra.mxu1 %v4408_v14  ;;  %v2753_v14 = vld [vmem:[%s6532_s3 + $0x1f0] sm:$0xff] }
 0x691   :  { %4441 = vmatpush3.bf16.msra.mxu0 %v4440_v62  ;;  %4411 = vmatprep.subr.bf16.mxu1 %v4410_v42  ;;  %v4430_v62 = vpack.c.bf16 %v2722_v17, %v2721_v13  ;;  %v2754_v42 = vld [vmem:[%s6532_s3 + $0x1f8] sm:$0xff]  ;;  %s2939_s3 = sshll.u32 %s5545_s2, 4  ;;  %s2940_s3 = int_to_ptr.vmem [resolvable:$true] %s2939_s3 }
 0x692   :  { %4443 = vmatprep.subr.bf16.mxu0 %v4442_v40  ;;  %v4462_v18 = vpack.c.bf16 %v2754_v42, %v2753_v14  ;;  %v4432_v40 = vpack.c.bf16 %v2706_v15, %v2705_v9  ;;  %s5421_s27 = scalar_lea.vmem %s2940_s3, 64  ;;  %p5426_p9 = scmp.lt.s32.totalorder %s2940_s3, %s2940_s3 }
 0x693   :  { %p5422_p8 = scmp.ne.s32.totalorder %s2940_s3, %s5421_s27  ;;  %p5427_p10 = scmp.lt.s32.totalorder %s5421_s27, %s5421_s27 }
 0x694   :  { %4413 = vmatpush3.bf16.msra.mxu1 %v4412_v25  ;;  %v2219_v25 = vrot.slane %v2206_v23, %v5870_v61 }
 0x695   :  { %4445 = vmatpush3.bf16.msra.mxu0 %v4444_v26  ;;  %4415 = vmatprep.subr.bf16.mxu1 %v4414_v27  ;;  %v2215_v26 = vrot.slane %v2206_v23, %v5876_v63  ;;  %v2223_v27 = vrot.slane %v2206_v23, %v5879_v0  ;;  %p5428_p11 = por %p5427_p10, %p5426_p9 }
 0x696   :  { %4447 = vmatprep.subr.bf16.mxu0 %v4446_v31 }
 0x697   :  { %p5429_p12 = pnand %p5428_p11, %p5422_p8 }
 0x698   :  { %4417 = vmatpush3.bf16.msra.mxu1 %v4416_v38 }
 0x699   :  { %4449 = vmatpush3.bf16.msra.mxu0 %v4448_v39  ;;  %4419 = vmatprep.subr.bf16.mxu1 %v4418_v41 }
 0x69a   :  { %4451 = vmatprep.subr.bf16.mxu0 %v4450_v47 }
 0x69c   :  { %4421 = vmatpush3.bf16.msra.mxu1 %v4420_v52 }
 0x69d   :  { %4453 = vmatpush3.bf16.msra.mxu0 %v4452_v19  ;;  %4423 = vmatprep.subr.bf16.mxu1 %v4422_v53 }
 0x69e   :  { %4455 = vmatprep.subr.bf16.mxu0 %v4454_v56 }
 0x6a0   :  { %4425 = vmatpush3.bf16.msra.mxu1 %v4424_v2 }
 0x6a1   :  { %4457 = vmatpush3.bf16.msra.mxu0 %v4456_v3  ;;  %4427 = vmatprep.subr.bf16.mxu1 %v4426_v4 }
 0x6a2   :  { %4459 = vmatprep.subr.bf16.mxu0 %v4458_v5 }
 0x6a4   :  { %4429 = vmatpush3.bf16.msra.mxu1 %v4428_v10 }
 0x6a5   :  { %4461 = vmatpush3.bf16.msra.mxu0 %v4460_v11  ;;  %4431 = vmatprep.subr.bf16.mxu1 %v4430_v62 }
 0x6a6   :  { %4463 = vmatprep.subr.bf16.mxu0 %v4462_v18 }
 0x6a8   :  { %4433 = vmatpush3.bf16.msra.mxu1 %v4432_v40 }
 0x6a9   :  { %4465 = vmatpush3.bf16.msra.mxu0 %v4464_v22 }
 0x75e   :  { %v2469_v28 = vpop.f32.mrb[12].mxu1 }
 0x75f   :  { %v4470_v12 = vadd.f32 %v2469_v28, %v2211_v24  ;;  %v2682_v29 = vpop.f32.mrb[10].mxu0  ;;  %v2471_v31 = vpop.f32.mrb[13].mxu1 }
 0x760   :  { %v4472_v32 = vadd.f32 %v2682_v29, %v2219_v25  ;;  %v4471_v33 = vadd.f32 %v2471_v31, %v2215_v26  ;;  %v2684_v34 = vpop.f32.mrb[11].mxu0 }
 0x761   :  { %v4473_v36 = vadd.f32 %v2684_v34, %v2223_v27  ;;  %v2687_v38 = vmax.f32 %v4470_v12, 0.0 }
 0x762   :  { %v2688_v37 = vmax.f32 %v4471_v33, 0.0  ;;  %v2689_v41 = vmax.f32 %v4472_v32, 0.0 }
 0x763   :  { %v2690_v39 = vmax.f32 %v4473_v36, 0.0 }
 0x764   :  { %2826 = vmatprep.mubr.f32.mxu1 %v2688_v37 }
 0x765   :  { %2896 = vmatprep.mubr.f32.mxu0 %v2690_v39  ;;  %2827 = vmatmul.mubr.f32.vlgmr.msra.gmra.mrb[14].mxu1 %v2687_v38 }
 0x766   :  { %2897 = vmatmul.mubr.f32.vlgmr.msra.gmra.mrb[12].mxu0 %v2689_v41 }
 0x767   :  { %5432 = shalt.err (!%p5429_p12)
}
 0x768   :  { %s5433_s29 = scalar_lea.hbm %s6542_s13, 64 }
 0x769   :  { %p5434_p13 = scmp.ne.s32.totalorder %s6542_s13, %s5433_s29  ;;  %p5437_p0 = scmp.lt.u32.totalorder %s5433_s29, %s6542_s13 }
 0x76b   :  { %p5439_p1 = pnand %p5437_p0, %p5434_p13 }
 0x76d   :  { %5442 = shalt.err (!%p5439_p1)
}
 0x76e   :  { %2942 = dma.vmem_to_hbm [thread:$0]  %s2940_s3, 64, %s6542_s13, [#allocation10]  }
 0x76f   :  { %s5546_s18 = smov [#allocation5]  }
 0x770   :  { %s2909_s5 = sshll.u32 %s5546_s18, 4  ;;  %s2910_s5 = int_to_ptr.vmem [resolvable:$true] %s2909_s5 }
 0x771   :  { %s5443_s19 = scalar_lea.vmem %s2910_s5, 32  ;;  %p5448_p3 = scmp.lt.s32.totalorder %s2910_s5, %s2910_s5 }
 0x772   :  { %p5444_p2 = scmp.ne.s32.totalorder %s2910_s5, %s5443_s19  ;;  %p5449_p4 = scmp.lt.s32.totalorder %s5443_s19, %s5443_s19 }
 0x774   :  { %p5450_p5 = por %p5449_p4, %p5448_p3 }
 0x776   :  { %p5451_p6 = pnand %p5450_p5, %p5444_p2 }
 0x778   :  { %5454 = shalt.err (!%p5451_p6)
}
 0x779   :  { %s5455_s21 = scalar_lea.hbm %s6539_s10, 32 }
 0x77a   :  { %p5456_p7 = scmp.ne.s32.totalorder %s6539_s10, %s5455_s21  ;;  %p5459_p8 = scmp.lt.u32.totalorder %s5455_s21, %s6539_s10 }
 0x77c   :  { %p5461_p9 = pnand %p5459_p8, %p5456_p7 }
 0x77e   :  { %5464 = shalt.err (!%p5461_p9)
}
 0x77f   :  { %2912 = dma.vmem_to_hbm [thread:$0]  %s2910_s5, 32, %s6539_s10, [#allocation4]  }
 0x780   :  { %s5547_s26 = smov [#allocation11]  }
 0x781   :  { %s2949_s1 = sshll.u32 %s5547_s26, 4  ;;  %s2950_s1 = int_to_ptr.vmem [resolvable:$true] %s2949_s1 }
 0x782   :  { %s5465_s2 = scalar_lea.vmem %s2950_s1, 192  ;;  %p5470_p11 = scmp.lt.s32.totalorder %s2950_s1, %s2950_s1 }
 0x783   :  { %p5466_p10 = scmp.ne.s32.totalorder %s2950_s1, %s5465_s2  ;;  %p5471_p12 = scmp.lt.s32.totalorder %s5465_s2, %s5465_s2 }
 0x785   :  { %p5472_p13 = por %p5471_p12, %p5470_p11 }
 0x787   :  { %p5473_p0 = pnand %p5472_p13, %p5466_p10 }
 0x789   :  { %5476 = shalt.err (!%p5473_p0)
}
 0x78a   :  { %s5477_s28 = scalar_lea.hbm %s6543_s14, 192 }
 0x78b   :  { %p5478_p1 = scmp.ne.s32.totalorder %s6543_s14, %s5477_s28  ;;  %p5481_p2 = scmp.lt.u32.totalorder %s5477_s28, %s6543_s14 }
 0x78d   :  { %p5483_p3 = pnand %p5481_p2, %p5478_p1 }
 0x78f   :  { %5486 = shalt.err (!%p5483_p3)
}
 0x790   :  { %2952 = dma.vmem_to_hbm [thread:$0]  %s2950_s1, 192, %s6543_s14, [#allocation10]   ;;  %v2986_v63 = vld [vmem:[%s6533_s4] ss:$0 sm:$0xff] }
 0x791   :  { %s5548_s17 = smov [#allocation6]   ;;  %s5549_s5 = smov [#allocation8]  }
 0x792   :  { %s2919_s18 = sshll.u32 %s5548_s17, 4  ;;  %s2929_s19 = sshll.u32 %s5549_s5, 4  ;;  %s2920_s18 = int_to_ptr.vmem [resolvable:$true] %s2919_s18  ;;  %s2930_s19 = int_to_ptr.vmem [resolvable:$true] %s2929_s19 }
 0x793   :  { %s5487_s14 = scalar_lea.vmem %s2920_s18, 32  ;;  %p5492_p5 = scmp.lt.s32.totalorder %s2920_s18, %s2920_s18 }
 0x794   :  { %p5488_p4 = scmp.ne.s32.totalorder %s2920_s18, %s5487_s14  ;;  %p5493_p6 = scmp.lt.s32.totalorder %s5487_s14, %s5487_s14 }
 0x796   :  { %p5494_p7 = por %p5493_p6, %p5492_p5 }
 0x798   :  { %p5495_p8 = pnand %p5494_p7, %p5488_p4 }
 0x838   :  { %v3388_v60 = vpop.f32.mrb[14].mxu1 }
 0x839   :  { %v3423_v61 = vpop.f32.mrb[12].mxu0  ;;  %v3389_v0 = vpop.f32.mrb[15].mxu1 }
 0x83a   :  { %v3390_v44 = vadd.f32 %v3389_v0, %v3388_v60  ;;  %v3424_v45 = vpop.f32.mrb[13].mxu0 }
 0x83b   :  { %v3425_v46 = vadd.f32 %v3424_v45, %v3423_v61 }
 0x83c   :  { %v2829_v47 = vadd.f32 %v3390_v44, %v2986_v63 }
 0x83e   :  { %v2899_v48 = vadd.f32 %v3425_v46, %v2829_v47 }
 0x840   :  { %2902 = vst.msk [vmem:[#allocation6] sm:$0x3] %vm1483_vm4, %v2899_v48 }
 0x841   :  { %5498 = shalt.err (!%p5495_p8)
}
 0x842   :  { %s5499_s20 = scalar_lea.hbm %s6540_s11, 32 }
 0x843   :  { %p5500_p9 = scmp.ne.s32.totalorder %s6540_s11, %s5499_s20  ;;  %p5503_p10 = scmp.lt.u32.totalorder %s5499_s20, %s6540_s11 }
 0x845   :  { %p5505_p11 = pnand %p5503_p10, %p5500_p9 }
 0x847   :  { %5508 = shalt.err (!%p5505_p11)
}
 0x848   :  { %2922 = dma.vmem_to_hbm [thread:$0]  %s2920_s18, 32, %s6540_s11, [#allocation7]  }
 0x849   :  { %s5509_s25 = scalar_lea.vmem %s2930_s19, 64  ;;  %p5514_p13 = scmp.lt.s32.totalorder %s2930_s19, %s2930_s19 }
 0x84a   :  { %p5510_p12 = scmp.ne.s32.totalorder %s2930_s19, %s5509_s25  ;;  %p5515_p0 = scmp.lt.s32.totalorder %s5509_s25, %s5509_s25 }
 0x84c   :  { %p5516_p1 = por %p5515_p0, %p5514_p13 }
 0x84e   :  { %p5517_p2 = pnand %p5516_p1, %p5510_p12 }
 0x850   :  { %5520 = shalt.err (!%p5517_p2)
}
 0x851   :  { %s5521_s2 = scalar_lea.hbm %s6541_s12, 64 }
 0x852   :  { %p5522_p3 = scmp.ne.s32.totalorder %s6541_s12, %s5521_s2  ;;  %p5525_p4 = scmp.lt.u32.totalorder %s5521_s2, %s6541_s12 }
 0x854   :  { %p5527_p5 = pnand %p5525_p4, %p5522_p3 }
 0x856   :  { %5530 = shalt.err (!%p5527_p5)
}
 0x857   :  { %2932 = dma.vmem_to_hbm [thread:$0]  %s2930_s19, 64, %s6541_s12, [#allocation7]  }
 0x858   :  { %5533 = dma.done.wait [#allocation4], 32  }
 0x859   :  { %5534 = vsyncadd [#allocation4], 4294967264 }
 0x85a   :  { %5535 = dma.done.wait [#allocation7], 96  }
 0x85b   :  { %5536 = vsyncadd [#allocation7], 4294967200 }
 0x85c   :  { %5537 = dma.done.wait [#allocation10], 256  }
 0x85d   :  { %5538 = vsyncadd [#allocation10], 4294967040 }
 0x85e   :  { %2968 = vsyncpa [#allocation3], 1 }
 0x85f   :  { %2969 = vsyncpa [#allocation4], 1 }
 0x860   :  { %2970 = vsyncpa [#allocation7], 1 }
 0x861   :  { %2971 = vsyncpa [#allocation10], 1 }

</bundles_post_ra>
